<compile_context>
chip_gen: v5e
topology: v5e:2x2
jax: 0.10.0
libtpu: 0.0.40
codegen_flags: <defaults>
</compile_context>

<pallas_src>
import functools

import numpy as np
import jax
import jax.numpy as jnp
from jax.experimental import pallas as pl
from jax.experimental.pallas import tpu as pltpu


# --------------------------------------------------------------------------- #
# Helpers
# --------------------------------------------------------------------------- #
def _round_up(x, m):
    return ((x + m - 1) // m) * m


def _tpu_vmem_capacity_bytes():
    # v7x only has 64 MiB of physical VMEM per TensorCore; derive limits from the
    # hardware.  The fallback (64 MiB) is safe on every generation.
    try:
        return int(pltpu.get_tpu_info().vmem_capacity_bytes)
    except Exception:
        return 64 * 1024 * 1024


_VMEM_CAP = _tpu_vmem_capacity_bytes()
_VMEM_LIMIT = min((_VMEM_CAP * 3) // 4, 96 * 1024 * 1024)

# Single-buffering of the constant DFT operand; flipped off automatically if the
# installed Pallas runtime rejects pipeline_mode=pl.Buffered(1).
_SINGLE_BUFFER_DFT_OK = True


def _pick_tm(n_rows, winp):
    """Per-resolution, generation-aware frame-tile rows (matmul M = 2*tm)."""
    if winp <= 256:
        tm_max = 1024
    elif winp <= 512:
        tm_max = 512
    elif winp <= 1024:
        tm_max = 256
    else:  # fft=2048 (winp=1280): 256 on 128 MiB VMEM parts, 192 on v7x (64 MiB)
        tm_max = 256 if _VMEM_CAP >= 100 * 1024 * 1024 else 192
    # keep at least 2 grid steps when the clip is short so both v7x cores get work
    half = _round_up(max(pl.cdiv(n_rows, 2), 1), 8)
    return max(8, min(tm_max, half))


# --------------------------------------------------------------------------- #
# STFT-loss kernel: one frame tile, fused DFT matmul + reductions
# --------------------------------------------------------------------------- #
def _stft_loss_kernel(zf_ref, dft_ref, out_ref, *, n_rows):
    """zf_ref  : (2, tm, winp) bf16 — [generated frames ; target frames]
    dft_ref   : (winp, 2*binsp) bf16 = [win*cos | win*(-sin)], padded rows/cols 0
    out_ref   : (1, 8, 128) f32 per-tile partial sums in lanes 0..2 of row 0:
                [sum((|Y|-|X|)^2), sum(clamp(|Y|^2,1e-7)), sum(|log(|Y|/|X|)|)]
    """
    tm = zf_ref.shape[1]
    winp = zf_ref.shape[2]
    binsp = dft_ref.shape[1] // 2

    # Single fused MXU matmul: x/y pre-stacked along rows, real|imag along columns.
    z = zf_ref[...].reshape(2 * tm, winp)
    res = jnp.dot(z, dft_ref[...], preferred_element_type=jnp.float32)  # (2tm, 2binsp)

    xr = res[:tm, :binsp]
    xi = res[:tm, binsp:]
    yr = res[tm:, :binsp]
    yi = res[tm:, binsp:]

    xs = xr * xr + xi * xi
    ys = yr * yr + yi * yi

    # Only the last tile can contain rows past n_rows (unspecified OOB data from the
    # partial auto-pipelined block); the check is static, so full tiles pay nothing.
    if n_rows % tm != 0:
        row = jax.lax.broadcasted_iota(jnp.int32, (tm, 1), 0) + pl.program_id(0) * tm
        rmask = row < n_rows
        xs = jnp.where(rmask, xs, 0.0)
        ys = jnp.where(rmask, ys, 0.0)

    xs = jnp.maximum(xs, 1e-7)
    ys = jnp.maximum(ys, 1e-7)

    # (|Y|-|X|)^2: padded bins / masked rows give xs == ys -> exactly zero.
    xm = jnp.sqrt(xs)
    ym = jnp.sqrt(ys)
    diff = ym - xm
    s_sc_num = jnp.sum(diff * diff)

    # Clamped |Y|^2 sum; the 1e-7 contribution of padded rows / padded bin columns
    # is removed exactly by a scalar correction in the wrapper.
    s_sc_den = jnp.sum(ys)

    # log-magnitude L1: |log(|Y|/|X|)| = 0.5*|log(|Y|^2/|X|^2)|, one log + one
    # approx reciprocal on the (otherwise idle) EUP slot.  Padded elements have
    # xs == ys so the term is ~0 there.
    s_mag = 0.5 * jnp.sum(jnp.abs(jnp.log(ys * pl.reciprocal(xs, approx=True))))

    lane = jax.lax.broadcasted_iota(jnp.int32, (8, 128), 1)
    out_ref[0] = (jnp.where(lane == 0, s_sc_num, 0.0)
                  + jnp.where(lane == 1, s_sc_den, 0.0)
                  + jnp.where(lane == 2, s_mag, 0.0))


def _stft_resolution_constants(fft_size, win_length):
    """bf16 [win*cos | win*(-sin)] DFT matrix truncated to the window support.

    Rows cover only the win_length window samples (rounded up to a 128 multiple);
    the phase uses the original in-frame offset lpad + t, so results are identical
    to the full fft_size matmul (rows outside the window are multiplied by zero).
    """
    bins = fft_size // 2 + 1
    binsp = _round_up(bins, 128)
    winp = _round_up(win_length, 128)
    lpad = (fft_size - win_length) // 2        # torch.stft centers the window

    n = np.arange(win_length, dtype=np.float64)
    hann = 0.5 - 0.5 * np.cos(2.0 * np.pi * n / win_length)   # periodic hann
    w = np.zeros(winp, dtype=np.float64)
    w[:win_length] = hann

    t = np.arange(winp, dtype=np.float64)[:, None] + lpad
    k = np.arange(binsp, dtype=np.float64)[None, :]
    ang = 2.0 * np.pi * t * k / fft_size
    cos_m = np.cos(ang) * w[:, None]
    sin_m = -np.sin(ang) * w[:, None]
    cos_m[:, bins:] = 0.0                                      # zero padded bin cols
    sin_m[:, bins:] = 0.0
    dft = np.concatenate([cos_m, sin_m], axis=1).astype(np.float32)
    return jnp.asarray(dft, dtype=jnp.bfloat16), bins, binsp, winp, lpad


def _stft_pallas_call(zf, dft, grid, tm, winp, binsp, n_rows, single_buffer):
    dft_kwargs = {"pipeline_mode": pl.Buffered(1)} if single_buffer else {}
    kernel = functools.partial(_stft_loss_kernel, n_rows=n_rows)
    return pl.pallas_call(
        kernel,
        out_shape=jax.ShapeDtypeStruct((grid, 8, 128), jnp.float32),
        grid=(grid,),
        in_specs=[
            pl.BlockSpec((2, tm, winp), lambda i: (0, i, 0)),
            pl.BlockSpec((winp, 2 * binsp), lambda i: (0, 0), **dft_kwargs),
        ],
        out_specs=pl.BlockSpec((1, 8, 128), lambda i: (i, 0, 0)),
        compiler_params=pltpu.CompilerParams(
            dimension_semantics=("parallel",),
            vmem_limit_bytes=_VMEM_LIMIT),
    )(zf, dft)


def _stft_loss_sums(x, y, dft, fft_size, hop, bins, binsp, winp, lpad):
    """x = generated, y = target, both (N, T).
    Returns (sum((|Y|-|X|)^2), sum(clamp(|Y|^2,1e-7)) over valid elems,
             sum(|log(|Y|/|X|)|), valid element count)."""
    global _SINGLE_BUFFER_DFT_OK

    N, T = x.shape
    pad = fft_size // 2
    n_frames = T // hop + 1
    needed = (n_frames - 1) * hop + lpad + winp
    extra = max(0, needed - (T + 2 * pad))     # extra tail hit only by zero DFT rows
    if pad + extra > T - 1:
        raise ValueError("waveform too short for reflect padding at this resolution")

    # bf16 BEFORE padding/gathering: halves the HBM traffic of frame materialisation.
    z = jnp.stack([x.astype(jnp.bfloat16), y.astype(jnp.bfloat16)], axis=0)  # (2,N,T)
    zp = jnp.pad(z, ((0, 0), (0, 0), (pad, pad + extra)), mode="reflect")

    # TODO(synk): framing is still an XLA gather that materialises overlapped frames
    # in HBM; in-kernel framing from the resident padded waveform (hop-chunked
    # matmuls) would remove the remaining duplication.
    idx = (np.arange(n_frames)[:, None] * hop + lpad
           + np.arange(winp)[None, :]).astype(np.int32)
    zf = zp[:, :, jnp.asarray(idx)].reshape(2, N * n_frames, winp)

    n_rows = N * n_frames
    tm = _pick_tm(n_rows, winp)
    grid = pl.cdiv(n_rows, tm)

    if _SINGLE_BUFFER_DFT_OK:
        try:
            partials = _stft_pallas_call(zf, dft, grid, tm, winp, binsp, n_rows, True)
        except Exception:
            _SINGLE_BUFFER_DFT_OK = False
            partials = _stft_pallas_call(zf, dft, grid, tm, winp, binsp, n_rows, False)
    else:
        partials = _stft_pallas_call(zf, dft, grid, tm, winp, binsp, n_rows, False)

    sums = jnp.sum(partials[:, 0, :3], axis=0)
    count = n_rows * bins
    # Remove the exact 1e-7 clamp contribution of padded rows / padded bin columns
    # so the denominator equals torch's clamped Frobenius norm over valid elements.
    s_den = sums[1] - jnp.float32(1e-7 * (grid * tm * binsp - count))
    return sums[0], s_den, sums[2], float(count)


class MultiResolutionSTFTLoss:
    def __init__(self, fft_sizes, win_sizes, hop_sizes):
        self.resolutions = []
        for fs, ws, hs in zip(fft_sizes, win_sizes, hop_sizes):
            dft, bins, binsp, winp, lpad = _stft_resolution_constants(fs, ws)
            self.resolutions.append(
                dict(fft=fs, hop=hs, dft=dft, bins=bins, binsp=binsp,
                     winp=winp, lpad=lpad))

    def __call__(self, x, y):
        """x = generated, y = target, both (N, T).  Returns (sc_loss, mag_loss)."""
        sc_loss = jnp.float32(0.0)
        mag_loss = jnp.float32(0.0)
        for r in self.resolutions:
            s_num, s_den, s_mag, count = _stft_loss_sums(
                x, y, r["dft"], r["fft"], r["hop"], r["bins"], r["binsp"],
                r["winp"], r["lpad"])
            sc_loss = sc_loss + jnp.sqrt(s_num) / jnp.sqrt(s_den)
            mag_loss = mag_loss + s_mag / count
        n_res = float(len(self.resolutions))
        return sc_loss / n_res, mag_loss / n_res


# --------------------------------------------------------------------------- #
# PQMF analysis: one launch, all-VPU polyphase filterbank, lane-dense output
# --------------------------------------------------------------------------- #
def _pqmf_analysis_kernel(x_ref, out_ref, *, h, sub, q, t_out_p):
    """x_ref : (m, sub, t_len_p) f32 polyphase components xpoly[s,r,n]=xpe[s,sub*n+r]
    out_ref  : (m, sub, t_out_p) f32 sub-band signals (time on the lane axis)
    h        : (sub, q*sub) numpy filterbank, baked in as immediate constants.
    All accumulation is scalar*vector FMAs on the VPU (no tiny-matmul MXU pops)."""
    x = x_ref[...]
    m = x.shape[0]
    # the q*sub shifted polyphase slices are shared by every output band
    xsl = [[x[:, r, j:j + t_out_p] for r in range(sub)] for j in range(q)]
    bands = []
    for k in range(sub):
        acc = jnp.zeros((m, t_out_p), jnp.float32)
        for j in range(q):
            base = j * sub
            for r in range(sub):
                c = float(h[k, base + r])
                if c != 0.0:
                    acc = acc + c * xsl[j][r]
        bands.append(acc)
    out_ref[...] = jnp.stack(bands, axis=1)        # lane-dense full-block store


class PQMF:
    def __init__(self, subbands=6, taps=62, cutoff_ratio=0.142, beta=9.0):
        n = np.arange(taps + 1, dtype=np.float64)
        omega_c = np.pi * cutoff_ratio
        with np.errstate(invalid="ignore", divide="ignore"):
            h_i = np.sin(omega_c * (n - 0.5 * taps)) / (np.pi * (n - 0.5 * taps))
        h_i[taps // 2] = cutoff_ratio
        h_proto = h_i * np.kaiser(taps + 1, beta)

        h_ana = np.zeros((subbands, taps + 1), dtype=np.float64)
        for k in range(subbands):
            h_ana[k] = 2.0 * h_proto * np.cos(
                (2 * k + 1) * (np.pi / (2 * subbands)) * (n - taps / 2.0)
                + ((-1) ** k) * np.pi / 4.0)

        self.subbands = subbands
        self.taps = taps
        self.q = -(-(taps + 1) // subbands)        # ceil((taps+1)/subbands) == 11
        filt = np.zeros((subbands, self.q * subbands), dtype=np.float64)
        filt[:, :taps + 1] = h_ana
        self._h = filt                             # compile-time kernel constants

    def analysis(self, x):
        """x: (M, 1, T) -> (M, subbands, T // subbands)."""
        M = x.shape[0]
        T = x.shape[-1]
        sub = self.subbands
        t_out = T // sub
        t_out_p = _round_up(t_out, 128)            # lane-dense output
        t_len_p = t_out_p + 128                    # >= t_out_p + q, lane-aligned
        lp = sub * t_len_p
        pad_l = self.taps // 2
        pad_r = lp - T - pad_l

        sig = x.reshape(M, T).astype(jnp.float32)
        xpe = jnp.pad(sig, ((0, 0), (pad_l, pad_r)))
        # TODO(synk): the polyphase de-interleave still round-trips HBM through an
        # XLA transpose; strided in-kernel reads would remove it for long clips.
        xpoly = xpe.reshape(M, t_len_p, sub).transpose(0, 2, 1)   # (M, sub, t_len_p)

        m_blk = min(M, 16)
        grid = pl.cdiv(M, m_blk)
        kernel = functools.partial(_pqmf_analysis_kernel, h=self._h,
                                   sub=sub, q=self.q, t_out_p=t_out_p)
        out = pl.pallas_call(
            kernel,
            out_shape=jax.ShapeDtypeStruct((M, sub, t_out_p), jnp.float32),
            grid=(grid,),
            in_specs=[pl.BlockSpec((m_blk, sub, t_len_p), lambda b: (b, 0, 0))],
            out_specs=pl.BlockSpec((m_blk, sub, t_out_p), lambda b: (b, 0, 0)),
            compiler_params=pltpu.CompilerParams(
                dimension_semantics=("parallel",),
                vmem_limit_bytes=_VMEM_LIMIT),
        )(xpoly)
        return out[:, :, :t_out]


# --------------------------------------------------------------------------- #
# Tiny adversarial / feature-match reductions (plain XLA per perf review)
# --------------------------------------------------------------------------- #
def mse_g_loss(fake_logits):
    x = fake_logits.astype(jnp.float32)
    return jnp.mean(jnp.square(x - 1.0))


def feature_match_loss(fmap_real, fmap_fake):
    losses = [jnp.mean(jnp.abs(r.astype(jnp.float32) - f.astype(jnp.float32)))
              for r, f in zip(fmap_real, fmap_fake)]
    return sum(losses) / float(len(losses))


# --------------------------------------------------------------------------- #
# GeneratorSTFTLoss
# --------------------------------------------------------------------------- #
class GeneratorSTFTLoss:
    def __init__(self, fm_weight, full_weight, sub_weight,
                 full_fft_sizes=(512, 1024, 2048),
                 full_win_sizes=(480, 960, 1200),
                 full_hop_sizes=(120, 240, 300),
                 sub_num_bands=6,
                 sub_fft_sizes=(128, 256, 256),
                 sub_win_sizes=(80, 120, 200),
                 sub_hop_sizes=(20, 40, 50)):
        self.fm_weight = fm_weight
        self.full_weight = full_weight
        self.sub_weight = sub_weight
        self.stft_full_criterion = MultiResolutionSTFTLoss(
            full_fft_sizes, full_win_sizes, full_hop_sizes)
        self.stft_sub_criterion = MultiResolutionSTFTLoss(
            sub_fft_sizes, sub_win_sizes, sub_hop_sizes)
        self.pqmf = PQMF(sub_num_bands)

    def __call__(self, targets, outputs, output_real, output_fake,
                 fmap_real, fmap_fake, use_adv_loss=True):
        g_loss = jnp.float32(0.0)
        g_loss_items = {}

        if use_adv_loss:
            for key in output_fake.keys():
                adv = mse_g_loss(output_fake[key])
                g_loss = g_loss + adv
                g_loss_items[f"Train/G_adv_{key}"] = adv

                fm = feature_match_loss(fmap_real[key], fmap_fake[key]) * self.fm_weight
                g_loss = g_loss + fm
                g_loss_items[f"Train/G_fm_{key}"] = fm / self.fm_weight

        # full-band multi-resolution STFT loss
        sc_full, mg_full = self.stft_full_criterion(outputs[:, 0, :], targets[:, 0, :])
        g_loss = g_loss + self.full_weight * (sc_full + mg_full)
        g_loss_items["Train/G_sc_full"] = sc_full
        g_loss_items["Train/G_mg_full"] = mg_full

        # sub-band (PQMF) multi-resolution STFT loss; one PQMF launch for both signals
        B = targets.shape[0]
        both_sub = self.pqmf.analysis(jnp.concatenate([outputs, targets], axis=0))
        size = both_sub.shape[-1]
        outputs_sub = both_sub[:B].reshape(-1, size)
        targets_sub = both_sub[B:].reshape(-1, size)
        sc_sub, mg_sub = self.stft_sub_criterion(outputs_sub, targets_sub)
        g_loss = g_loss + self.sub_weight * (sc_sub + mg_sub)
        g_loss_items["Train/G_sc_sub"] = sc_sub
        g_loss_items["Train/G_mg_sub"] = mg_sub

        return g_loss, g_loss_items


# --------------------------------------------------------------------------- #
# Demo
# --------------------------------------------------------------------------- #
if __name__ == "__main__":
    key = jax.random.PRNGKey(0)
    B, T = 2, 2400          # (B, 1, T) waveforms; T divisible by 6 and all hops

    ks = jax.random.split(key, 16)
    targets = jax.random.normal(ks[0], (B, 1, T), dtype=jnp.float32) * 0.1
    outputs = jax.random.normal(ks[1], (B, 1, T), dtype=jnp.float32) * 0.1

    # discriminator logits (fake / real) for two discriminators
    output_fake = {
        "mpd": jax.random.normal(ks[2], (B, 1, 23), dtype=jnp.float32),
        "msd": jax.random.normal(ks[3], (B, 1, 31), dtype=jnp.float32),
    }
    output_real = {
        "mpd": jax.random.normal(ks[4], (B, 1, 23), dtype=jnp.float32),
        "msd": jax.random.normal(ks[5], (B, 1, 31), dtype=jnp.float32),
    }

    # feature maps: three layers per discriminator
    def fmaps(k0):
        kk = jax.random.split(k0, 3)
        return [
            jax.random.normal(kk[0], (B, 8, 50), dtype=jnp.float32),
            jax.random.normal(kk[1], (B, 16, 25), dtype=jnp.float32),
            jax.random.normal(kk[2], (B, 32, 13), dtype=jnp.float32),
        ]

    fmap_real = {"mpd": fmaps(ks[6]), "msd": fmaps(ks[7])}
    fmap_fake = {"mpd": fmaps(ks[8]), "msd": fmaps(ks[9])}

    loss_fn = GeneratorSTFTLoss(fm_weight=2.0, full_weight=1.0, sub_weight=1.0)

    g_loss, g_loss_items = loss_fn(targets, outputs, output_real, output_fake,
                                   fmap_real, fmap_fake, use_adv_loss=True)

    jax.block_until_ready(g_loss)
    for v in g_loss_items.values():
        jax.block_until_ready(v)

    print("KERNEL_OK")
</pallas_src>

<mosaic_0001>
module attributes {stable_mosaic.version = 11 : i64} {
  func.func @_stft_loss_kernel(%arg0: i32, %arg1: memref<2x24x512xbf16, #tpu.memory_space<vmem>>, %arg2: memref<512x768xbf16, #tpu.memory_space<vmem>>, %arg3: memref<1x8x128xf32, #tpu.memory_space<vmem>>) attributes {dimension_semantics = [#tpu.dimension_semantics<parallel>], iteration_bounds = array<i64: 2>, scalar_prefetch = 0 : i64, scratch_operands = 0 : i64, tpu.core_type = #tpu.core_type<tc>, window_params = [{transform_indices = @transform_0, window_bounds = array<i64: 2, 24, 512>}, {pipeline_mode = #tpu.pipeline_mode<synchronous>, transform_indices = @transform_1, window_bounds = array<i64: 512, 768>}, {transform_indices = @transform_2, window_bounds = array<i64: 1, 8, 128>}]} {
    %c0 = arith.constant 0 : index
    %c0_0 = arith.constant 0 : index
    %c0_1 = arith.constant 0 : index
    %0 = vector.load %arg1[%c0, %c0_0, %c0_1] : memref<2x24x512xbf16, #tpu.memory_space<vmem>>, vector<2x24x512xbf16>
    %1 = vector.shape_cast %0 : vector<2x24x512xbf16> to vector<48x512xbf16>
    %c0_2 = arith.constant 0 : index
    %c0_3 = arith.constant 0 : index
    %2 = vector.load %arg2[%c0_2, %c0_3] : memref<512x768xbf16, #tpu.memory_space<vmem>>, vector<512x768xbf16>
    %cst = arith.constant dense<0.000000e+00> : vector<48x768xf32>
    %3 = tpu.matmul %1, %2, %cst {dimension_numbers = #tpu.dot_dimension_numbers<[1], [0], [0], [1], [0, 0, 1, 1], [], []>} : vector<48x512xbf16>, vector<512x768xbf16>, vector<48x768xf32> -> vector<48x768xf32>
    %4 = vector.extract_strided_slice %3 {offsets = [0, 0], sizes = [24, 384], strides = [1, 1]} : vector<48x768xf32> to vector<24x384xf32>
    %5 = vector.extract_strided_slice %3 {offsets = [0, 384], sizes = [24, 384], strides = [1, 1]} : vector<48x768xf32> to vector<24x384xf32>
    %6 = vector.extract_strided_slice %3 {offsets = [24, 0], sizes = [24, 384], strides = [1, 1]} : vector<48x768xf32> to vector<24x384xf32>
    %7 = vector.extract_strided_slice %3 {offsets = [24, 384], sizes = [24, 384], strides = [1, 1]} : vector<48x768xf32> to vector<24x384xf32>
    %8 = arith.mulf %4, %4 : vector<24x384xf32>
    %9 = arith.mulf %5, %5 : vector<24x384xf32>
    %10 = arith.addf %8, %9 : vector<24x384xf32>
    %11 = arith.mulf %6, %6 : vector<24x384xf32>
    %12 = arith.mulf %7, %7 : vector<24x384xf32>
    %13 = arith.addf %11, %12 : vector<24x384xf32>
    %14 = tpu.iota {dimensions = array<i32: 0>} : vector<24x1xi32>
    %c24_i32 = arith.constant 24 : i32
    %15 = arith.muli %arg0, %c24_i32 : i32
    %16 = vector.broadcast %15 : i32 to vector<24x1xi32>
    %17 = arith.addi %14, %16 : vector<24x1xi32>
    %c42_i32 = arith.constant 42 : i32
    %18 = vector.broadcast %c42_i32 : i32 to vector<24x1xi32>
    %19 = arith.cmpi slt, %17, %18 : vector<24x1xi32>
    %cst_4 = arith.constant 0.000000e+00 : f32
    %20 = vector.shape_cast %19 : vector<24x1xi1> to vector<24x1xi1>
    %21 = vector.broadcast %20 : vector<24x1xi1> to vector<24x384xi1>
    %22 = vector.broadcast %cst_4 : f32 to vector<24x384xf32>
    %23 = arith.select %21, %10, %22 : vector<24x384xi1>, vector<24x384xf32>
    %cst_5 = arith.constant 0.000000e+00 : f32
    %24 = vector.shape_cast %19 : vector<24x1xi1> to vector<24x1xi1>
    %25 = vector.broadcast %24 : vector<24x1xi1> to vector<24x384xi1>
    %26 = vector.broadcast %cst_5 : f32 to vector<24x384xf32>
    %27 = arith.select %25, %13, %26 : vector<24x384xi1>, vector<24x384xf32>
    %cst_6 = arith.constant 1.000000e-07 : f32
    %28 = vector.broadcast %cst_6 : f32 to vector<24x384xf32>
    %29 = arith.maximumf %23, %28 : vector<24x384xf32>
    %cst_7 = arith.constant 1.000000e-07 : f32
    %30 = vector.broadcast %cst_7 : f32 to vector<24x384xf32>
    %31 = arith.maximumf %27, %30 : vector<24x384xf32>
    %32 = math.sqrt %29 : vector<24x384xf32>
    %33 = math.sqrt %31 : vector<24x384xf32>
    %34 = arith.subf %33, %32 : vector<24x384xf32>
    %35 = arith.mulf %34, %34 : vector<24x384xf32>
    %36 = vector.shape_cast %35 : vector<24x384xf32> to vector<1x24x384xf32>
    %cst_8 = arith.constant dense<0.000000e+00> : vector<1xf32>
    %37 = vector.multi_reduction <add>, %36, %cst_8 [1, 2] : vector<1x24x384xf32> to vector<1xf32>
    %38 = vector.shape_cast %37 : vector<1xf32> to vector<1x1x1xf32>
    %39 = vector.extract %38[0, 0, 0] : f32 from vector<1x1x1xf32>
    %40 = vector.shape_cast %31 : vector<24x384xf32> to vector<1x24x384xf32>
    %cst_9 = arith.constant dense<0.000000e+00> : vector<1xf32>
    %41 = vector.multi_reduction <add>, %40, %cst_9 [1, 2] : vector<1x24x384xf32> to vector<1xf32>
    %42 = vector.shape_cast %41 : vector<1xf32> to vector<1x1x1xf32>
    %43 = vector.extract %42[0, 0, 0] : f32 from vector<1x1x1xf32>
    %44 = tpu.reciprocal %29 {approx = true} : vector<24x384xf32> -> vector<24x384xf32>
    %45 = arith.mulf %31, %44 : vector<24x384xf32>
    %46 = math.log %45 : vector<24x384xf32>
    %47 = math.absf %46 : vector<24x384xf32>
    %48 = vector.shape_cast %47 : vector<24x384xf32> to vector<1x24x384xf32>
    %cst_10 = arith.constant dense<0.000000e+00> : vector<1xf32>
    %49 = vector.multi_reduction <add>, %48, %cst_10 [1, 2] : vector<1x24x384xf32> to vector<1xf32>
    %50 = vector.shape_cast %49 : vector<1xf32> to vector<1x1x1xf32>
    %51 = vector.extract %50[0, 0, 0] : f32 from vector<1x1x1xf32>
    %cst_11 = arith.constant 5.000000e-01 : f32
    %52 = arith.mulf %cst_11, %51 : f32
    %53 = tpu.iota {dimensions = array<i32: 1>} : vector<8x128xi32>
    %c0_i32 = arith.constant 0 : i32
    %54 = vector.broadcast %c0_i32 : i32 to vector<8x128xi32>
    %55 = arith.cmpi eq, %53, %54 : vector<8x128xi32>
    %cst_12 = arith.constant 0.000000e+00 : f32
    %56 = vector.broadcast %39 : f32 to vector<8x128xf32>
    %57 = vector.broadcast %cst_12 : f32 to vector<8x128xf32>
    %58 = arith.select %55, %56, %57 : vector<8x128xi1>, vector<8x128xf32>
    %c1_i32 = arith.constant 1 : i32
    %59 = vector.broadcast %c1_i32 : i32 to vector<8x128xi32>
    %60 = arith.cmpi eq, %53, %59 : vector<8x128xi32>
    %cst_13 = arith.constant 0.000000e+00 : f32
    %61 = vector.broadcast %43 : f32 to vector<8x128xf32>
    %62 = vector.broadcast %cst_13 : f32 to vector<8x128xf32>
    %63 = arith.select %60, %61, %62 : vector<8x128xi1>, vector<8x128xf32>
    %64 = arith.addf %58, %63 : vector<8x128xf32>
    %c2_i32 = arith.constant 2 : i32
    %65 = vector.broadcast %c2_i32 : i32 to vector<8x128xi32>
    %66 = arith.cmpi eq, %53, %65 : vector<8x128xi32>
    %cst_14 = arith.constant 0.000000e+00 : f32
    %67 = vector.broadcast %52 : f32 to vector<8x128xf32>
    %68 = vector.broadcast %cst_14 : f32 to vector<8x128xf32>
    %69 = arith.select %66, %67, %68 : vector<8x128xi1>, vector<8x128xf32>
    %70 = arith.addf %64, %69 : vector<8x128xf32>
    %c0_15 = arith.constant 0 : index
    %c0_16 = arith.constant 0 : index
    %c0_17 = arith.constant 0 : index
    %71 = vector.load %arg3[%c0_15, %c0_16, %c0_17] : memref<1x8x128xf32, #tpu.memory_space<vmem>>, vector<1x8x128xf32>
    %72 = vector.shape_cast %71 : vector<1x8x128xf32> to vector<8x128xf32>
    %73 = vector.shape_cast %70 : vector<8x128xf32> to vector<1x8x128xf32>
    tpu.vector_store %arg3[%c0_15, %c0_16, %c0_17], %73 {strides = array<i32>} : memref<1x8x128xf32, #tpu.memory_space<vmem>>, vector<1x8x128xf32>,
    return
  }
  func.func @transform_0(%arg0: i32) -> (i32, i32, i32) {
    %c0_i32 = arith.constant 0 : i32
    %c0_i32_0 = arith.constant 0 : i32
    %c0_i32_1 = arith.constant 0 : i32
    return %c0_i32, %arg0, %c0_i32_0 : i32, i32, i32
  }
  func.func @transform_1(%arg0: i32) -> (i32, i32) {
    %c0_i32 = arith.constant 0 : i32
    %c0_i32_0 = arith.constant 0 : i32
    %c0_i32_1 = arith.constant 0 : i32
    return %c0_i32, %c0_i32_0 : i32, i32
  }
  func.func @transform_2(%arg0: i32) -> (i32, i32, i32) {
    %c0_i32 = arith.constant 0 : i32
    %c0_i32_0 = arith.constant 0 : i32
    %c0_i32_1 = arith.constant 0 : i32
    return %arg0, %c0_i32, %c0_i32_0 : i32, i32, i32
  }
}

module attributes {stable_mosaic.version = 11 : i64} {
  func.func @_stft_loss_kernel(%arg0: i32, %arg1: memref<2x24x512xbf16, #tpu.memory_space<vmem>>, %arg2: memref<512x768xbf16, #tpu.memory_space<vmem>>, %arg3: memref<1x8x128xf32, #tpu.memory_space<vmem>>) attributes {dimension_semantics = [#tpu.dimension_semantics<parallel>], iteration_bounds = array<i64: 2>, scalar_prefetch = 0 : i64, scratch_operands = 0 : i64, tpu.core_type = #tpu.core_type<tc>, window_params = [{transform_indices = @transform_0, window_bounds = array<i64: 2, 24, 512>}, {pipeline_mode = #tpu.pipeline_mode<synchronous>, transform_indices = @transform_1, window_bounds = array<i64: 512, 768>}, {transform_indices = @transform_2, window_bounds = array<i64: 1, 8, 128>}]} {
    %c0 = arith.constant 0 : index
    %c0_0 = arith.constant 0 : index
    %c0_1 = arith.constant 0 : index
    %0 = vector.load %arg1[%c0, %c0_0, %c0_1] : memref<2x24x512xbf16, #tpu.memory_space<vmem>>, vector<2x24x512xbf16>
    %1 = vector.shape_cast %0 : vector<2x24x512xbf16> to vector<48x512xbf16>
    %c0_2 = arith.constant 0 : index
    %c0_3 = arith.constant 0 : index
    %2 = vector.load %arg2[%c0_2, %c0_3] : memref<512x768xbf16, #tpu.memory_space<vmem>>, vector<512x768xbf16>
    %cst = arith.constant dense<0.000000e+00> : vector<48x768xf32>
    %3 = tpu.matmul %1, %2, %cst {dimension_numbers = #tpu.dot_dimension_numbers<[1], [0], [0], [1], [0, 0, 1, 1], [], []>} : vector<48x512xbf16>, vector<512x768xbf16>, vector<48x768xf32> -> vector<48x768xf32>
    %4 = vector.extract_strided_slice %3 {offsets = [0, 0], sizes = [24, 384], strides = [1, 1]} : vector<48x768xf32> to vector<24x384xf32>
    %5 = vector.extract_strided_slice %3 {offsets = [0, 384], sizes = [24, 384], strides = [1, 1]} : vector<48x768xf32> to vector<24x384xf32>
    %6 = vector.extract_strided_slice %3 {offsets = [24, 0], sizes = [24, 384], strides = [1, 1]} : vector<48x768xf32> to vector<24x384xf32>
    %7 = vector.extract_strided_slice %3 {offsets = [24, 384], sizes = [24, 384], strides = [1, 1]} : vector<48x768xf32> to vector<24x384xf32>
    %8 = arith.mulf %4, %4 : vector<24x384xf32>
    %9 = arith.mulf %5, %5 : vector<24x384xf32>
    %10 = arith.addf %8, %9 : vector<24x384xf32>
    %11 = arith.mulf %6, %6 : vector<24x384xf32>
    %12 = arith.mulf %7, %7 : vector<24x384xf32>
    %13 = arith.addf %11, %12 : vector<24x384xf32>
    %14 = tpu.iota {dimensions = array<i32: 0>} : vector<24x1xi32>
    %c24_i32 = arith.constant 24 : i32
    %15 = arith.muli %arg0, %c24_i32 : i32
    %16 = vector.broadcast %15 : i32 to vector<24x1xi32>
    %17 = arith.addi %14, %16 : vector<24x1xi32>
    %c42_i32 = arith.constant 42 : i32
    %18 = vector.broadcast %c42_i32 : i32 to vector<24x1xi32>
    %19 = arith.cmpi slt, %17, %18 : vector<24x1xi32>
    %cst_4 = arith.constant 0.000000e+00 : f32
    %20 = vector.shape_cast %19 : vector<24x1xi1> to vector<24x1xi1>
    %21 = vector.broadcast %20 : vector<24x1xi1> to vector<24x384xi1>
    %22 = vector.broadcast %cst_4 : f32 to vector<24x384xf32>
    %23 = arith.select %21, %10, %22 : vector<24x384xi1>, vector<24x384xf32>
    %cst_5 = arith.constant 0.000000e+00 : f32
    %24 = vector.shape_cast %19 : vector<24x1xi1> to vector<24x1xi1>
    %25 = vector.broadcast %24 : vector<24x1xi1> to vector<24x384xi1>
    %26 = vector.broadcast %cst_5 : f32 to vector<24x384xf32>
    %27 = arith.select %25, %13, %26 : vector<24x384xi1>, vector<24x384xf32>
    %cst_6 = arith.constant 1.000000e-07 : f32
    %28 = vector.broadcast %cst_6 : f32 to vector<24x384xf32>
    %29 = arith.maximumf %23, %28 : vector<24x384xf32>
    %cst_7 = arith.constant 1.000000e-07 : f32
    %30 = vector.broadcast %cst_7 : f32 to vector<24x384xf32>
    %31 = arith.maximumf %27, %30 : vector<24x384xf32>
    %32 = math.sqrt %29 : vector<24x384xf32>
    %33 = math.sqrt %31 : vector<24x384xf32>
    %34 = arith.subf %33, %32 : vector<24x384xf32>
    %35 = arith.mulf %34, %34 : vector<24x384xf32>
    %36 = vector.shape_cast %35 : vector<24x384xf32> to vector<1x24x384xf32>
    %cst_8 = arith.constant dense<0.000000e+00> : vector<1xf32>
    %37 = vector.multi_reduction <add>, %36, %cst_8 [1, 2] : vector<1x24x384xf32> to vector<1xf32>
    %38 = vector.shape_cast %37 : vector<1xf32> to vector<1x1x1xf32>
    %39 = vector.extract %38[0, 0, 0] : f32 from vector<1x1x1xf32>
    %40 = vector.shape_cast %31 : vector<24x384xf32> to vector<1x24x384xf32>
    %cst_9 = arith.constant dense<0.000000e+00> : vector<1xf32>
    %41 = vector.multi_reduction <add>, %40, %cst_9 [1, 2] : vector<1x24x384xf32> to vector<1xf32>
    %42 = vector.shape_cast %41 : vector<1xf32> to vector<1x1x1xf32>
    %43 = vector.extract %42[0, 0, 0] : f32 from vector<1x1x1xf32>
    %44 = tpu.reciprocal %29 {approx = true} : vector<24x384xf32> -> vector<24x384xf32>
    %45 = arith.mulf %31, %44 : vector<24x384xf32>
    %46 = math.log %45 : vector<24x384xf32>
    %47 = math.absf %46 : vector<24x384xf32>
    %48 = vector.shape_cast %47 : vector<24x384xf32> to vector<1x24x384xf32>
    %cst_10 = arith.constant dense<0.000000e+00> : vector<1xf32>
    %49 = vector.multi_reduction <add>, %48, %cst_10 [1, 2] : vector<1x24x384xf32> to vector<1xf32>
    %50 = vector.shape_cast %49 : vector<1xf32> to vector<1x1x1xf32>
    %51 = vector.extract %50[0, 0, 0] : f32 from vector<1x1x1xf32>
    %cst_11 = arith.constant 5.000000e-01 : f32
    %52 = arith.mulf %cst_11, %51 : f32
    %53 = tpu.iota {dimensions = array<i32: 1>} : vector<8x128xi32>
    %c0_i32 = arith.constant 0 : i32
    %54 = vector.broadcast %c0_i32 : i32 to vector<8x128xi32>
    %55 = arith.cmpi eq, %53, %54 : vector<8x128xi32>
    %cst_12 = arith.constant 0.000000e+00 : f32
    %56 = vector.broadcast %39 : f32 to vector<8x128xf32>
    %57 = vector.broadcast %cst_12 : f32 to vector<8x128xf32>
    %58 = arith.select %55, %56, %57 : vector<8x128xi1>, vector<8x128xf32>
    %c1_i32 = arith.constant 1 : i32
    %59 = vector.broadcast %c1_i32 : i32 to vector<8x128xi32>
    %60 = arith.cmpi eq, %53, %59 : vector<8x128xi32>
    %cst_13 = arith.constant 0.000000e+00 : f32
    %61 = vector.broadcast %43 : f32 to vector<8x128xf32>
    %62 = vector.broadcast %cst_13 : f32 to vector<8x128xf32>
    %63 = arith.select %60, %61, %62 : vector<8x128xi1>, vector<8x128xf32>
    %64 = arith.addf %58, %63 : vector<8x128xf32>
    %c2_i32 = arith.constant 2 : i32
    %65 = vector.broadcast %c2_i32 : i32 to vector<8x128xi32>
    %66 = arith.cmpi eq, %53, %65 : vector<8x128xi32>
    %cst_14 = arith.constant 0.000000e+00 : f32
    %67 = vector.broadcast %52 : f32 to vector<8x128xf32>
    %68 = vector.broadcast %cst_14 : f32 to vector<8x128xf32>
    %69 = arith.select %66, %67, %68 : vector<8x128xi1>, vector<8x128xf32>
    %70 = arith.addf %64, %69 : vector<8x128xf32>
    %c0_15 = arith.constant 0 : index
    %c0_16 = arith.constant 0 : index
    %c0_17 = arith.constant 0 : index
    %71 = vector.load %arg3[%c0_15, %c0_16, %c0_17] : memref<1x8x128xf32, #tpu.memory_space<vmem>>, vector<1x8x128xf32>
    %72 = vector.shape_cast %71 : vector<1x8x128xf32> to vector<8x128xf32>
    %73 = vector.shape_cast %70 : vector<8x128xf32> to vector<1x8x128xf32>
    tpu.vector_store %arg3[%c0_15, %c0_16, %c0_17], %73 {strides = array<i32>} : memref<1x8x128xf32, #tpu.memory_space<vmem>>, vector<1x8x128xf32>,
    return
  }
  func.func @transform_0(%arg0: i32) -> (i32, i32, i32) {
    %c0_i32 = arith.constant 0 : i32
    %c0_i32_0 = arith.constant 0 : i32
    %c0_i32_1 = arith.constant 0 : i32
    return %c0_i32, %arg0, %c0_i32_0 : i32, i32, i32
  }
  func.func @transform_1(%arg0: i32) -> (i32, i32) {
    %c0_i32 = arith.constant 0 : i32
    %c0_i32_0 = arith.constant 0 : i32
    %c0_i32_1 = arith.constant 0 : i32
    return %c0_i32, %c0_i32_0 : i32, i32
  }
  func.func @transform_2(%arg0: i32) -> (i32, i32, i32) {
    %c0_i32 = arith.constant 0 : i32
    %c0_i32_0 = arith.constant 0 : i32
    %c0_i32_1 = arith.constant 0 : i32
    return %arg0, %c0_i32, %c0_i32_0 : i32, i32, i32
  }
}

</mosaic_0001>

<bundles_post_ra>
// kernel: tpu_custom_call.1
= control target key start
LH: loop header
LB: loop body
LE: loop exit
PB: predicated region body
PF: predicated region fallthrough
CT: control target
= control target key end

     0   :  { %7 = vsyncpa [#allocation4], 0  ;;  %s4467_s0 = inlined_call_operand.vmem [shape: bf16[2,42,512], index: 0, kind: input, shape index: {}]   ;;  %s4468_s1 = inlined_call_operand.hbm [shape: bf16[512,768], index: 1, kind: input, shape index: {}]   ;;  %s4469_s2 = inlined_call_operand.hbm [shape: f32[2,8,128], index: 2, kind: output, shape index: {}]  }
   0x1   :  { %8 = vsyncpa [#allocation5], 0 }
   0x2   :  { %10 = vsyncpa [#allocation5 + $0x1], 0  ;;  %s3833_s9 = smov 0   ;;  %s3835_s10 = smov 0  }
   0x3   :  { %s3837_s11 = smov 0   ;;  %s3839_s12 = smov 0  }
   0x4 LB: > { %s3854_s13 = sadd.s32 4294967295, %s3813_s12   ;;  %s2549_s14 = sadd.s32 4294967294, %s3813_s12   ;;  %s3813_s12 = sphi %s3839_s12, %s4477_s12   ;;  %s3809_s11 = sphi %s3837_s11, %s4476_s11   ;;  %s3805_s10 = sphi %s3835_s10, %s4475_s10   ;;  %s3801_s9 = sphi %s3833_s9, %s4474_s9  }
   0x5   : > { %s3858_s15 = sadd.s32 1, %s3813_s12   ;;  %s23_s16 = sadd.s32 1, %s3809_s11 }
   0x6   : > { %s20_s17 = ssub.s32 %s3813_s12, %s3858_s15  ;;  %p30_p0 = scmp.ne.s32.totalorder %s3809_s11, %s3805_s10 }
   0x7   : > { %p21_p1 = scmp.eq.s32.totalorder %s20_s17, 0  ;;  %p31_p2 = scmp.eq.s32.totalorder %s3813_s12, 0 }
   0x8   : > { %p81_p3 = scmp.eq.s32.totalorder %s3854_s13, 1  ;;  %p86_p4 = scmp.ne.s32.totalorder %s3805_s10, %s3801_s9 }
   0x9   : > { %s3870_s18 = scalar_select %p21_p1, %s3809_s11, %s23_s16  }
   0xa   : > { %p3872_p5 = por %p31_p2, %p30_p0  ;;  %p3876_p6 = por %p81_p3, %p30_p0 }
   0xb   : > { %p87_p7 = scmp.eq.s32.totalorder %s2549_s14, 1  ;;  %p2550_p8 = scmp.ge.s32.totalorder %s3813_s12, 1 }
   0xc   : > { %p94_p9 = scmp.lt.s32.totalorder %s3813_s12, 3  ;;  %p3607_p11 = scmp.eq.s32.totalorder %s3854_s13, 0 }
   0xd   : > { %p3882_p10 = por %p87_p7, %p86_p4  ;;  %s105_s25 = sshll.u32 %s4468_s1, 4  ;;  %s106_s25 = int_to_ptr.hbm [resolvable:$true] %s105_s25 }
   0xe   : > { %p3887_p12 = pnand %p2550_p8, %p94_p9  ;;  %s3815_s26 = smov [#allocation3]  }
   0xf   : > { %s107_s27 = sshll.u32 %s3815_s26, 4  ;;  %s3816_s28 = smov 384   ;;  %s108_s27 = int_to_ptr.vmem [resolvable:$true] %s107_s27 }
  0x10   : > { %p3599_p13 = pneg %p3887_p12  ;;  %s3817_s29 = smov 24  }
  0x11   : > { %p2552_p1 = scmp.ge.s32.totalorder %s3813_s12, 2 }
  0x12   : > { %p3600_p0 = pnand %p3607_p11, %p3599_p13 }
  0x13   : > { %117 = sbr.rel (%p2552_p1) target bundleno = 41 (0x29), region = 20 }
  0x14   : > { %3602 = dma.hbm_to_vmem [thread:$0]  (!%p3600_p0), %s106_s25, 24576, %s108_s27, [#allocation4], %s3816_s28, %s3816_s28, %s3817_s29  }
  0x18   : > { %120 = sbr.rel (!%p3872_p5) target bundleno = 41 (0x29), region = 24  ;;  %s122_s30 = sand.u32 (%p3872_p5), 1, %s3809_s11  }
  0x19   : > { %s3584_s3 = smul.u32 (%p3872_p5), 48, %s3813_s12 }
  0x1a   : > { %s3585_s4 = smul.u32 (%p3872_p5), 96, %s122_s30 }
  0x1b   : > { %s128_s7 = scalar_lea.vmem (%p3872_p5), %s4467_s0, %s3584_s3 }
  0x1c   : > { %v141_v0 = vld [vmem:[%s128_s7] sm:$0xff] (%p3872_p5)  ;;  %v143_v1 = vld [vmem:[%s128_s7 + $0x8] sm:$0xff] (%p3872_p5)  ;;  %v145_v2 = vld [vmem:[%s128_s7 + $0x10] sm:$0xff] (%p3872_p5)  ;;  %s124_s8 = scalar_lea.vmem (%p3872_p5), [#allocation2], %s3585_s4 }
  0x1d   : > { %142 = vst [vmem:[%s124_s8] sm:$0xff] %v141_v0  ;;  %v147_v3 = vld [vmem:[%s128_s7 + $0x18] sm:$0xff]  ;;  %v149_v4 = vld [vmem:[%s128_s7 + $0x20] sm:$0xff]  ;;  %v151_v5 = vld [vmem:[%s128_s7 + $0x28] sm:$0xff] }
  0x1e   : > { %144 = vst [vmem:[%s124_s8 + $0x8] sm:$0xff] %v143_v1  ;;  %v153_v6 = vld [vmem:[%s128_s7 + $0x60] sm:$0xff]  ;;  %v155_v7 = vld [vmem:[%s128_s7 + $0x68] sm:$0xff]  ;;  %v157_v8 = vld [vmem:[%s128_s7 + $0x70] sm:$0xff] }
  0x1f   : > { %146 = vst [vmem:[%s124_s8 + $0x10] sm:$0xff] %v145_v2  ;;  %v159_v9 = vld [vmem:[%s128_s7 + $0x78] sm:$0xff]  ;;  %v161_v10 = vld [vmem:[%s128_s7 + $0x80] sm:$0xff]  ;;  %v163_v11 = vld [vmem:[%s128_s7 + $0x88] sm:$0xff] }
  0x20   : > { %148 = vst [vmem:[%s124_s8 + $0x18] sm:$0xff] %v147_v3 }
  0x21   : > { %150 = vst [vmem:[%s124_s8 + $0x20] sm:$0xff] %v149_v4 }
  0x22   : > { %152 = vst [vmem:[%s124_s8 + $0x28] sm:$0xff] %v151_v5 }
  0x23   : > { %154 = vst [vmem:[%s124_s8 + $0x30] sm:$0xff] %v153_v6 }
  0x24   : > { %156 = vst [vmem:[%s124_s8 + $0x38] sm:$0xff] %v155_v7 }
  0x25   : > { %158 = vst [vmem:[%s124_s8 + $0x40] sm:$0xff] %v157_v8 }
  0x26   : > { %160 = vst [vmem:[%s124_s8 + $0x48] sm:$0xff] %v159_v9 }
  0x27   : > { %162 = vst [vmem:[%s124_s8 + $0x50] sm:$0xff] %v161_v10 }
  0x28   : > { %164 = vst [vmem:[%s124_s8 + $0x58] sm:$0xff] %v163_v11 }
  0x29 PF: > { %173 = sbr.rel (%p3887_p12) target bundleno = 729 (0x2d9), region = 47  ;;  %s3911_s14 = sand.u32 (!%p3887_p12), 1, %s3805_s10  }
  0x2a   : > { %s3586_s16 = smul.u32 (!%p3887_p12), 96, %s3911_s14 }
  0x2c   : > { %s3914_s17 = scalar_lea.vmem (!%p3887_p12), [#allocation2], %s3586_s16 }
  0x2e   : > { %3792 = dma.done.wait (%p3607_p11), [#allocation4], 24576  }
  0x2f   : > { %3794 = vsyncadd (%p3607_p11), [#allocation4], 4294942720  ;;  %v2776_v12 = vld [vmem:[#allocation3 + $0x150] sm:$0xf]  ;;  %v3437_v13 = vld [vmem:[#allocation3 + $0x164] sm:$0xf0] }
  0x30   : > { %v2968_v14 = vld [vmem:[#allocation3 + $0x2d0] sm:$0xf]  ;;  %v2777_v15 = vor.u32 %v3437_v13, %v2776_v12  ;;  %v3485_v16 = vld [vmem:[#allocation3 + $0x2e4] sm:$0xf0]  ;;  %v2752_v23 = vld [vmem:[#allocation3 + $0x120] sm:$0xf] }
  0x31   : > { %v3160_v17 = vld [vmem:[#allocation3 + $0x450] sm:$0xf]  ;;  %v3533_v18 = vld [vmem:[#allocation3 + $0x464] sm:$0xf0]  ;;  %v2969_v19 = vor.u32 %v3485_v16, %v2968_v14  ;;  %v3431_v25 = vld [vmem:[#allocation3 + $0x134] sm:$0xf0] }
  0x32   : > { %v3161_v20 = vor.u32 %v3533_v18, %v3160_v17  ;;  %v3352_v21 = vld [vmem:[#allocation3 + $0x5d0] sm:$0xf]  ;;  %v3581_v22 = vld [vmem:[#allocation3 + $0x5e4] sm:$0xf0]  ;;  %1427 = vmatpush.bf16.msra.mxu0 %v2777_v15  ;;  %v2944_v26 = vld [vmem:[#allocation3 + $0x2a0] sm:$0xf]  ;;  %v2753_v28 = vor.u32 %v3431_v25, %v2752_v23 }
  0x33   : > { %v3353_v24 = vor.u32 %v3581_v22, %v3352_v21  ;;  %v3479_v27 = vld [vmem:[#allocation3 + $0x2b4] sm:$0xf0]  ;;  %1451 = vmatpush.bf16.msra.mxu1 %v2969_v19  ;;  %v3136_v30 = vld [vmem:[#allocation3 + $0x420] sm:$0xf]  ;;  %v2728_v35 = vld [vmem:[#allocation3 + $0xf0] sm:$0xf] }
  0x34   : > { %1475 = vmatpush.bf16.msra.mxu2 %v3161_v20  ;;  %v2945_v29 = vor.u32 %v3479_v27, %v2944_v26  ;;  %v3527_v31 = vld [vmem:[#allocation3 + $0x434] sm:$0xf0]  ;;  %v3328_v32 = vld [vmem:[#allocation3 + $0x5a0] sm:$0xf]  ;;  %v3425_v36 = vld [vmem:[#allocation3 + $0x104] sm:$0xf0] }
  0x35   : > { %1499 = vmatpush.bf16.msra.mxu3 %v3353_v24  ;;  %v3137_v33 = vor.u32 %v3527_v31, %v3136_v30  ;;  %v3575_v34 = vld [vmem:[#allocation3 + $0x5b4] sm:$0xf0]  ;;  %v2920_v38 = vld [vmem:[#allocation3 + $0x270] sm:$0xf]  ;;  %v3473_v39 = vld [vmem:[#allocation3 + $0x284] sm:$0xf0]  ;;  %v2729_v41 = vor.u32 %v3425_v36, %v2728_v35 }
  0x36   : > { %v3329_v37 = vor.u32 %v3575_v34, %v3328_v32  ;;  %v3112_v40 = vld [vmem:[#allocation3 + $0x3f0] sm:$0xf]  ;;  %1428 = vmatpush.bf16.msra.mxu0 %v2753_v28  ;;  %v3521_v42 = vld [vmem:[#allocation3 + $0x404] sm:$0xf0]  ;;  %v2921_v45 = vor.u32 %v3473_v39, %v2920_v38  ;;  %v2704_v47 = vld [vmem:[#allocation3 + $0xc0] sm:$0xf] }
  0x37   : > { %v3304_v43 = vld [vmem:[#allocation3 + $0x570] sm:$0xf]  ;;  %v3569_v44 = vld [vmem:[#allocation3 + $0x584] sm:$0xf0]  ;;  %1452 = vmatpush.bf16.msra.mxu1 %v2945_v29  ;;  %v3113_v46 = vor.u32 %v3521_v42, %v3112_v40  ;;  %v3419_v48 = vld [vmem:[#allocation3 + $0xd4] sm:$0xf0] }
  0x38   : > { %1476 = vmatpush.bf16.msra.mxu2 %v3137_v33  ;;  %v2896_v49 = vld [vmem:[#allocation3 + $0x240] sm:$0xf]  ;;  %v3305_v50 = vor.u32 %v3569_v44, %v3304_v43  ;;  %v3467_v51 = vld [vmem:[#allocation3 + $0x254] sm:$0xf0]  ;;  %v2705_v56 = vor.u32 %v3419_v48, %v2704_v47  ;;  %v2680_v59 = vld [vmem:[#allocation3 + $0x90] sm:$0xf] }
  0x39   : > { %1500 = vmatpush.bf16.msra.mxu3 %v3329_v37  ;;  %v3088_v52 = vld [vmem:[#allocation3 + $0x3c0] sm:$0xf]  ;;  %v3515_v53 = vld [vmem:[#allocation3 + $0x3d4] sm:$0xf0]  ;;  %v2897_v57 = vor.u32 %v3467_v51, %v2896_v49  ;;  %v3413_v60 = vld [vmem:[#allocation3 + $0xa4] sm:$0xf0] }
  0x3a   : > { %v3280_v54 = vld [vmem:[#allocation3 + $0x540] sm:$0xf]  ;;  %v3563_v55 = vld [vmem:[#allocation3 + $0x554] sm:$0xf0]  ;;  %1429 = vmatpush.bf16.msra.mxu0 %v2729_v41  ;;  %v3089_v58 = vor.u32 %v3515_v53, %v3088_v52  ;;  %v2872_v61 = vld [vmem:[#allocation3 + $0x210] sm:$0xf]  ;;  %v2681_v4 = vor.u32 %v3413_v60, %v2680_v59 }
  0x3b   : > { %1453 = vmatpush.bf16.msra.mxu1 %v2921_v45  ;;  %v3281_v62 = vor.u32 %v3563_v55, %v3280_v54  ;;  %v3461_v63 = vld [vmem:[#allocation3 + $0x224] sm:$0xf0]  ;;  %v3064_v0 = vld [vmem:[#allocation3 + $0x390] sm:$0xf]  ;;  %v2656_v7 = vld [vmem:[#allocation3 + $0x60] sm:$0xf] }
  0x3c   : > { %1477 = vmatpush.bf16.msra.mxu2 %v3113_v46  ;;  %v3509_v1 = vld [vmem:[#allocation3 + $0x3a4] sm:$0xf0]  ;;  %v3256_v2 = vld [vmem:[#allocation3 + $0x510] sm:$0xf]  ;;  %v2873_v5 = vor.u32 %v3461_v63, %v2872_v61  ;;  %v3407_v8 = vld [vmem:[#allocation3 + $0x74] sm:$0xf0] }
  0x3d   : > { %1501 = vmatpush.bf16.msra.mxu3 %v3305_v50  ;;  %v3557_v3 = vld [vmem:[#allocation3 + $0x524] sm:$0xf0]  ;;  %v3065_v6 = vor.u32 %v3509_v1, %v3064_v0  ;;  %v2848_v9 = vld [vmem:[#allocation3 + $0x1e0] sm:$0xf]  ;;  %v3455_v11 = vld [vmem:[#allocation3 + $0x1f4] sm:$0xf0]  ;;  %v2657_v16 = vor.u32 %v3407_v8, %v2656_v7 }
  0x3e   : > { %1430 = vmatpush.bf16.msra.mxu0 %v2705_v56  ;;  %v3257_v10 = vor.u32 %v3557_v3, %v3256_v2  ;;  %v3040_v12 = vld [vmem:[#allocation3 + $0x360] sm:$0xf]  ;;  %v3503_v13 = vld [vmem:[#allocation3 + $0x374] sm:$0xf0]  ;;  %v2849_v17 = vor.u32 %v3455_v11, %v2848_v9  ;;  %v2632_v19 = vld [vmem:[#allocation3 + $0x30] sm:$0xf] }
  0x3f   : > { %1454 = vmatpush.bf16.msra.mxu1 %v2897_v57  ;;  %v3232_v14 = vld [vmem:[#allocation3 + $0x4e0] sm:$0xf]  ;;  %v3551_v15 = vld [vmem:[#allocation3 + $0x4f4] sm:$0xf0]  ;;  %v3041_v18 = vor.u32 %v3503_v13, %v3040_v12  ;;  %v3401_v20 = vld [vmem:[#allocation3 + $0x44] sm:$0xf0] }
  0x40   : > { %1478 = vmatpush.bf16.msra.mxu2 %v3089_v58  ;;  %v2824_v21 = vld [vmem:[#allocation3 + $0x1b0] sm:$0xf]  ;;  %v3233_v22 = vor.u32 %v3551_v15, %v3232_v14  ;;  %v3449_v23 = vld [vmem:[#allocation3 + $0x1c4] sm:$0xf0]  ;;  %v2608_v28 = vld [vmem:[#allocation3] sm:$0xf]  ;;  %v2633_v29 = vor.u32 %v3401_v20, %v2632_v19 }
  0x41   : > { %1502 = vmatpush.bf16.msra.mxu3 %v3281_v62  ;;  %v3016_v24 = vld [vmem:[#allocation3 + $0x330] sm:$0xf]  ;;  %v3497_v25 = vld [vmem:[#allocation3 + $0x344] sm:$0xf0]  ;;  %v3395_v30 = vld [vmem:[#allocation3 + $0x14] sm:$0xf0]  ;;  %v2825_v33 = vor.u32 %v3449_v23, %v2824_v21 }
  0x42   : > { %1431 = vmatpush.bf16.msra.mxu0 %v2681_v4  ;;  %v3208_v26 = vld [vmem:[#allocation3 + $0x4b0] sm:$0xf]  ;;  %v3545_v27 = vld [vmem:[#allocation3 + $0x4c4] sm:$0xf0]  ;;  %v2800_v31 = vld [vmem:[#allocation3 + $0x180] sm:$0xf]  ;;  %v3017_v34 = vor.u32 %v3497_v25, %v3016_v24  ;;  %v2609_v46 = vor.u32 %v3395_v30, %v2608_v28 }
  0x43   : > { %1455 = vmatpush.bf16.msra.mxu1 %v2873_v5  ;;  %v3443_v32 = vld [vmem:[#allocation3 + $0x194] sm:$0xf0]  ;;  %v2992_v35 = vld [vmem:[#allocation3 + $0x300] sm:$0xf]  ;;  %v3209_v38 = vor.u32 %v3545_v27, %v3208_v26  ;;  %v3382_v41 = vld [vmem:[%s3914_s17 + $0xc] sm:$0xf0] }
  0x44   : > { %1479 = vmatpush.bf16.msra.mxu2 %v3065_v6  ;;  %v3491_v36 = vld [vmem:[#allocation3 + $0x314] sm:$0xf0]  ;;  %v3184_v37 = vld [vmem:[#allocation3 + $0x480] sm:$0xf]  ;;  %v3380_v42 = vld [vmem:[%s3914_s17 + $0x4] sm:$0xf]  ;;  %v2801_v50 = vor.u32 %v3443_v32, %v2800_v31 }
  0x45   : > { %1503 = vmatpush.bf16.msra.mxu3 %v3257_v10  ;;  %v3539_v39 = vld [vmem:[#allocation3 + $0x494] sm:$0xf0]  ;;  %v2560_v40 = vld [vmem:[%s3914_s17] sm:$0xf]  ;;  %v2562_v43 = vld [vmem:[%s3914_s17 + $0x10] sm:$0xf0]  ;;  %v2993_v51 = vor.u32 %v3491_v36, %v2992_v35 }
  0x46   : > { %1432 = vmatpush.bf16.msra.mxu0 %v2657_v16  ;;  %v3530_v44 = vld [vmem:[#allocation3 + $0x454] sm:$0xf]  ;;  %v3162_v45 = vld [vmem:[#allocation3 + $0x468] sm:$0xf0]  ;;  %v2568_v47 = vld [vmem:[%s3914_s17 + $0x8] sm:$0xf]  ;;  %v3185_v55 = vor.u32 %v3539_v39, %v3184_v37  ;;  %v3928_v60 = vor.u32 %v3382_v41, %v2560_v40  ;;  %v3930_v1 = vor.u32 %v3380_v42, %v2562_v43 }
  0x47   : > { %1456 = vmatpush.bf16.msra.mxu1 %v2849_v17  ;;  %v3578_v48 = vld [vmem:[#allocation3 + $0x5d4] sm:$0xf]  ;;  %v3354_v49 = vld [vmem:[#allocation3 + $0x5e8] sm:$0xf0]  ;;  %v3383_v52 = vld [vmem:[%s3914_s17 + $0x14] sm:$0xf0]  ;;  %v3165_v56 = vor.u32 %v3530_v44, %v3162_v45 }
  0x48   : > { %1480 = vmatpush.bf16.msra.mxu2 %v3041_v18  ;;  %v3381_v53 = vld [vmem:[%s3914_s17 + $0xc] sm:$0xf]  ;;  %v2570_v54 = vld [vmem:[%s3914_s17 + $0x18] sm:$0xf0]  ;;  %v3434_v57 = vld [vmem:[#allocation3 + $0x154] sm:$0xf]  ;;  %v3357_v61 = vor.u32 %v3578_v48, %v3354_v49  ;;  %v3932_v2 = vor.u32 %v3383_v52, %v2568_v47 }
  0x49   : > { %1504 = vmatpush.bf16.msra.mxu3 %v3233_v22  ;;  %v2778_v58 = vld [vmem:[#allocation3 + $0x168] sm:$0xf0]  ;;  %v3482_v59 = vld [vmem:[#allocation3 + $0x2d4] sm:$0xf]  ;;  %v3524_v63 = vld [vmem:[#allocation3 + $0x424] sm:$0xf]  ;;  %v3934_v5 = vor.u32 %v3381_v53, %v2570_v54 }
  0x4a   : > { %1433 = vmatpush.bf16.msra.mxu0 %v2633_v29  ;;  %v2970_v62 = vld [vmem:[#allocation3 + $0x2e8] sm:$0xf0]  ;;  %v3138_v0 = vld [vmem:[#allocation3 + $0x438] sm:$0xf0]  ;;  %v3572_v3 = vld [vmem:[#allocation3 + $0x5a4] sm:$0xf]  ;;  %v2781_v6 = vor.u32 %v3434_v57, %v2778_v58 }
  0x4b   : > { %1457 = vmatpush.bf16.msra.mxu1 %v2825_v33  ;;  %v3330_v4 = vld [vmem:[#allocation3 + $0x5b8] sm:$0xf0]  ;;  %v2973_v7 = vor.u32 %v3482_v59, %v2970_v62  ;;  %v3141_v8 = vor.u32 %v3524_v63, %v3138_v0  ;;  %v3428_v9 = vld [vmem:[#allocation3 + $0x124] sm:$0xf]  ;;  %v3518_v14 = vld [vmem:[#allocation3 + $0x3f4] sm:$0xf] }
  0x4c   : > { %1481 = vmatpush.bf16.msra.mxu2 %v3017_v34  ;;  %v2754_v10 = vld [vmem:[#allocation3 + $0x138] sm:$0xf0]  ;;  %v3476_v11 = vld [vmem:[#allocation3 + $0x2a4] sm:$0xf]  ;;  %v3333_v12 = vor.u32 %v3572_v3, %v3330_v4  ;;  %v3114_v15 = vld [vmem:[#allocation3 + $0x408] sm:$0xf0] }
  0x4d   : > { %1505 = vmatpush.bf16.msra.mxu3 %v3209_v38  ;;  %v2946_v13 = vld [vmem:[#allocation3 + $0x2b8] sm:$0xf0]  ;;  %v3566_v16 = vld [vmem:[#allocation3 + $0x574] sm:$0xf]  ;;  %v3306_v17 = vld [vmem:[#allocation3 + $0x588] sm:$0xf0]  ;;  %v2757_v18 = vor.u32 %v3428_v9, %v2754_v10  ;;  %v3117_v20 = vor.u32 %v3518_v14, %v3114_v15 }
  0x4e   : > { %1434 = vmatpush.bf16.msra.mxu0 %v2609_v46  ;;  %v2949_v19 = vor.u32 %v3476_v11, %v2946_v13  ;;  %v3422_v21 = vld [vmem:[#allocation3 + $0xf4] sm:$0xf]  ;;  %v2730_v22 = vld [vmem:[#allocation3 + $0x108] sm:$0xf0]  ;;  %v3309_v24 = vor.u32 %v3566_v16, %v3306_v17  ;;  %v3512_v26 = vld [vmem:[#allocation3 + $0x3c4] sm:$0xf] }
  0x4f   : > { %1458 = vmatpush.bf16.msra.mxu1 %v2801_v50  ;;  %v3470_v23 = vld [vmem:[#allocation3 + $0x274] sm:$0xf]  ;;  %v2922_v25 = vld [vmem:[#allocation3 + $0x288] sm:$0xf0]  ;;  %v3090_v27 = vld [vmem:[#allocation3 + $0x3d8] sm:$0xf0]  ;;  %v2733_v30 = vor.u32 %v3422_v21, %v2730_v22 }
  0x50   : > { %1482 = vmatpush.bf16.msra.mxu2 %v2993_v51  ;;  %v3560_v28 = vld [vmem:[#allocation3 + $0x544] sm:$0xf]  ;;  %v3282_v29 = vld [vmem:[#allocation3 + $0x558] sm:$0xf0]  ;;  %v2576_v31 = vld [vmem:[%s3914_s17 + $0x20] sm:$0xf]  ;;  %v2925_v33 = vor.u32 %v3470_v23, %v2922_v25  ;;  %v3093_v34 = vor.u32 %v3512_v26, %v3090_v27 }
  0x51   : > { %1506 = vmatpush.bf16.msra.mxu3 %v3185_v55  ;;  %1435 = vmatmul.bf16.vlgmr.msra.gmra.mxu0 %v3928_v60  ;;  %v3386_v32 = vld [vmem:[%s3914_s17 + $0x2c] sm:$0xf0]  ;;  %v3416_v35 = vld [vmem:[#allocation3 + $0xc4] sm:$0xf]  ;;  %v2706_v36 = vld [vmem:[#allocation3 + $0xd8] sm:$0xf0]  ;;  %v3285_v40 = vor.u32 %v3560_v28, %v3282_v29 }
  0x52   : > { %1459 = vmatmul.bf16.vlgmr.msra.gmra.mxu1 %v3930_v1  ;;  %1523 = vmatpush.bf16.msrb.mxu0 %v2781_v6  ;;  %v3464_v37 = vld [vmem:[#allocation3 + $0x244] sm:$0xf]  ;;  %v2578_v39 = vld [vmem:[%s3914_s17 + $0x30] sm:$0xf0]  ;;  %v2898_v41 = vld [vmem:[#allocation3 + $0x258] sm:$0xf0]  ;;  %v2709_v50 = vor.u32 %v3416_v35, %v2706_v36 }
  0x53   : > { %1483 = vmatmul.bf16.vlgmr.msra.gmra.mxu2 %v3932_v2  ;;  %1547 = vmatpush.bf16.msrb.mxu1 %v2973_v7  ;;  %v3384_v38 = vld [vmem:[%s3914_s17 + $0x24] sm:$0xf]  ;;  %v3506_v42 = vld [vmem:[#allocation3 + $0x394] sm:$0xf]  ;;  %v3066_v43 = vld [vmem:[#allocation3 + $0x3a8] sm:$0xf0]  ;;  %v2901_v51 = vor.u32 %v3464_v37, %v2898_v41 }
  0x54   : > { %1571 = vmatpush.bf16.msrb.mxu2 %v3165_v56  ;;  %1507 = vmatmul.bf16.vlgmr.msra.gmra.mxu3 %v3934_v5  ;;  %v2584_v44 = vld [vmem:[%s3914_s17 + $0x28] sm:$0xf]  ;;  %v3554_v45 = vld [vmem:[#allocation3 + $0x514] sm:$0xf]  ;;  %v3258_v46 = vld [vmem:[#allocation3 + $0x528] sm:$0xf0]  ;;  %v3069_v52 = vor.u32 %v3506_v42, %v3066_v43  ;;  %v3948_v56 = vor.u32 %v3386_v32, %v2576_v31  ;;  %v3950_v62 = vor.u32 %v3384_v38, %v2578_v39 }
  0x55   : > { %1595 = vmatpush.bf16.msrb.mxu3 %v3357_v61  ;;  %v3387_v47 = vld [vmem:[%s3914_s17 + $0x34] sm:$0xf0]  ;;  %v3385_v48 = vld [vmem:[%s3914_s17 + $0x2c] sm:$0xf]  ;;  %v2586_v49 = vld [vmem:[%s3914_s17 + $0x38] sm:$0xf0]  ;;  %v3261_v57 = vor.u32 %v3554_v45, %v3258_v46 }
  0x56   : > { %1524 = vmatpush.bf16.msrb.mxu0 %v2757_v18  ;;  %v3410_v53 = vld [vmem:[#allocation3 + $0x94] sm:$0xf]  ;;  %v2682_v54 = vld [vmem:[#allocation3 + $0xa8] sm:$0xf0]  ;;  %v3500_v59 = vld [vmem:[#allocation3 + $0x364] sm:$0xf]  ;;  %v3952_v63 = vor.u32 %v3387_v47, %v2584_v44  ;;  %v3954_v4 = vor.u32 %v3385_v48, %v2586_v49 }
  0x57   : > { %1548 = vmatpush.bf16.msrb.mxu1 %v2949_v19  ;;  %v3458_v55 = vld [vmem:[#allocation3 + $0x214] sm:$0xf]  ;;  %v2874_v58 = vld [vmem:[#allocation3 + $0x228] sm:$0xf0]  ;;  %v3042_v61 = vld [vmem:[#allocation3 + $0x378] sm:$0xf0]  ;;  %v2685_v6 = vor.u32 %v3410_v53, %v2682_v54 }
  0x58   : > { %1572 = vmatpush.bf16.msrb.mxu2 %v3141_v8  ;;  %v3548_v0 = vld [vmem:[#allocation3 + $0x4e4] sm:$0xf]  ;;  %v3234_v3 = vld [vmem:[#allocation3 + $0x4f8] sm:$0xf0]  ;;  %v2877_v7 = vor.u32 %v3458_v55, %v2874_v58  ;;  %v3045_v8 = vor.u32 %v3500_v59, %v3042_v61  ;;  %v3494_v14 = vld [vmem:[#allocation3 + $0x334] sm:$0xf] }
  0x59   : > { %1596 = vmatpush.bf16.msrb.mxu3 %v3333_v12  ;;  %v3404_v9 = vld [vmem:[#allocation3 + $0x64] sm:$0xf]  ;;  %v2658_v10 = vld [vmem:[#allocation3 + $0x78] sm:$0xf0]  ;;  %v3237_v12 = vor.u32 %v3548_v0, %v3234_v3  ;;  %v3018_v15 = vld [vmem:[#allocation3 + $0x348] sm:$0xf0] }
  0x5a   : > { %1525 = vmatpush.bf16.msrb.mxu0 %v2733_v30  ;;  %v3452_v11 = vld [vmem:[#allocation3 + $0x1e4] sm:$0xf]  ;;  %v2850_v13 = vld [vmem:[#allocation3 + $0x1f8] sm:$0xf0]  ;;  %v3542_v16 = vld [vmem:[#allocation3 + $0x4b4] sm:$0xf]  ;;  %v2661_v18 = vor.u32 %v3404_v9, %v2658_v10  ;;  %v3021_v21 = vor.u32 %v3494_v14, %v3018_v15 }
  0x5b   : > { %1549 = vmatpush.bf16.msrb.mxu1 %v2925_v33  ;;  %v3210_v17 = vld [vmem:[#allocation3 + $0x4c8] sm:$0xf0]  ;;  %v3398_v19 = vld [vmem:[#allocation3 + $0x34] sm:$0xf]  ;;  %v3488_v26 = vld [vmem:[#allocation3 + $0x304] sm:$0xf] }
  0x5c   : > { %1573 = vmatpush.bf16.msrb.mxu2 %v3117_v20  ;;  %v2853_v20 = vor.u32 %v3452_v11, %v2850_v13  ;;  %v2634_v22 = vld [vmem:[#allocation3 + $0x48] sm:$0xf0]  ;;  %v3446_v23 = vld [vmem:[#allocation3 + $0x1b4] sm:$0xf]  ;;  %v3213_v25 = vor.u32 %v3542_v16, %v3210_v17  ;;  %v2994_v27 = vld [vmem:[#allocation3 + $0x318] sm:$0xf0] }
  0x5d   : > { %1597 = vmatpush.bf16.msrb.mxu3 %v3309_v24  ;;  %v2826_v24 = vld [vmem:[#allocation3 + $0x1c8] sm:$0xf0]  ;;  %v3536_v28 = vld [vmem:[#allocation3 + $0x484] sm:$0xf]  ;;  %v3186_v29 = vld [vmem:[#allocation3 + $0x498] sm:$0xf0]  ;;  %v2637_v32 = vor.u32 %v3398_v19, %v2634_v22  ;;  %v2997_v38 = vor.u32 %v3488_v26, %v2994_v27 }
  0x5e   : > { %1526 = vmatpush.bf16.msrb.mxu0 %v2709_v50  ;;  %v3168_v30 = vld [vmem:[#allocation3 + $0x458] sm:$0xf]  ;;  %v3534_v31 = vld [vmem:[#allocation3 + $0x46c] sm:$0xf0]  ;;  %v2592_v35 = vld [vmem:[%s3914_s17 + $0x40] sm:$0xf]  ;;  %v2829_v37 = vor.u32 %v3446_v23, %v2826_v24  ;;  %v3189_v44 = vor.u32 %v3536_v28, %v3186_v29 }
  0x5f   : > { %1550 = vmatpush.bf16.msrb.mxu1 %v2901_v51  ;;  %v3360_v33 = vld [vmem:[#allocation3 + $0x5d8] sm:$0xf]  ;;  %v3390_v36 = vld [vmem:[%s3914_s17 + $0x4c] sm:$0xf0]  ;;  %v3392_v39 = vld [vmem:[#allocation3 + $0x4] sm:$0xf]  ;;  %v3169_v46 = vor.u32 %v3534_v31, %v3168_v30 }
  0x60   : > { %1574 = vmatpush.bf16.msrb.mxu2 %v3093_v34  ;;  %v3582_v34 = vld [vmem:[#allocation3 + $0x5ec] sm:$0xf0]  ;;  %v3440_v41 = vld [vmem:[#allocation3 + $0x184] sm:$0xf]  ;;  %v2594_v43 = vld [vmem:[%s3914_s17 + $0x50] sm:$0xf0] }
  0x61   : > { %1598 = vmatpush.bf16.msrb.mxu3 %v3285_v40  ;;  %1440 = vmatmul.bf16.gmra.mxu0 %v3948_v56  ;;  %v2610_v40 = vld [vmem:[#allocation3 + $0x18] sm:$0xf0]  ;;  %v3388_v42 = vld [vmem:[%s3914_s17 + $0x44] sm:$0xf]  ;;  %v2784_v47 = vld [vmem:[#allocation3 + $0x158] sm:$0xf]  ;;  %v3361_v50 = vor.u32 %v3582_v34, %v3360_v33 }
  0x62   : > { %1464 = vmatmul.bf16.gmra.mxu1 %v3950_v62  ;;  %1527 = vmatpush.bf16.msrb.mxu0 %v2685_v6  ;;  %v2802_v45 = vld [vmem:[#allocation3 + $0x198] sm:$0xf0]  ;;  %v3438_v48 = vld [vmem:[#allocation3 + $0x16c] sm:$0xf0]  ;;  %v2600_v49 = vld [vmem:[%s3914_s17 + $0x48] sm:$0xf]  ;;  %v3968_v6 = vor.u32 %v3390_v36, %v2592_v35  ;;  %v3970_v11 = vor.u32 %v3388_v42, %v2594_v43 }
  0x63   : > { %1488 = vmatmul.bf16.gmra.mxu2 %v3952_v63  ;;  %1551 = vmatpush.bf16.msrb.mxu1 %v2877_v7  ;;  %v2976_v51 = vld [vmem:[#allocation3 + $0x2d8] sm:$0xf]  ;;  %v3389_v54 = vld [vmem:[%s3914_s17 + $0x4c] sm:$0xf]  ;;  %v2602_v55 = vld [vmem:[%s3914_s17 + $0x58] sm:$0xf0]  ;;  %v2805_v58 = vor.u32 %v3440_v41, %v2802_v45  ;;  %v2785_v59 = vor.u32 %v3438_v48, %v2784_v47 }
  0x64   : > { %1575 = vmatpush.bf16.msrb.mxu2 %v3069_v52  ;;  %1512 = vmatmul.bf16.gmra.mxu3 %v3954_v4  ;;  %v3486_v52 = vld [vmem:[#allocation3 + $0x2ec] sm:$0xf0]  ;;  %v3391_v53 = vld [vmem:[%s3914_s17 + $0x54] sm:$0xf0]  ;;  %v3144_v61 = vld [vmem:[#allocation3 + $0x428] sm:$0xf]  ;;  %v3974_v15 = vor.u32 %v3389_v54, %v2602_v55 }
  0x65   : > { %1599 = vmatpush.bf16.msrb.mxu3 %v3261_v57  ;;  %v2613_v57 = vor.u32 %v3392_v39, %v2610_v40  ;;  %v3528_v0 = vld [vmem:[#allocation3 + $0x43c] sm:$0xf0]  ;;  %v3336_v3 = vld [vmem:[#allocation3 + $0x5a8] sm:$0xf]  ;;  %v2977_v7 = vor.u32 %v3486_v52, %v2976_v51  ;;  %v3120_v19 = vld [vmem:[#allocation3 + $0x3f8] sm:$0xf] }
  0x66   : > { %1528 = vmatpush.bf16.msrb.mxu0 %v2661_v18  ;;  %v2760_v9 = vld [vmem:[#allocation3 + $0x128] sm:$0xf]  ;;  %v3432_v10 = vld [vmem:[#allocation3 + $0x13c] sm:$0xf0]  ;;  %v3145_v16 = vor.u32 %v3528_v0, %v3144_v61  ;;  %v3312_v22 = vld [vmem:[#allocation3 + $0x578] sm:$0xf] }
  0x67   : > { %1552 = vmatpush.bf16.msrb.mxu1 %v2853_v20  ;;  %v2952_v13 = vld [vmem:[#allocation3 + $0x2a8] sm:$0xf]  ;;  %v3480_v14 = vld [vmem:[#allocation3 + $0x2bc] sm:$0xf0]  ;;  %v2761_v18 = vor.u32 %v3432_v10, %v2760_v9  ;;  %v3522_v20 = vld [vmem:[#allocation3 + $0x40c] sm:$0xf0] }
  0x68   : > { %1576 = vmatpush.bf16.msrb.mxu2 %v3045_v8  ;;  %v3576_v8 = vld [vmem:[#allocation3 + $0x5bc] sm:$0xf0]  ;;  %v3570_v23 = vld [vmem:[#allocation3 + $0x58c] sm:$0xf0]  ;;  %v3121_v24 = vor.u32 %v3522_v20, %v3120_v19  ;;  %v2928_v27 = vld [vmem:[#allocation3 + $0x278] sm:$0xf] }
  0x69   : > { %1600 = vmatpush.bf16.msrb.mxu3 %v3237_v12  ;;  %v3972_v12 = vor.u32 %v3391_v53, %v2600_v49  ;;  %v3337_v17 = vor.u32 %v3576_v8, %v3336_v3  ;;  %v3426_v26 = vld [vmem:[#allocation3 + $0x10c] sm:$0xf0]  ;;  %v3313_v28 = vor.u32 %v3570_v23, %v3312_v22  ;;  %v3096_v31 = vld [vmem:[#allocation3 + $0x3c8] sm:$0xf]  ;;  %v3564_v35 = vld [vmem:[#allocation3 + $0x55c] sm:$0xf0] }
  0x6a   : > { %1529 = vmatpush.bf16.msrb.mxu0 %v2637_v32  ;;  %v3474_v30 = vld [vmem:[#allocation3 + $0x28c] sm:$0xf0]  ;;  %v3516_v32 = vld [vmem:[#allocation3 + $0x3dc] sm:$0xf0]  ;;  %v3288_v34 = vld [vmem:[#allocation3 + $0x548] sm:$0xf] }
  0x6b   : > { %1553 = vmatpush.bf16.msrb.mxu1 %v2829_v37  ;;  %v2929_v33 = vor.u32 %v3474_v30, %v2928_v27  ;;  %v2712_v36 = vld [vmem:[#allocation3 + $0xc8] sm:$0xf]  ;;  %v3420_v37 = vld [vmem:[#allocation3 + $0xdc] sm:$0xf0]  ;;  %v3097_v40 = vor.u32 %v3516_v32, %v3096_v31  ;;  %v3289_v41 = vor.u32 %v3564_v35, %v3288_v34  ;;  %v3072_v43 = vld [vmem:[#allocation3 + $0x398] sm:$0xf] }
  0x6c   : > { %1577 = vmatpush.bf16.msrb.mxu2 %v3021_v21  ;;  %v2953_v21 = vor.u32 %v3480_v14, %v2952_v13  ;;  %v3468_v39 = vld [vmem:[#allocation3 + $0x25c] sm:$0xf0]  ;;  %v2713_v42 = vor.u32 %v3420_v37, %v2712_v36  ;;  %v3264_v45 = vld [vmem:[#allocation3 + $0x518] sm:$0xf]  ;;  %v3558_v47 = vld [vmem:[#allocation3 + $0x52c] sm:$0xf0] }
  0x6d   : > { %1601 = vmatpush.bf16.msrb.mxu3 %v3213_v25  ;;  %v2736_v25 = vld [vmem:[#allocation3 + $0xf8] sm:$0xf]  ;;  %v3414_v49 = vld [vmem:[#allocation3 + $0xac] sm:$0xf0]  ;;  %v3265_v53 = vor.u32 %v3558_v47, %v3264_v45  ;;  %v3048_v55 = vld [vmem:[#allocation3 + $0x368] sm:$0xf] }
  0x6e   : > { %1530 = vmatpush.bf16.msrb.mxu0 %v2613_v57  ;;  %v2737_v29 = vor.u32 %v3426_v26, %v2736_v25  ;;  %v2688_v48 = vld [vmem:[#allocation3 + $0x98] sm:$0xf]  ;;  %v3462_v51 = vld [vmem:[#allocation3 + $0x22c] sm:$0xf0]  ;;  %v3504_v57 = vld [vmem:[#allocation3 + $0x37c] sm:$0xf0] }
  0x6f   : > { %1554 = vmatpush.bf16.msrb.mxu1 %v2805_v58  ;;  %v2689_v54 = vor.u32 %v3414_v49, %v2688_v48  ;;  %v3240_v61 = vld [vmem:[#allocation3 + $0x4e8] sm:$0xf]  ;;  %v3552_v0 = vld [vmem:[#allocation3 + $0x4fc] sm:$0xf0]  ;;  %v3546_v20 = vld [vmem:[#allocation3 + $0x4cc] sm:$0xf0] }
  0x70   : > { %1578 = vmatpush.bf16.msrb.mxu2 %v2997_v38  ;;  %v2904_v38 = vld [vmem:[#allocation3 + $0x248] sm:$0xf]  ;;  %v3408_v8 = vld [vmem:[#allocation3 + $0x7c] sm:$0xf0]  ;;  %v3402_v22 = vld [vmem:[#allocation3 + $0x4c] sm:$0xf0] }
  0x71   : > { %1602 = vmatpush.bf16.msrb.mxu3 %v3189_v44  ;;  %1445 = vmatmul.bf16.gmra.mxu0 %v3968_v6  ;;  %v3510_v44 = vld [vmem:[#allocation3 + $0x3ac] sm:$0xf0]  ;;  %v2664_v3 = vld [vmem:[#allocation3 + $0x68] sm:$0xf]  ;;  %v3456_v10 = vld [vmem:[#allocation3 + $0x1fc] sm:$0xf0] }
  0x72   : > { %1619 = vmatpush.bf16.msra.mxu0 %v2785_v59  ;;  %1469 = vmatmul.bf16.gmra.mxu1 %v3970_v11  ;;  %v3073_v52 = vor.u32 %v3510_v44, %v3072_v43  ;;  %v3049_v59 = vor.u32 %v3504_v57, %v3048_v55  ;;  %v2856_v9 = vld [vmem:[#allocation3 + $0x1e8] sm:$0xf]  ;;  %v2665_v13 = vor.u32 %v3408_v8, %v2664_v3  ;;  %v2832_v25 = vld [vmem:[#allocation3 + $0x1b8] sm:$0xf]  ;;  %v3450_v26 = vld [vmem:[#allocation3 + $0x1cc] sm:$0xf0] }
  0x73   : > { %1643 = vmatpush.bf16.msra.mxu1 %v2977_v7  ;;  %1493 = vmatmul.bf16.gmra.mxu2 %v3972_v12  ;;  %v3241_v7 = vor.u32 %v3552_v0, %v3240_v61  ;;  %v2857_v14 = vor.u32 %v3456_v10, %v2856_v9  ;;  %v3000_v27 = vld [vmem:[#allocation3 + $0x308] sm:$0xf]  ;;  %v3540_v31 = vld [vmem:[#allocation3 + $0x49c] sm:$0xf0]  ;;  %v3362_v44 = vld [vmem:[#allocation3 + $0x5f0] sm:$0xf0] }
  0x74   : > { %1667 = vmatpush.bf16.msra.mxu2 %v3169_v46  ;;  %1517 = vmatmul.bf16.gmra.mxu3 %v3974_v15  ;;  %v2905_v46 = vor.u32 %v3468_v39, %v2904_v38  ;;  %v3192_v30 = vld [vmem:[#allocation3 + $0x488] sm:$0xf]  ;;  %v3396_v34 = vld [vmem:[#allocation3 + $0x1c] sm:$0xf0]  ;;  %v3435_v45 = vld [vmem:[#allocation3 + $0x15c] sm:$0xf] }
  0x75   : > { %1691 = vmatpush.bf16.msra.mxu3 %v3361_v50  ;;  %v2880_v50 = vld [vmem:[#allocation3 + $0x218] sm:$0xf]  ;;  %v2808_v35 = vld [vmem:[#allocation3 + $0x188] sm:$0xf]  ;;  %v3193_v36 = vor.u32 %v3540_v31, %v3192_v30  ;;  %v3444_v37 = vld [vmem:[#allocation3 + $0x19c] sm:$0xf0] }
  0x76   : > { %1620 = vmatpush.bf16.msra.mxu0 %v2761_v18  ;;  %v2881_v58 = vor.u32 %v3462_v51, %v2880_v50  ;;  %v3216_v18 = vld [vmem:[#allocation3 + $0x4b8] sm:$0xf]  ;;  %v2809_v39 = vor.u32 %v3444_v37, %v2808_v35  ;;  %v3483_v49 = vld [vmem:[#allocation3 + $0x2dc] sm:$0xf]  ;;  %v2978_v50 = vld [vmem:[#allocation3 + $0x2f0] sm:$0xf0] }
  0x77   : > { %1644 = vmatpush.bf16.msra.mxu1 %v2953_v21  ;;  %v2640_v21 = vld [vmem:[#allocation3 + $0x38] sm:$0xf]  ;;  %v3217_v23 = vor.u32 %v3546_v20, %v3216_v18  ;;  %v3525_v51 = vld [vmem:[#allocation3 + $0x42c] sm:$0xf]  ;;  %v3338_v55 = vld [vmem:[#allocation3 + $0x5c0] sm:$0xf0] }
  0x78   : > { %1668 = vmatpush.bf16.msra.mxu2 %v3145_v16  ;;  %v3024_v16 = vld [vmem:[#allocation3 + $0x338] sm:$0xf]  ;;  %v2762_v61 = vld [vmem:[#allocation3 + $0x140] sm:$0xf0]  ;;  %v3477_v0 = vld [vmem:[#allocation3 + $0x2ac] sm:$0xf] }
  0x79   : > { %1692 = vmatpush.bf16.msra.mxu3 %v3337_v17  ;;  %v3498_v17 = vld [vmem:[#allocation3 + $0x34c] sm:$0xf0]  ;;  %v3519_v8 = vld [vmem:[#allocation3 + $0x3fc] sm:$0xf]  ;;  %v3122_v9 = vld [vmem:[#allocation3 + $0x410] sm:$0xf0] }
  0x7a   : > { %1621 = vmatpush.bf16.msra.mxu0 %v2737_v29  ;;  %v3025_v19 = vor.u32 %v3498_v17, %v3024_v16  ;;  %v3492_v29 = vld [vmem:[#allocation3 + $0x31c] sm:$0xf0]  ;;  %v3125_v16 = vor.u32 %v3519_v8, %v3122_v9  ;;  %v3423_v18 = vld [vmem:[#allocation3 + $0xfc] sm:$0xf]  ;;  %v2714_v31 = vld [vmem:[#allocation3 + $0xe0] sm:$0xf0] }
  0x7b   : > { %1645 = vmatpush.bf16.msra.mxu1 %v2929_v33  ;;  %v3001_v32 = vor.u32 %v3492_v29, %v3000_v27  ;;  %v2616_v33 = vld [vmem:[#allocation3 + $0x8] sm:$0xf]  ;;  %v3471_v20 = vld [vmem:[#allocation3 + $0x27c] sm:$0xf]  ;;  %v3561_v27 = vld [vmem:[#allocation3 + $0x54c] sm:$0xf] }
  0x7c   : > { %1669 = vmatpush.bf16.msra.mxu2 %v3121_v24  ;;  %v2641_v24 = vor.u32 %v3402_v22, %v2640_v21  ;;  %v2617_v38 = vor.u32 %v3396_v34, %v2616_v33  ;;  %v2930_v22 = vld [vmem:[#allocation3 + $0x290] sm:$0xf0]  ;;  %v3417_v29 = vld [vmem:[#allocation3 + $0xcc] sm:$0xf]  ;;  %v2906_v33 = vld [vmem:[#allocation3 + $0x260] sm:$0xf0] }
  0x7d   : > { %1693 = vmatpush.bf16.msra.mxu3 %v3313_v28  ;;  %v2833_v28 = vor.u32 %v3450_v26, %v2832_v25  ;;  %v2933_v25 = vor.u32 %v3471_v20, %v2930_v22  ;;  %v2717_v34 = vor.u32 %v3417_v29, %v2714_v31  ;;  %v3074_v37 = vld [vmem:[#allocation3 + $0x3b0] sm:$0xf0]  ;;  %v2810_v29 = vld [vmem:[#allocation3 + $0x1a0] sm:$0xf0]  ;;  %s2061_s19 = smul.u32 24, %s3854_s13  ;;  %s2557_s23 = sshll.u32 %s3911_s14, 3 }
  0x7e   : > { %1622 = vmatpush.bf16.msra.mxu0 %v2713_v42  ;;  %v3579_v42 = vld [vmem:[#allocation3 + $0x5dc] sm:$0xf]  ;;  %v3218_v9 = vld [vmem:[#allocation3 + $0x4d0] sm:$0xf0]  ;;  %s3375_s24 = sshll.u32 %s3854_s13, 3  ;;  %s201_s3 = scalar_lea.vmem [#allocation6], %s2557_s23 }
  0x7f   : > { %1646 = vmatpush.bf16.msra.mxu1 %v2905_v46  ;;  %v2786_v46 = vld [vmem:[#allocation3 + $0x170] sm:$0xf0]  ;;  %v3365_v47 = vor.u32 %v3579_v42, %v3362_v44  ;;  %v3459_v44 = vld [vmem:[#allocation3 + $0x21c] sm:$0xf]  ;;  %s2467_s28 = scalar_lea.hbm %s4469_s2, %s3375_s24  ;;  %s2469_s4 = sshll.u32 %s201_s3, 4  ;;  %s2470_s4 = int_to_ptr.vmem [resolvable:$true] %s2469_s4 }
  0x80   : > { %1670 = vmatpush.bf16.msra.mxu2 %v3097_v40  ;;  %v3531_v40 = vld [vmem:[#allocation3 + $0x45c] sm:$0xf]  ;;  %v2789_v48 = vor.u32 %v3435_v45, %v2786_v46  ;;  %v2690_v42 = vld [vmem:[#allocation3 + $0xb0] sm:$0xf0]  ;;  %s2471_s13 = sshll.u32 %s2467_s28, 4  ;;  %s2457_s5 = scalar_lea.sflag [#allocation5], %s3911_s14  ;;  %s2472_s13 = int_to_ptr.hbm [resolvable:$true] %s2471_s13 }
  0x81   : > { %1694 = vmatpush.bf16.msra.mxu3 %v3289_v41  ;;  %1531 = vmatmul.bf16.vlgmr.msrb.gmra.mxu0 %v3928_v60  ;;  %v3170_v41 = vld [vmem:[#allocation3 + $0x470] sm:$0xf0]  ;;  %s3761_s6 = sshra.s32 %s2472_s13, 4  ;;  %s3767_s17 = scalar_lea.hbm %s4469_s2, 16  ;;  %s3762_s6 = int_to_ptr.hbm [resolvable:$true] %s3761_s6 }
  0x82   : > { %1623 = vmatpush.bf16.msra.mxu0 %v2689_v54  ;;  %1555 = vmatmul.bf16.vlgmr.msrb.gmra.mxu1 %v3930_v1  ;;  %v3173_v43 = vor.u32 %v3531_v40, %v3170_v41  ;;  %v3573_v54 = vld [vmem:[#allocation3 + $0x5ac] sm:$0xf]  ;;  %v3266_v40 = vld [vmem:[#allocation3 + $0x530] sm:$0xf0]  ;;  %v3411_v41 = vld [vmem:[#allocation3 + $0x9c] sm:$0xf]  ;;  %p3768_p5 = scmp.lt.s32.totalorder %s3762_s6, %s4469_s2 }
  0x83   : > { %1647 = vmatpush.bf16.msra.mxu1 %v2881_v58  ;;  %1579 = vmatmul.bf16.vlgmr.msrb.gmra.mxu2 %v3932_v2  ;;  %v3341_v58 = vor.u32 %v3573_v54, %v3338_v55  ;;  %v2882_v45 = vld [vmem:[#allocation3 + $0x230] sm:$0xf0]  ;;  %v2693_v46 = vor.u32 %v3411_v41, %v2690_v42  ;;  %v2666_v55 = vld [vmem:[#allocation3 + $0x80] sm:$0xf0]  ;;  %v3487_v42 = vld [vmem:[#allocation3 + $0x2f4] sm:$0xf0] }
  0x84   : > { %1671 = vmatpush.bf16.msra.mxu2 %v3073_v52  ;;  %1603 = vmatmul.bf16.vlgmr.msrb.gmra.mxu3 %v3934_v5  ;;  %v2981_v52 = vor.u32 %v3483_v49, %v2978_v50  ;;  %v3050_v49 = vld [vmem:[#allocation3 + $0x380] sm:$0xf0]  ;;  %s3763_s7 = scalar_lea.hbm %s3762_s6, 8 }
  0x85   : > { %1695 = vmatpush.bf16.msra.mxu3 %v3265_v53  ;;  %v3146_v53 = vld [vmem:[#allocation3 + $0x440] sm:$0xf0]  ;;  %p3764_p2 = scmp.ne.s32.totalorder %s3762_s6, %s3763_s7  ;;  %p3769_p7 = scmp.lt.s32.totalorder %s3767_s17, %s3763_s7 }
  0x86   : > { %1624 = vmatpush.bf16.msra.mxu0 %v2665_v13  ;;  %v3149_v57 = vor.u32 %v3525_v51, %v3146_v53  ;;  %v3567_v13 = vld [vmem:[#allocation3 + $0x57c] sm:$0xf]  ;;  %v3549_v51 = vld [vmem:[#allocation3 + $0x4ec] sm:$0xf] }
  0x87   : > { %1648 = vmatpush.bf16.msra.mxu1 %v2857_v14  ;;  %v3314_v14 = vld [vmem:[#allocation3 + $0x590] sm:$0xf0]  ;;  %v3405_v53 = vld [vmem:[#allocation3 + $0x6c] sm:$0xf]  ;;  %p3765_p3 = pnand %p3764_p2, %p3876_p6  ;;  %p3770_p8 = por %p3769_p7, %p3768_p5 }
  0x88   : > { %1672 = vmatpush.bf16.msra.mxu2 %v3049_v59  ;;  %v3429_v59 = vld [vmem:[#allocation3 + $0x12c] sm:$0xf]  ;;  %v3317_v17 = vor.u32 %v3567_v13, %v3314_v14  ;;  %v2642_v13 = vld [vmem:[#allocation3 + $0x50] sm:$0xf0] }
  0x89   : > { %1696 = vmatpush.bf16.msra.mxu3 %v3241_v7  ;;  %v2765_v3 = vor.u32 %v3429_v59, %v2762_v61  ;;  %v2954_v7 = vld [vmem:[#allocation3 + $0x2c0] sm:$0xf0]  ;;  %v2669_v59 = vor.u32 %v3405_v53, %v2666_v55  ;;  %v3481_v53 = vld [vmem:[#allocation3 + $0x2c4] sm:$0xf0]  ;;  %p3766_p4 = pneg %p3765_p3 }
  0x8a   : > { %1625 = vmatpush.bf16.msra.mxu0 %v2641_v24  ;;  %v2957_v10 = vor.u32 %v3477_v0, %v2954_v7  ;;  %v3098_v24 = vld [vmem:[#allocation3 + $0x3e0] sm:$0xf0]  ;;  %v3495_v0 = vld [vmem:[#allocation3 + $0x33c] sm:$0xf] }
  0x8b   : > { %1649 = vmatpush.bf16.msra.mxu1 %v2833_v28  ;;  %v3290_v28 = vld [vmem:[#allocation3 + $0x560] sm:$0xf0]  ;;  %v3543_v7 = vld [vmem:[#allocation3 + $0x4bc] sm:$0xf]  ;;  %p3771_p9 = pnand %p3770_p8, %p3766_p4 }
  0x8c   : > { %1673 = vmatpush.bf16.msra.mxu2 %v3025_v19  ;;  %v2738_v19 = vld [vmem:[#allocation3 + $0x110] sm:$0xf0]  ;;  %v3293_v30 = vor.u32 %v3561_v27, %v3290_v28  ;;  %v3221_v14 = vor.u32 %v3543_v7, %v3218_v9  ;;  %v2618_v27 = vld [vmem:[#allocation3 + $0x20] sm:$0xf0]  ;;  %v3441_v28 = vld [vmem:[#allocation3 + $0x18c] sm:$0xf] }
  0x8d   : > { %1697 = vmatpush.bf16.msra.mxu3 %v3217_v23  ;;  %v2741_v21 = vor.u32 %v3423_v18, %v2738_v19  ;;  %v3513_v23 = vld [vmem:[#allocation3 + $0x3cc] sm:$0xf]  ;;  %v2834_v18 = vld [vmem:[#allocation3 + $0x1d0] sm:$0xf0]  ;;  %v2813_v31 = vor.u32 %v3441_v28, %v2810_v29  ;;  %v2744_v9 = vld [vmem:[#allocation3 + $0x100] sm:$0xf] }
  0x8e   : > { %1626 = vmatpush.bf16.msra.mxu0 %v2617_v38  ;;  %v3101_v26 = vor.u32 %v3513_v23, %v3098_v24  ;;  %v3555_v38 = vld [vmem:[#allocation3 + $0x51c] sm:$0xf]  ;;  %v3489_v19 = vld [vmem:[#allocation3 + $0x30c] sm:$0xf]  ;;  %v3194_v24 = vld [vmem:[#allocation3 + $0x4a0] sm:$0xf0] }
  0x8f   : > { %1650 = vmatpush.bf16.msra.mxu1 %v2809_v39  ;;  %v3537_v23 = vld [vmem:[#allocation3 + $0x48c] sm:$0xf]  ;;  %v3296_v29 = vld [vmem:[#allocation3 + $0x550] sm:$0xf] }
  0x90   : > { %1674 = vmatpush.bf16.msra.mxu2 %v3001_v32  ;;  %v3465_v32 = vld [vmem:[#allocation3 + $0x24c] sm:$0xf] }
  0x91   : > { %1698 = vmatpush.bf16.msra.mxu3 %v3193_v36  ;;  %1536 = vmatmul.bf16.gmra.mxu0 %v3948_v56  ;;  %v2909_v35 = vor.u32 %v3465_v32, %v2906_v33  ;;  %v3507_v36 = vld [vmem:[#allocation3 + $0x39c] sm:$0xf]  ;;  %v3176_v32 = vld [vmem:[#allocation3 + $0x460] sm:$0xf]  ;;  %v3535_v33 = vld [vmem:[#allocation3 + $0x474] sm:$0xf0] }
  0x92   : > { %1560 = vmatmul.bf16.gmra.mxu1 %v3950_v62  ;;  %1715 = vmatpush.bf16.msrb.mxu0 %v2789_v48  ;;  %v3077_v39 = vor.u32 %v3507_v36, %v3074_v37  ;;  %v3501_v48 = vld [vmem:[#allocation3 + $0x36c] sm:$0xf]  ;;  %v3583_v36 = vld [vmem:[#allocation3 + $0x5f4] sm:$0xf0] }
  0x93   : > { %1584 = vmatmul.bf16.gmra.mxu2 %v3952_v63  ;;  %1739 = vmatpush.bf16.msrb.mxu1 %v2981_v52  ;;  %v3053_v50 = vor.u32 %v3501_v48, %v3050_v49  ;;  %v3242_v52 = vld [vmem:[#allocation3 + $0x500] sm:$0xf0]  ;;  %v3577_v48 = vld [vmem:[#allocation3 + $0x5c4] sm:$0xf0]  ;;  %v2768_v49 = vld [vmem:[#allocation3 + $0x130] sm:$0xf] }
  0x94   : > { %1608 = vmatmul.bf16.gmra.mxu3 %v3954_v4  ;;  %1763 = vmatpush.bf16.msrb.mxu2 %v3173_v43  ;;  %v3269_v43 = vor.u32 %v3555_v38, %v3266_v40  ;;  %v3245_v54 = vor.u32 %v3549_v51, %v3242_v52  ;;  %v2792_v38 = vld [vmem:[#allocation3 + $0x160] sm:$0xf]  ;;  %v3433_v51 = vld [vmem:[#allocation3 + $0x144] sm:$0xf0]  ;;  %v2960_v52 = vld [vmem:[#allocation3 + $0x2b0] sm:$0xf] }
  0x95   : > { %1787 = vmatpush.bf16.msrb.mxu3 %v3365_v47  ;;  %v2885_v47 = vor.u32 %v3459_v44, %v2882_v45  ;;  %v2984_v40 = vld [vmem:[#allocation3 + $0x2e0] sm:$0xf]  ;;  %v3529_v44 = vld [vmem:[#allocation3 + $0x444] sm:$0xf0] }
  0x96   : > { %1716 = vmatpush.bf16.msrb.mxu0 %v2765_v3  ;;  %v3026_v3 = vld [vmem:[#allocation3 + $0x350] sm:$0xf0]  ;;  %v2985_v45 = vor.u32 %v3487_v42, %v2984_v40  ;;  %v3272_v40 = vld [vmem:[#allocation3 + $0x520] sm:$0xf] }
  0x97   : > { %1740 = vmatpush.bf16.msrb.mxu1 %v2957_v10  ;;  %v3029_v8 = vor.u32 %v3495_v0, %v3026_v3  ;;  %v3399_v10 = vld [vmem:[#allocation3 + $0x3c] sm:$0xf]  ;;  %v3523_v0 = vld [vmem:[#allocation3 + $0x414] sm:$0xf0]  ;;  %v3320_v3 = vld [vmem:[#allocation3 + $0x580] sm:$0xf] }
  0x98   : > { %1764 = vmatpush.bf16.msrb.mxu2 %v3149_v57  ;;  %v3453_v57 = vld [vmem:[#allocation3 + $0x1ec] sm:$0xf] }
  0x99   : > { %1788 = vmatpush.bf16.msrb.mxu3 %v3341_v58  ;;  %v2858_v58 = vld [vmem:[#allocation3 + $0x200] sm:$0xf0] }
  0x9a   : > { %1717 = vmatpush.bf16.msrb.mxu0 %v2741_v21  ;;  %v2861_v61 = vor.u32 %v3453_v57, %v2858_v58  ;;  %v3002_v21 = vld [vmem:[#allocation3 + $0x320] sm:$0xf0]  ;;  %v2769_v57 = vor.u32 %v3433_v51, %v2768_v49  ;;  %v2696_v51 = vld [vmem:[#allocation3 + $0xa0] sm:$0xf] }
  0x9b   : > { %1741 = vmatpush.bf16.msrb.mxu1 %v2933_v25  ;;  %v3005_v22 = vor.u32 %v3489_v19, %v3002_v21  ;;  %v3393_v25 = vld [vmem:[#allocation3 + $0xc] sm:$0xf]  ;;  %v3517_v21 = vld [vmem:[#allocation3 + $0x3e4] sm:$0xf0] }
  0x9c   : > { %1765 = vmatpush.bf16.msrb.mxu2 %v3125_v16  ;;  %v2645_v16 = vor.u32 %v3399_v10, %v2642_v13  ;;  %v3427_v10 = vld [vmem:[#allocation3 + $0x114] sm:$0xf0] }
  0x9d   : > { %1789 = vmatpush.bf16.msrb.mxu3 %v3317_v17  ;;  %v3447_v17 = vld [vmem:[#allocation3 + $0x1bc] sm:$0xf] }
  0x9e   : > { %1718 = vmatpush.bf16.msrb.mxu0 %v2717_v34  ;;  %v2837_v20 = vor.u32 %v3447_v17, %v2834_v18  ;;  %v3368_v34 = vld [vmem:[#allocation3 + $0x5e0] sm:$0xf]  ;;  %v3475_v17 = vld [vmem:[#allocation3 + $0x294] sm:$0xf0]  ;;  %v3104_v18 = vld [vmem:[#allocation3 + $0x3d0] sm:$0xf] }
  0x9f   : > { %1742 = vmatpush.bf16.msrb.mxu1 %v2909_v35  ;;  %v3177_v35 = vor.u32 %v3535_v33, %v3176_v32  ;;  %v3369_v37 = vor.u32 %v3583_v36, %v3368_v34  ;;  %v3421_v33 = vld [vmem:[#allocation3 + $0xe4] sm:$0xf0]  ;;  %v2912_v34 = vld [vmem:[#allocation3 + $0x250] sm:$0xf] }
  0xa0   : > { %1766 = vmatpush.bf16.msrb.mxu2 %v3101_v26  ;;  %v3197_v26 = vor.u32 %v3537_v23, %v3194_v24 }
  0xa1   : > { %1541 = vmatmul.bf16.gmra.mxu0 %v3968_v6  ;;  %1790 = vmatpush.bf16.msrb.mxu3 %v3293_v30  ;;  %v2621_v30 = vor.u32 %v3393_v25, %v2618_v27  ;;  %v3105_v25 = vor.u32 %v3517_v21, %v3104_v18 }
  0xa2   : > { %1565 = vmatmul.bf16.gmra.mxu1 %v3970_v11  ;;  %1719 = vmatpush.bf16.msrb.mxu0 %v2693_v46 }
  0xa3   : > { %1589 = vmatmul.bf16.gmra.mxu2 %v3972_v12  ;;  %1743 = vmatpush.bf16.msrb.mxu1 %v2885_v47  ;;  %v3344_v47 = vld [vmem:[#allocation3 + $0x5b0] sm:$0xf] }
  0xa4   : > { %1613 = vmatmul.bf16.gmra.mxu3 %v3974_v15  ;;  %1767 = vmatpush.bf16.msrb.mxu2 %v3077_v39  ;;  %v3439_v39 = vld [vmem:[#allocation3 + $0x174] sm:$0xf0] }
  0xa5   : > { %1791 = vmatpush.bf16.msrb.mxu3 %v3269_v43  ;;  %v2793_v41 = vor.u32 %v3439_v39, %v2792_v38  ;;  %v3152_v43 = vld [vmem:[#allocation3 + $0x430] sm:$0xf]  ;;  %v3080_v38 = vld [vmem:[#allocation3 + $0x3a0] sm:$0xf]  ;;  %v3511_v39 = vld [vmem:[#allocation3 + $0x3b4] sm:$0xf0] }
  0xa6   : > { %1720 = vmatpush.bf16.msrb.mxu0 %v2669_v59  ;;  %v3153_v46 = vor.u32 %v3529_v44, %v3152_v43  ;;  %v2961_v59 = vor.u32 %v3481_v53, %v2960_v52  ;;  %v3081_v42 = vor.u32 %v3511_v39, %v3080_v38  ;;  %v3559_v43 = vld [vmem:[#allocation3 + $0x534] sm:$0xf0]  ;;  %v2888_v53 = vld [vmem:[#allocation3 + $0x220] sm:$0xf]  ;;  %v3493_v38 = vld [vmem:[#allocation3 + $0x324] sm:$0xf0] }
  0xa7   : > { %1744 = vmatpush.bf16.msrb.mxu1 %v2861_v61  ;;  %v3128_v61 = vld [vmem:[#allocation3 + $0x400] sm:$0xf]  ;;  %v3415_v52 = vld [vmem:[#allocation3 + $0xb4] sm:$0xf0] }
  0xa8   : > { %1768 = vmatpush.bf16.msrb.mxu2 %v3053_v50  ;;  %v3345_v50 = vor.u32 %v3577_v48, %v3344_v47  ;;  %v3129_v7 = vor.u32 %v3523_v0, %v3128_v61  ;;  %v3273_v47 = vor.u32 %v3559_v43, %v3272_v40  ;;  %v3248_v0 = vld [vmem:[#allocation3 + $0x4f0] sm:$0xf] }
  0xa9   : > { %1792 = vmatpush.bf16.msrb.mxu3 %v3245_v54  ;;  %v2624_v43 = vld [vmem:[#allocation3 + $0x10] sm:$0xf] }
  0xaa   : > { %1721 = vmatpush.bf16.msrb.mxu0 %v2645_v16  ;;  %v2936_v16 = vld [vmem:[#allocation3 + $0x280] sm:$0xf] }
  0xab   : > { %1745 = vmatpush.bf16.msrb.mxu1 %v2837_v20  ;;  %v2937_v20 = vor.u32 %v3475_v17, %v2936_v16 }
  0xac   : > { %1769 = vmatpush.bf16.msrb.mxu2 %v3029_v8  ;;  %v3571_v8 = vld [vmem:[#allocation3 + $0x594] sm:$0xf0] }
  0xad   : > { %1793 = vmatpush.bf16.msrb.mxu3 %v3221_v14  ;;  %v3321_v13 = vor.u32 %v3571_v8, %v3320_v3  ;;  %v2745_v14 = vor.u32 %v3427_v10, %v2744_v9  ;;  %v3553_v3 = vld [vmem:[#allocation3 + $0x504] sm:$0xf0]  ;;  %v2864_v10 = vld [vmem:[#allocation3 + $0x1f0] sm:$0xf] }
  0xae   : > { %1722 = vmatpush.bf16.msrb.mxu0 %v2621_v30  ;;  %v3565_v30 = vld [vmem:[#allocation3 + $0x564] sm:$0xf0]  ;;  %v3249_v8 = vor.u32 %v3553_v3, %v3248_v0  ;;  %v3370_v3 = vld [vmem:[#allocation3 + $0x5f8] sm:$0xf0] }
  0xaf   : > { %1746 = vmatpush.bf16.msrb.mxu1 %v2813_v31  ;;  %v2720_v31 = vld [vmem:[#allocation3 + $0xd0] sm:$0xf]  ;;  %v3297_v32 = vor.u32 %v3565_v30, %v3296_v29  ;;  %v3409_v9 = vld [vmem:[#allocation3 + $0x84] sm:$0xf0]  ;;  %v3547_v29 = vld [vmem:[#allocation3 + $0x4d4] sm:$0xf0] }
  0xb0   : > { %1770 = vmatpush.bf16.msrb.mxu2 %v3005_v22  ;;  %v2721_v36 = vor.u32 %v3421_v33, %v2720_v31  ;;  %v2648_v30 = vld [vmem:[#allocation3 + $0x40] sm:$0xf]  ;;  %v3403_v31 = vld [vmem:[#allocation3 + $0x54] sm:$0xf0] }
  0xb1   : > { %1627 = vmatmul.bf16.vlgmr.msra.gmra.mxu0 %v3928_v60  ;;  %1794 = vmatpush.bf16.msrb.mxu3 %v3197_v26  ;;  %v2649_v33 = vor.u32 %v3403_v31, %v2648_v30  ;;  %v3346_v30 = vld [vmem:[#allocation3 + $0x5c8] sm:$0xf0]  ;;  %v3430_v31 = vld [vmem:[#allocation3 + $0x134] sm:$0xf] }
  0xb2   : > { %1651 = vmatmul.bf16.vlgmr.msra.gmra.mxu1 %v3930_v1  ;;  %1811 = vmatpush.bf16.msra.mxu0 %v2793_v41 }
  0xb3   : > { %1675 = vmatmul.bf16.vlgmr.msra.gmra.mxu2 %v3932_v2  ;;  %1835 = vmatpush.bf16.msra.mxu1 %v2985_v45 }
  0xb4   : > { %1699 = vmatmul.bf16.vlgmr.msra.gmra.mxu3 %v3934_v5  ;;  %1859 = vmatpush.bf16.msra.mxu2 %v3177_v35  ;;  %v3469_v35 = vld [vmem:[#allocation3 + $0x264] sm:$0xf0] }
  0xb5   : > { %1883 = vmatpush.bf16.msra.mxu3 %v3369_v37  ;;  %v2913_v37 = vor.u32 %v3469_v35, %v2912_v34  ;;  %v2840_v34 = vld [vmem:[#allocation3 + $0x1c0] sm:$0xf]  ;;  %v3451_v35 = vld [vmem:[#allocation3 + $0x1d4] sm:$0xf0] }
  0xb6   : > { %1812 = vmatpush.bf16.msra.mxu0 %v2769_v57  ;;  %v3056_v57 = vld [vmem:[#allocation3 + $0x370] sm:$0xf] }
  0xb7   : > { %1836 = vmatpush.bf16.msra.mxu1 %v2961_v59 }
  0xb8   : > { %1860 = vmatpush.bf16.msra.mxu2 %v3153_v46 }
  0xb9   : > { %1884 = vmatpush.bf16.msra.mxu3 %v3345_v50 }
  0xba   : > { %1813 = vmatpush.bf16.msra.mxu0 %v2745_v14 }
  0xbb   : > { %1837 = vmatpush.bf16.msra.mxu1 %v2937_v20 }
  0xbc   : > { %1861 = vmatpush.bf16.msra.mxu2 %v3129_v7  ;;  %v2672_v7 = vld [vmem:[#allocation3 + $0x70] sm:$0xf] }
  0xbd   : > { %1885 = vmatpush.bf16.msra.mxu3 %v3321_v13  ;;  %v3457_v13 = vld [vmem:[#allocation3 + $0x204] sm:$0xf0]  ;;  %v2673_v16 = vor.u32 %v3409_v9, %v2672_v7 }
  0xbe   : > { %1814 = vmatpush.bf16.msra.mxu0 %v2721_v36  ;;  %v2865_v17 = vor.u32 %v3457_v13, %v2864_v10  ;;  %v3008_v36 = vld [vmem:[#allocation3 + $0x310] sm:$0xf] }
  0xbf   : > { %1838 = vmatpush.bf16.msra.mxu1 %v2913_v37  ;;  %v2841_v37 = vor.u32 %v3451_v35, %v2840_v34  ;;  %v3009_v40 = vor.u32 %v3493_v38, %v3008_v36  ;;  %v2770_v34 = vld [vmem:[#allocation3 + $0x148] sm:$0xf0]  ;;  %v3478_v35 = vld [vmem:[#allocation3 + $0x2b4] sm:$0xf] }
  0xc0   : > { %1862 = vmatpush.bf16.msra.mxu2 %v3105_v25  ;;  %v3499_v25 = vld [vmem:[#allocation3 + $0x354] sm:$0xf0]  ;;  %v2962_v36 = vld [vmem:[#allocation3 + $0x2c8] sm:$0xf0] }
  0xc1   : > { %1632 = vmatmul.bf16.gmra.mxu0 %v3948_v56  ;;  %1886 = vmatpush.bf16.msra.mxu3 %v3297_v32 }
  0xc2   : > { %1656 = vmatmul.bf16.gmra.mxu1 %v3950_v62 }
  0xc3   : > { %1680 = vmatmul.bf16.gmra.mxu2 %v3952_v63 }
  0xc4   : > { %1704 = vmatmul.bf16.gmra.mxu3 %v3954_v4  ;;  %1863 = vmatpush.bf16.msra.mxu2 %v3081_v42  ;;  %v3541_v42 = vld [vmem:[#allocation3 + $0x4a4] sm:$0xf0] }
  0xc5   : > { %1887 = vmatpush.bf16.msra.mxu3 %v3273_v47 }
  0xc9   : > { %1888 = vmatpush.bf16.msra.mxu3 %v3249_v8 }
  0xce   : > { %v1436_v54 = vpop.f32.mrf.mxu0 }
  0xcf   : > { %v1460_v55 = vpop.f32.mrf.mxu1 }
  0xd0   : > { %v1461_v58 = vadd.f32 %v1460_v55, %v1436_v54  ;;  %v2697_v54 = vor.u32 %v3415_v52, %v2696_v51  ;;  %v3463_v55 = vld [vmem:[#allocation3 + $0x234] sm:$0xf0]  ;;  %v3445_v51 = vld [vmem:[#allocation3 + $0x1a4] sm:$0xf0] }
  0xd1   : > { %1637 = vmatmul.bf16.gmra.mxu0 %v3968_v6  ;;  %v2889_v59 = vor.u32 %v3463_v55, %v2888_v53 }
  0xd2   : > { %1661 = vmatmul.bf16.gmra.mxu1 %v3970_v11  ;;  %1815 = vmatpush.bf16.msra.mxu0 %v2697_v54 }
  0xd3   : > { %1685 = vmatmul.bf16.gmra.mxu2 %v3972_v12  ;;  %1839 = vmatpush.bf16.msra.mxu1 %v2889_v59  ;;  %v3178_v59 = vld [vmem:[#allocation3 + $0x478] sm:$0xf0] }
  0xd4   : > { %1709 = vmatmul.bf16.gmra.mxu3 %v3974_v15 }
  0xd6   : > { %v1484_v19 = vpop.f32.mrf.mxu2  ;;  %v1438_v24 = vpop.f32.mrf.mxu0  ;;  %1816 = vmatpush.bf16.msra.mxu0 %v2673_v16 }
  0xd7   : > { %v1485_v22 = vadd.f32 %v1484_v19, %v1461_v58  ;;  %v1508_v23 = vpop.f32.mrf.mxu3  ;;  %v1462_v26 = vpop.f32.mrf.mxu1  ;;  %v3505_v58 = vld [vmem:[#allocation3 + $0x384] sm:$0xf0]  ;;  %1840 = vmatpush.bf16.msra.mxu1 %v2865_v17 }
  0xd8   : > { %v1463_v28 = vadd.f32 %v1462_v26, %v1438_v24  ;;  %v3057_v61 = vor.u32 %v3505_v58, %v3056_v57  ;;  %v3032_v24 = vld [vmem:[#allocation3 + $0x340] sm:$0xf]  ;;  %v3532_v58 = vld [vmem:[#allocation3 + $0x464] sm:$0xf] }
  0xd9   : > { %v4004_v27 = vadd.f32 %v1508_v23, %v1485_v22  ;;  %v3224_v26 = vld [vmem:[#allocation3 + $0x4c0] sm:$0xf]  ;;  %v3181_v0 = vor.u32 %v3532_v58, %v3178_v59  ;;  %v2938_v58 = vld [vmem:[#allocation3 + $0x298] sm:$0xf0]  ;;  %v3514_v59 = vld [vmem:[#allocation3 + $0x3d4] sm:$0xf] }
  0xda   : > { %1864 = vmatpush.bf16.msra.mxu2 %v3057_v61  ;;  %v3225_v32 = vor.u32 %v3547_v29, %v3224_v26  ;;  %1817 = vmatpush.bf16.msra.mxu0 %v2649_v33  ;;  %v3580_v61 = vld [vmem:[#allocation3 + $0x5e4] sm:$0xf]  ;;  %v3574_v29 = vld [vmem:[#allocation3 + $0x5b4] sm:$0xf] }
  0xdb   : > { %1841 = vmatpush.bf16.msra.mxu1 %v2841_v37  ;;  %v3373_v8 = vor.u32 %v3580_v61, %v3370_v3  ;;  %v3349_v33 = vor.u32 %v3574_v29, %v3346_v30  ;;  %v3106_v3 = vld [vmem:[#allocation3 + $0x3e8] sm:$0xf0]  ;;  %v3508_v29 = vld [vmem:[#allocation3 + $0x3a4] sm:$0xf]  ;;  %v3082_v30 = vld [vmem:[#allocation3 + $0x3b8] sm:$0xf0] }
  0xdc   : > { %1889 = vmatpush.bf16.msra.mxu3 %v3225_v32 }
  0xde   : > { %v1486_v41 = vpop.f32.mrf.mxu2  ;;  %v1441_v46 = vpop.f32.mrf.mxu0 }
  0xdf   : > { %v1487_v44 = vadd.f32 %v1486_v41, %v1463_v28  ;;  %v1510_v45 = vpop.f32.mrf.mxu3  ;;  %v1465_v48 = vpop.f32.mrf.mxu1  ;;  %v3033_v28 = vor.u32 %v3499_v25, %v3032_v24  ;;  %v3200_v41 = vld [vmem:[#allocation3 + $0x490] sm:$0xf]  ;;  %v3526_v24 = vld [vmem:[#allocation3 + $0x434] sm:$0xf]  ;;  %v3154_v25 = vld [vmem:[#allocation3 + $0x448] sm:$0xf0] }
  0xe0   : > { %v1466_v50 = vadd.f32 %v1465_v48, %v1441_v46  ;;  %v3201_v47 = vor.u32 %v3541_v42, %v3200_v41  ;;  %v3397_v48 = vld [vmem:[#allocation3 + $0x24] sm:$0xf0]  ;;  %v2773_v41 = vor.u32 %v3430_v31, %v2770_v34  ;;  %v3556_v31 = vld [vmem:[#allocation3 + $0x524] sm:$0xf]  ;;  %v3274_v34 = vld [vmem:[#allocation3 + $0x538] sm:$0xf0] }
  0xe1   : > { %v4006_v49 = vadd.f32 %v1510_v45, %v1487_v44  ;;  %1723 = vmatmul.bf16.vlgmr.msrb.gmra.mxu0 %v3928_v60  ;;  %1865 = vmatpush.bf16.msra.mxu2 %v3033_v28  ;;  %v2625_v53 = vor.u32 %v3397_v48, %v2624_v43  ;;  %v3157_v28 = vor.u32 %v3526_v24, %v3154_v25  ;;  %v3466_v24 = vld [vmem:[#allocation3 + $0x254] sm:$0xf]  ;;  %v2914_v25 = vld [vmem:[#allocation3 + $0x268] sm:$0xf0] }
  0xe2   : > { %1747 = vmatmul.bf16.vlgmr.msrb.gmra.mxu1 %v3930_v1  ;;  %1890 = vmatpush.bf16.msra.mxu3 %v3201_v47  ;;  %v3568_v47 = vld [vmem:[#allocation3 + $0x584] sm:$0xf] }
  0xe3   : > { %1771 = vmatmul.bf16.vlgmr.msrb.gmra.mxu2 %v3932_v2  ;;  %1818 = vmatpush.bf16.msra.mxu0 %v2625_v53 }
  0xe4   : > { %1795 = vmatmul.bf16.vlgmr.msrb.gmra.mxu3 %v3934_v5 }
  0xe5   : > { %1866 = vmatpush.bf16.msra.mxu2 %v3009_v40 }
  0xe6   : > { %v1489_v14 = vpop.f32.mrf.mxu2  ;;  %v1443_v20 = vpop.f32.mrf.mxu0  ;;  %1979 = vmatpush.bf16.msrb.mxu3 %v3373_v8 }
  0xe7   : > { %v1490_v18 = vadd.f32 %v1489_v14, %v1466_v50  ;;  %v1513_v19 = vpop.f32.mrf.mxu3  ;;  %v1467_v21 = vpop.f32.mrf.mxu1  ;;  %v2816_v50 = vld [vmem:[#allocation3 + $0x190] sm:$0xf] }
  0xe8   : > { %v1468_v23 = vadd.f32 %v1467_v21, %v1443_v20  ;;  %v2817_v57 = vor.u32 %v3445_v51, %v2816_v50  ;;  %v3484_v20 = vld [vmem:[#allocation3 + $0x2e4] sm:$0xf]  ;;  %v3322_v50 = vld [vmem:[#allocation3 + $0x598] sm:$0xf0] }
  0xe9   : > { %v4012_v22 = vadd.f32 %v1513_v19, %v1490_v18  ;;  %1955 = vmatpush.bf16.msrb.mxu2 %v3181_v0  ;;  %v3436_v18 = vld [vmem:[#allocation3 + $0x164] sm:$0xf]  ;;  %v2794_v19 = vld [vmem:[#allocation3 + $0x178] sm:$0xf0]  ;;  %v3325_v53 = vor.u32 %v3568_v47, %v3322_v50  ;;  %v3058_v50 = vld [vmem:[#allocation3 + $0x388] sm:$0xf0] }
  0xea   : > { %1842 = vmatpush.bf16.msra.mxu1 %v2817_v57  ;;  %v2797_v21 = vor.u32 %v3436_v18, %v2794_v19  ;;  %1980 = vmatpush.bf16.msrb.mxu3 %v3349_v33  ;;  %v3424_v51 = vld [vmem:[#allocation3 + $0x104] sm:$0xf]  ;;  %v3562_v18 = vld [vmem:[#allocation3 + $0x554] sm:$0xf]  ;;  %v3298_v19 = vld [vmem:[#allocation3 + $0x568] sm:$0xf0]  ;;  %v3085_v33 = vor.u32 %v3508_v29, %v3082_v30 }
  0xeb   : > { %v3472_v57 = vld [vmem:[#allocation3 + $0x284] sm:$0xf]  ;;  %v2890_v47 = vld [vmem:[#allocation3 + $0x238] sm:$0xf0] }
  0xec   : > { %1907 = vmatpush.bf16.msrb.mxu0 %v2797_v21  ;;  %v2941_v0 = vor.u32 %v3472_v57, %v2938_v58  ;;  %v3301_v21 = vor.u32 %v3562_v18, %v3298_v19  ;;  %v3406_v57 = vld [vmem:[#allocation3 + $0x74] sm:$0xf] }
  0xed   : > { %1956 = vmatpush.bf16.msrb.mxu2 %v3157_v28  ;;  %v2917_v28 = vor.u32 %v3466_v24, %v2914_v25  ;;  %v3226_v25 = vld [vmem:[#allocation3 + $0x4d8] sm:$0xf0] }
  0xee   : > { %v1491_v39 = vpop.f32.mrf.mxu2  ;;  %v1446_v46 = vpop.f32.mrf.mxu0  ;;  %1981 = vmatpush.bf16.msrb.mxu3 %v3325_v53  ;;  %v3550_v53 = vld [vmem:[#allocation3 + $0x4f4] sm:$0xf] }
  0xef   : > { %v1492_v44 = vadd.f32 %v1491_v39, %v1468_v23  ;;  %v1515_v45 = vpop.f32.mrf.mxu3  ;;  %v1470_v52 = vpop.f32.mrf.mxu1  ;;  %v2986_v23 = vld [vmem:[#allocation3 + $0x2f8] sm:$0xf0] }
  0xf0   : > { %v1471_v55 = vadd.f32 %v1470_v52, %v1446_v46  ;;  %v2989_v26 = vor.u32 %v3484_v20, %v2986_v23  ;;  %v3130_v46 = vld [vmem:[#allocation3 + $0x418] sm:$0xf0]  ;;  %1908 = vmatpush.bf16.msrb.mxu0 %v2773_v41  ;;  %v3418_v20 = vld [vmem:[#allocation3 + $0xd4] sm:$0xf]  ;;  %v2722_v23 = vld [vmem:[#allocation3 + $0xe8] sm:$0xf0] }
  0xf1   : > { %v4014_v54 = vadd.f32 %v1515_v45, %v1492_v44  ;;  %1728 = vmatmul.bf16.gmra.mxu0 %v3948_v56  ;;  %v2965_v44 = vor.u32 %v3478_v35, %v2962_v36  ;;  %v3520_v45 = vld [vmem:[#allocation3 + $0x404] sm:$0xf]  ;;  %v2746_v52 = vld [vmem:[#allocation3 + $0x118] sm:$0xf0] }
  0xf2   : > { %1752 = vmatmul.bf16.gmra.mxu1 %v3950_v62  ;;  %v3133_v48 = vor.u32 %v3520_v45, %v3130_v46  ;;  %1982 = vmatpush.bf16.msrb.mxu3 %v3301_v21  ;;  %v3460_v45 = vld [vmem:[#allocation3 + $0x224] sm:$0xf]  ;;  %v3034_v21 = vld [vmem:[#allocation3 + $0x358] sm:$0xf0] }
  0xf3   : > { %1776 = vmatmul.bf16.gmra.mxu2 %v3952_v63  ;;  %1931 = vmatpush.bf16.msrb.mxu1 %v2989_v26  ;;  %v2725_v26 = vor.u32 %v3418_v20, %v2722_v23  ;;  %v3496_v20 = vld [vmem:[#allocation3 + $0x344] sm:$0xf] }
  0xf4   : > { %1800 = vmatmul.bf16.gmra.mxu3 %v3954_v4  ;;  %1957 = vmatpush.bf16.msrb.mxu2 %v3133_v48  ;;  %v3502_v48 = vld [vmem:[#allocation3 + $0x374] sm:$0xf]  ;;  %v3544_v23 = vld [vmem:[#allocation3 + $0x4c4] sm:$0xf]  ;;  %v3037_v24 = vor.u32 %v3496_v20, %v3034_v21 }
  0xf5   : > { %v3229_v29 = vor.u32 %v3544_v23, %v3226_v25 }
  0xf6   : > { %v1494_v7 = vpop.f32.mrf.mxu2  ;;  %v1448_v13 = vpop.f32.mrf.mxu0 }
  0xf7   : > { %v1495_v9 = vadd.f32 %v1494_v7, %v1471_v55  ;;  %v1518_v10 = vpop.f32.mrf.mxu3  ;;  %v1472_v14 = vpop.f32.mrf.mxu1  ;;  %1932 = vmatpush.bf16.msrb.mxu1 %v2965_v44  ;;  %v2749_v55 = vor.u32 %v3424_v51, %v2746_v52  ;;  %v2698_v44 = vld [vmem:[#allocation3 + $0xb8] sm:$0xf0]  ;;  %v2893_v51 = vor.u32 %v3460_v45, %v2890_v47  ;;  %v3061_v52 = vor.u32 %v3502_v48, %v3058_v50  ;;  %v2626_v47 = vld [vmem:[#allocation3 + $0x28] sm:$0xf0]  ;;  %v3442_v48 = vld [vmem:[#allocation3 + $0x194] sm:$0xf] }
  0xf8   : > { %v1473_v17 = vadd.f32 %v1472_v14, %v1448_v13  ;;  %v2818_v50 = vld [vmem:[#allocation3 + $0x1a8] sm:$0xf0] }
  0xf9   : > { %v4020_v16 = vadd.f32 %v1518_v10, %v1495_v9  ;;  %v3109_v10 = vor.u32 %v3514_v59, %v3106_v3  ;;  %1909 = vmatpush.bf16.msrb.mxu0 %v2749_v55  ;;  %v3250_v55 = vld [vmem:[#allocation3 + $0x508] sm:$0xf0] }
  0xfa   : > { %v3253_v58 = vor.u32 %v3550_v53, %v3250_v55  ;;  %v2674_v59 = vld [vmem:[#allocation3 + $0x88] sm:$0xf0] }
  0xfb   : > { %1933 = vmatpush.bf16.msrb.mxu1 %v2941_v0  ;;  %1958 = vmatpush.bf16.msrb.mxu2 %v3109_v10  ;;  %v2866_v0 = vld [vmem:[#allocation3 + $0x208] sm:$0xf0] }
  0xfd   : > { %1910 = vmatpush.bf16.msrb.mxu0 %v2725_v26  ;;  %v3400_v26 = vld [vmem:[#allocation3 + $0x44] sm:$0xf] }
  0xfe   : > { %v1496_v32 = vpop.f32.mrf.mxu2  ;;  %v1532_v39 = vpop.f32.mrf.mxu0 }
  0xff   : > { %v1497_v37 = vadd.f32 %v1496_v32, %v1473_v17  ;;  %v1520_v38 = vpop.f32.mrf.mxu3  ;;  %v1556_v40 = vpop.f32.mrf.mxu1  ;;  %1934 = vmatpush.bf16.msrb.mxu1 %v2917_v28  ;;  %1959 = vmatpush.bf16.msrb.mxu2 %v3085_v33  ;;  %v2650_v28 = vld [vmem:[#allocation3 + $0x58] sm:$0xf0]  ;;  %v3490_v33 = vld [vmem:[#allocation3 + $0x314] sm:$0xf] }
 0x100   : > { %v1557_v43 = vadd.f32 %v1556_v40, %v1532_v39  ;;  %v2653_v30 = vor.u32 %v3400_v26, %v2650_v28 }
 0x101   : > { %v4022_v42 = vadd.f32 %v1520_v38, %v1497_v37  ;;  %1733 = vmatmul.bf16.gmra.mxu0 %v3968_v6  ;;  %v3277_v38 = vor.u32 %v3556_v31, %v3274_v34  ;;  %v3448_v31 = vld [vmem:[#allocation3 + $0x1c4] sm:$0xf] }
 0x102   : > { %1757 = vmatmul.bf16.gmra.mxu1 %v3970_v11 }
 0x103   : > { %1781 = vmatmul.bf16.gmra.mxu2 %v3972_v12  ;;  %1983 = vmatpush.bf16.msrb.mxu3 %v3277_v38  ;;  %v3538_v38 = vld [vmem:[#allocation3 + $0x494] sm:$0xf] }
 0x104   : > { %1805 = vmatmul.bf16.gmra.mxu3 %v3974_v15  ;;  %1935 = vmatpush.bf16.msrb.mxu1 %v2893_v51 }
 0x105   : > { %1960 = vmatpush.bf16.msrb.mxu2 %v3061_v52 }
 0x106   : > { %v1580_v61 = vpop.f32.mrf.mxu2  ;;  %v1534_v9 = vpop.f32.mrf.mxu0 }
 0x107   : > { %v1581_v7 = vadd.f32 %v1580_v61, %v1557_v43  ;;  %v1604_v8 = vpop.f32.mrf.mxu3  ;;  %v1558_v13 = vpop.f32.mrf.mxu1  ;;  %v3412_v43 = vld [vmem:[#allocation3 + $0xa4] sm:$0xf]  ;;  %v3454_v61 = vld [vmem:[#allocation3 + $0x1f4] sm:$0xf]  ;;  %1984 = vmatpush.bf16.msrb.mxu3 %v3253_v58 }
 0x108   : > { %v1559_v17 = vadd.f32 %v1558_v13, %v1534_v9  ;;  %v2701_v46 = vor.u32 %v3412_v43, %v2698_v44 }
 0x109   : > { %v4028_v14 = vadd.f32 %v1604_v8, %v1581_v7  ;;  %v2677_v7 = vor.u32 %v3406_v57, %v2674_v59  ;;  %v2869_v8 = vor.u32 %v3454_v61, %v2866_v0  ;;  %1961 = vmatpush.bf16.msrb.mxu2 %v3037_v24  ;;  %v2821_v57 = vor.u32 %v3442_v48, %v2818_v50 }
 0x10a   : > { %1911 = vmatpush.bf16.msrb.mxu0 %v2701_v46 }
 0x10b   : > { %1936 = vmatpush.bf16.msrb.mxu1 %v2869_v8  ;;  %1985 = vmatpush.bf16.msrb.mxu3 %v3229_v29 }
 0x10e   : > { %v1582_v32 = vpop.f32.mrf.mxu2  ;;  %v1537_v37 = vpop.f32.mrf.mxu0  ;;  %1912 = vmatpush.bf16.msrb.mxu0 %v2677_v7 }
 0x10f   : > { %v1583_v35 = vadd.f32 %v1582_v32, %v1559_v17  ;;  %v1606_v36 = vpop.f32.mrf.mxu3  ;;  %v1561_v39 = vpop.f32.mrf.mxu1  ;;  %v2842_v32 = vld [vmem:[#allocation3 + $0x1d8] sm:$0xf0] }
 0x110   : > { %v1562_v41 = vadd.f32 %v1561_v39, %v1537_v37  ;;  %v2845_v34 = vor.u32 %v3448_v31, %v2842_v32  ;;  %v3202_v39 = vld [vmem:[#allocation3 + $0x4a8] sm:$0xf0] }
 0x111   : > { %v4030_v40 = vadd.f32 %v1606_v36, %v1583_v35  ;;  %1819 = vmatmul.bf16.vlgmr.msra.gmra.mxu0 %v3928_v60  ;;  %v3010_v35 = vld [vmem:[#allocation3 + $0x328] sm:$0xf0]  ;;  %v3205_v46 = vor.u32 %v3538_v38, %v3202_v39 }
 0x112   : > { %1843 = vmatmul.bf16.vlgmr.msra.gmra.mxu1 %v3930_v1  ;;  %1913 = vmatpush.bf16.msrb.mxu0 %v2653_v30  ;;  %v3013_v37 = vor.u32 %v3490_v33, %v3010_v35 }
 0x113   : > { %1867 = vmatmul.bf16.vlgmr.msra.gmra.mxu2 %v3932_v2  ;;  %1937 = vmatpush.bf16.msrb.mxu1 %v2845_v34 }
 0x114   : > { %1891 = vmatmul.bf16.vlgmr.msra.gmra.mxu3 %v3934_v5  ;;  %1962 = vmatpush.bf16.msrb.mxu2 %v3013_v37 }
 0x115   : > { %1986 = vmatpush.bf16.msrb.mxu3 %v3205_v46 }
 0x116   : > { %v1585_v3 = vpop.f32.mrf.mxu2  ;;  %v1539_v13 = vpop.f32.mrf.mxu0 }
 0x117   : > { %v1586_v9 = vadd.f32 %v1585_v3, %v1562_v41  ;;  %v1609_v10 = vpop.f32.mrf.mxu3  ;;  %v1563_v17 = vpop.f32.mrf.mxu1  ;;  %v3394_v41 = vld [vmem:[#allocation3 + $0x14] sm:$0xf]  ;;  %1938 = vmatpush.bf16.msrb.mxu1 %v2821_v57 }
 0x118   : > { %v1564_v19 = vadd.f32 %v1563_v17, %v1539_v13  ;;  %v2629_v52 = vor.u32 %v3394_v41, %v2626_v47 }
 0x119   : > { %v4036_v18 = vadd.f32 %v1609_v10, %v1586_v9 }
 0x11a   : > { %1914 = vmatpush.bf16.msrb.mxu0 %v2629_v52 }
 0x11e   : > { %v1587_v36 = vpop.f32.mrf.mxu2  ;;  %v1542_v45 = vpop.f32.mrf.mxu0 }
 0x11f   : > { %v1588_v43 = vadd.f32 %v1587_v36, %v1564_v19  ;;  %v1611_v44 = vpop.f32.mrf.mxu3  ;;  %v1566_v51 = vpop.f32.mrf.mxu1 }
 0x120   : > { %v1567_v55 = vadd.f32 %v1566_v51, %v1542_v45 }
 0x121   : > { %v4038_v53 = vadd.f32 %v1611_v44, %v1588_v43  ;;  %1824 = vmatmul.bf16.gmra.mxu0 %v3948_v56 }
 0x122   : > { %1848 = vmatmul.bf16.gmra.mxu1 %v3950_v62 }
 0x123   : > { %1872 = vmatmul.bf16.gmra.mxu2 %v3952_v63 }
 0x124   : > { %1896 = vmatmul.bf16.gmra.mxu3 %v3954_v4 }
 0x126   : > { %v1590_v58 = vpop.f32.mrf.mxu2  ;;  %v1544_v0 = vpop.f32.mrf.mxu0 }
 0x127   : > { %v1591_v59 = vadd.f32 %v1590_v58, %v1567_v55  ;;  %v1614_v61 = vpop.f32.mrf.mxu3  ;;  %v1568_v3 = vpop.f32.mrf.mxu1 }
 0x128   : > { %v1569_v8 = vadd.f32 %v1568_v3, %v1544_v0 }
 0x129   : > { %v4044_v7 = vadd.f32 %v1614_v61, %v1591_v59 }
 0x12e   : > { %v1592_v9 = vpop.f32.mrf.mxu2  ;;  %v1628_v17 = vpop.f32.mrf.mxu0 }
 0x12f   : > { %v1593_v10 = vadd.f32 %v1592_v9, %v1569_v8  ;;  %v1616_v13 = vpop.f32.mrf.mxu3  ;;  %v1652_v19 = vpop.f32.mrf.mxu1 }
 0x130   : > { %v1653_v21 = vadd.f32 %v1652_v19, %v1628_v17 }
 0x131   : > { %v4046_v20 = vadd.f32 %v1616_v13, %v1593_v10  ;;  %1829 = vmatmul.bf16.gmra.mxu0 %v3968_v6 }
 0x132   : > { %1853 = vmatmul.bf16.gmra.mxu1 %v3970_v11 }
 0x133   : > { %1877 = vmatmul.bf16.gmra.mxu2 %v3972_v12 }
 0x134   : > { %1901 = vmatmul.bf16.gmra.mxu3 %v3974_v15 }
 0x136   : > { %v1676_v23 = vpop.f32.mrf.mxu2  ;;  %v1630_v26 = vpop.f32.mrf.mxu0 }
 0x137   : > { %v1677_v24 = vadd.f32 %v1676_v23, %v1653_v21  ;;  %v1700_v25 = vpop.f32.mrf.mxu3  ;;  %v1654_v28 = vpop.f32.mrf.mxu1  ;;  %v2062_v23 = vstv %s2061_s19 }
 0x138   : > { %v1655_v30 = vadd.f32 %v1654_v28, %v1630_v26 }
 0x139   : > { %v4052_v29 = vadd.f32 %v1700_v25, %v1677_v24 }
 0x13e   : > { %v1678_v31 = vpop.f32.mrf.mxu2  ;;  %v1633_v34 = vpop.f32.mrf.mxu0 }
 0x13f   : > { %v1679_v32 = vadd.f32 %v1678_v31, %v1655_v30  ;;  %v1702_v33 = vpop.f32.mrf.mxu3  ;;  %v1657_v35 = vpop.f32.mrf.mxu1 }
 0x140   : > { %v1658_v37 = vadd.f32 %v1657_v35, %v1633_v34 }
 0x141   : > { %v4054_v36 = vadd.f32 %v1702_v33, %v1679_v32  ;;  %1915 = vmatmul.bf16.vlgmr.msrb.gmra.mxu0 %v3928_v60 }
 0x142   : > { %1939 = vmatmul.bf16.vlgmr.msrb.gmra.mxu1 %v3930_v1 }
 0x143   : > { %1963 = vmatmul.bf16.vlgmr.msrb.gmra.mxu2 %v3932_v2 }
 0x144   : > { %1987 = vmatmul.bf16.vlgmr.msrb.gmra.mxu3 %v3934_v5 }
 0x146   : > { %v1681_v38 = vpop.f32.mrf.mxu2  ;;  %v1635_v43 = vpop.f32.mrf.mxu0 }
 0x147   : > { %v1682_v39 = vadd.f32 %v1681_v38, %v1658_v37  ;;  %v1705_v41 = vpop.f32.mrf.mxu3  ;;  %v1659_v44 = vpop.f32.mrf.mxu1 }
 0x148   : > { %v1660_v46 = vadd.f32 %v1659_v44, %v1635_v43 }
 0x149   : > { %v4060_v45 = vadd.f32 %v1705_v41, %v1682_v39 }
 0x14e   : > { %v1683_v47 = vpop.f32.mrf.mxu2  ;;  %v1638_v51 = vpop.f32.mrf.mxu0 }
 0x14f   : > { %v1684_v48 = vadd.f32 %v1683_v47, %v1660_v46  ;;  %v1707_v50 = vpop.f32.mrf.mxu3  ;;  %v1662_v52 = vpop.f32.mrf.mxu1 }
 0x150   : > { %v1663_v1 = vadd.f32 %v1662_v52, %v1638_v51 }
 0x151   : > { %v4062_v60 = vadd.f32 %v1707_v50, %v1684_v48  ;;  %1920 = vmatmul.bf16.gmra.mxu0 %v3948_v56 }
 0x152   : > { %1944 = vmatmul.bf16.gmra.mxu1 %v3950_v62 }
 0x153   : > { %1968 = vmatmul.bf16.gmra.mxu2 %v3952_v63  ;;  %v2057_v63 = vlaneseq }
 0x154   : > { %1992 = vmatmul.bf16.gmra.mxu3 %v3954_v4 }
 0x155   : > { %v2058_v19 = vshrl.u32 %v2057_v63, 7 }
 0x156   : > { %v1686_v2 = vpop.f32.mrf.mxu2  ;;  %v1640_v57 = vpop.f32.mrf.mxu0 }
 0x157   : > { %v1687_v5 = vadd.f32 %v1686_v2, %v1663_v1  ;;  %v1710_v55 = vpop.f32.mrf.mxu3  ;;  %v1664_v58 = vpop.f32.mrf.mxu1  ;;  %v4080_v28 = vadd.s32 %v2062_v23, %v2058_v19  ;;  %v2059_v33 = vadd.s32 8, %v2058_v19  ;;  %v2060_v1 = vadd.s32 16, %v2058_v19 }
 0x158   : > { %v1665_v61 = vadd.f32 %v1664_v58, %v1640_v57 }
 0x159   : > { %v4068_v59 = vadd.f32 %v1710_v55, %v1687_v5  ;;  %vm2066_vm0 = vcmp.lt.s32.totalorder %v4080_v28, 42  ;;  %v4087_v41 = vadd.s32 %v2062_v23, %v2059_v33  ;;  %v4097_v58 = vadd.s32 %v2062_v23, %v2060_v1 }
 0x15b   : > { %vm2067_vm1 = vcmp.lt.s32.totalorder %v4087_v41, 42  ;;  %vm2068_vm2 = vcmp.lt.s32.totalorder %v4097_v58, 42 }
 0x15e   : > { %v1688_v0 = vpop.f32.mrf.mxu2  ;;  %v1724_v9 = vpop.f32.mrf.mxu0 }
 0x15f   : > { %v1689_v3 = vadd.f32 %v1688_v0, %v1665_v61  ;;  %v1712_v8 = vpop.f32.mrf.mxu3  ;;  %v1748_v56 = vpop.f32.mrf.mxu1 }
 0x160   : > { %v1749_v62 = vadd.f32 %v1748_v56, %v1724_v9 }
 0x161   : > { %v4070_v10 = vadd.f32 %v1712_v8, %v1689_v3  ;;  %1925 = vmatmul.bf16.gmra.mxu0 %v3968_v6  ;;  %v2003_v6 = vmul.f32 %v4004_v27, %v4004_v27  ;;  %v2006_v27 = vmul.f32 %v4006_v49, %v4006_v49  ;;  %v2009_v49 = vmul.f32 %v4012_v22, %v4012_v22 }
 0x162   : > { %1949 = vmatmul.bf16.gmra.mxu1 %v3970_v11 }
 0x163   : > { %1973 = vmatmul.bf16.gmra.mxu2 %v3972_v12 }
 0x164   : > { %1997 = vmatmul.bf16.gmra.mxu3 %v3974_v15 }
 0x166   : > { %v1772_v4 = vpop.f32.mrf.mxu2  ;;  %v1726_v21 = vpop.f32.mrf.mxu0 }
 0x167   : > { %v1773_v13 = vadd.f32 %v1772_v4, %v1749_v62  ;;  %v1796_v17 = vpop.f32.mrf.mxu3  ;;  %v1750_v24 = vpop.f32.mrf.mxu1 }
 0x168   : > { %v1751_v26 = vadd.f32 %v1750_v24, %v1726_v21 }
 0x169   : > { %v1797_v25 = vadd.f32 %v1796_v17, %v1773_v13  ;;  %v2030_v17 = vmul.f32 %v4014_v54, %v4014_v54 }
 0x16b   : > { %v2012_v11 = vmul.f32 %v1797_v25, %v1797_v25 }
 0x16d   : > { %v2021_v12 = vadd.f32 %v2012_v11, %v2003_v6 }
 0x16e   : > { %v1774_v30 = vpop.f32.mrf.mxu2  ;;  %v1729_v32 = vpop.f32.mrf.mxu0 }
 0x16f   : > { %v1775_v15 = vadd.f32 %v1774_v30, %v1751_v26  ;;  %v1798_v31 = vpop.f32.mrf.mxu3  ;;  %v1753_v34 = vpop.f32.mrf.mxu1  ;;  %v2075_v38 = vsel %vm2066_vm0, %v2021_v12, 0.0 }
 0x170   : > { %v1754_v37 = vadd.f32 %v1753_v34, %v1729_v32  ;;  %v4089_v43 = vmax.f32 %v2075_v38, 1e-07  ;;  %v2033_v38 = vmul.f32 %v4020_v16, %v4020_v16 }
 0x171   : > { %v1799_v35 = vadd.f32 %v1798_v31, %v1775_v15 }
 0x172   : > { %3645 = vrsqrt.f32 %v4089_v43  ;;  %vm2118_vm3 = vcmp.eq.f32.partialorder %v4089_v43, inf  ;;  %vm2120_vm4 = vcmp.eq.f32.partialorder %v4089_v43, 0.0 }
 0x173   : > { %v2015_v39 = vmul.f32 %v1799_v35, %v1799_v35 }
 0x175   : > { %v2024_v44 = vadd.f32 %v2015_v39, %v2006_v27 }
 0x176   : > { %v1777_v46 = vpop.f32.mrf.mxu2  ;;  %v1731_v50 = vpop.f32.mrf.mxu0 }
 0x177   : > { %v1778_v47 = vadd.f32 %v1777_v46, %v1754_v37  ;;  %v1801_v48 = vpop.f32.mrf.mxu3  ;;  %v1755_v51 = vpop.f32.mrf.mxu1  ;;  %v2078_v5 = vsel %vm2067_vm1, %v2024_v44, 0.0 }
 0x178   : > { %v1756_v2 = vadd.f32 %v1755_v51, %v1731_v50  ;;  %v4099_v61 = vmax.f32 %v2078_v5, 1e-07  ;;  %v3646_v3 = vpop.eup %3645 }
 0x179   : > { %v1802_v52 = vadd.f32 %v1801_v48, %v1778_v47  ;;  %v2112_v22 = vmul.f32 %v3646_v3, %v4089_v43 }
 0x17a   : > { %3647 = vrsqrt.f32 %v4099_v61  ;;  %vm2154_vm7 = vcmp.eq.f32.partialorder %v4099_v61, inf  ;;  %vm2156_vm8 = vcmp.eq.f32.partialorder %v4099_v61, 0.0 }
 0x17b   : > { %v2018_v55 = vmul.f32 %v1802_v52, %v1802_v52  ;;  %3649 = vrcp.f32 %v4089_v43  ;;  %v2113_v25 = vmul.f32 %v3646_v3, %v2112_v22 }
 0x17c   : > { %3651 = vrcp.f32 %v4099_v61 }
 0x17d   : > { %v2027_v57 = vadd.f32 %v2018_v55, %v2009_v49  ;;  %v2114_v37 = vmul.f32 0.5, %v2113_v25 }
 0x17e   : > { %v1779_v0 = vpop.f32.mrf.mxu2  ;;  %v1734_v56 = vpop.f32.mrf.mxu0 }
 0x17f   : > { %v1780_v8 = vadd.f32 %v1779_v0, %v1756_v2  ;;  %v1803_v9 = vpop.f32.mrf.mxu3  ;;  %v1758_v62 = vpop.f32.mrf.mxu1  ;;  %v2081_v21 = vsel %vm2068_vm2, %v2027_v57, 0.0  ;;  %v2115_v47 = vsub.f32 1.5, %v2114_v37 }
 0x180   : > { %v1759_v13 = vadd.f32 %v1758_v62, %v1734_v56  ;;  %v4109_v26 = vmax.f32 %v2081_v21, 1e-07  ;;  %v4113_v15 = vpop.eup %3647 }
 0x181   : > { %v1804_v4 = vadd.f32 %v1803_v9, %v1780_v8  ;;  %v3650_v32 = vpop.eup %3649  ;;  %v2148_v39 = vmul.f32 %v4113_v15, %v4099_v61  ;;  %v2036_v9 = vmul.f32 %v4022_v42, %v4022_v42  ;;  %v2116_v62 = vmul.f32 %v3646_v3, %v2115_v47 }
 0x182   : > { %v3652_v48 = vpop.eup %3651  ;;  %vm2190_vm11 = vcmp.eq.f32.partialorder %v4109_v26, inf  ;;  %vm2192_vm13 = vcmp.eq.f32.partialorder %v4109_v26, 0.0 }
 0x183   : > { %v2039_v19 = vmul.f32 %v1804_v4, %v1804_v4  ;;  %v2149_v2 = vmul.f32 %v4113_v15, %v2148_v39 }
 0x185   : > { %v2048_v23 = vadd.f32 %v2039_v19, %v2030_v17 }
 0x186   : > { %v1782_v24 = vpop.f32.mrf.mxu2  ;;  %v1736_v30 = vpop.f32.mrf.mxu0 }
 0x187   : > { %v2084_v6 = vsel %vm2066_vm0, %v2048_v23, 0.0  ;;  %v1783_v11 = vadd.f32 %v1782_v24, %v1759_v13  ;;  %v1806_v12 = vpop.f32.mrf.mxu3  ;;  %v1760_v31 = vpop.f32.mrf.mxu1  ;;  %v2150_v13 = vmul.f32 0.5, %v2149_v2  ;;  %v2117_v24 = vmul.f32 %v2116_v62, %v4089_v43 }
 0x188   : > { %v4115_v54 = vmax.f32 %v2084_v6, 1e-07  ;;  %v1761_v34 = vadd.f32 %v1760_v31, %v1736_v30  ;;  %v2004_v31 = vmul.f32 %v4028_v14, %v4028_v14 }
 0x189   : > { %v1807_v33 = vadd.f32 %v1806_v12, %v1783_v11  ;;  %v2151_v11 = vsub.f32 1.5, %v2150_v13  ;;  %v2119_v47 = vsel %vm2118_vm3, %v4089_v43, %v2117_v24 }
 0x18a   : > { %v4119_v35 = vmul.f32 %v3650_v32, %v4115_v54  ;;  %3653 = vrsqrt.f32 %v4115_v54  ;;  %vm2226_vm5 = vcmp.eq.f32.partialorder %v4115_v54, inf  ;;  %vm2228_vm6 = vcmp.eq.f32.partialorder %v4115_v54, 0.0 }
 0x18b   : > { %v2042_v27 = vmul.f32 %v1807_v33, %v1807_v33  ;;  %3655 = vrsqrt.f32 %v4109_v26 }
 0x18d   : > { %v2051_v44 = vadd.f32 %v2042_v27, %v2033_v38 }
 0x18e   : > { %v1784_v46 = vpop.f32.mrf.mxu2  ;;  %v1820_v1 = vpop.f32.mrf.mxu0 }
 0x18f   : > { %v2087_v50 = vsel %vm2067_vm1, %v2051_v44, 0.0  ;;  %v1785_v51 = vadd.f32 %v1784_v46, %v1761_v34  ;;  %v1808_v52 = vpop.f32.mrf.mxu3  ;;  %v1844_v5 = vpop.f32.mrf.mxu1 }
 0x190   : > { %v3654_v49 = vpop.eup %3653  ;;  %v4130_v16 = vmax.f32 %v2087_v50, 1e-07  ;;  %v1845_v0 = vadd.f32 %v1844_v5, %v1820_v1  ;;  %v2229_v1 = vand.u32 2147483648, %v4115_v54 }
 0x191   : > { %v4132_v55 = vpop.eup %3655  ;;  %v1809_v57 = vadd.f32 %v1808_v52, %v1785_v51  ;;  %v2220_v8 = vmul.f32 %v3654_v49, %v4115_v54  ;;  %v2121_v52 = vand.u32 2147483648, %v4089_v43 }
 0x192   : > { %v4138_v56 = vmul.f32 %v3652_v48, %v4130_v16  ;;  %3657 = vrsqrt.f32 %v4130_v16  ;;  %v2184_v17 = vmul.f32 %v4132_v55, %v4109_v26  ;;  %v2152_v48 = vmul.f32 %v4113_v15, %v2151_v11 }
 0x193   : > { %v2045_v4 = vmul.f32 %v1809_v57, %v1809_v57  ;;  %3659 = vrcp.f32 %v4109_v26  ;;  %v2221_v22 = vmul.f32 %v3654_v49, %v2220_v8  ;;  %v2122_v8 = vsel %vm2120_vm4, %v2121_v52, %v2119_v47 }
 0x194   : > { %v2185_v34 = vmul.f32 %v4132_v55, %v2184_v17  ;;  %v2153_v13 = vmul.f32 %v2152_v48, %v4099_v61  ;;  %vm2262_vm9 = vcmp.eq.f32.partialorder %v4130_v16, inf  ;;  %vm2264_vm10 = vcmp.eq.f32.partialorder %v4130_v16, 0.0 }
 0x195   : > { %v2054_v19 = vadd.f32 %v2045_v4, %v2036_v9  ;;  %v2222_v21 = vmul.f32 0.5, %v2221_v22 }
 0x196   : > { %v1868_v23 = vpop.f32.mrf.mxu2  ;;  %v1822_v6 = vpop.f32.mrf.mxu0 }
 0x197   : > { %v2090_v42 = vsel %vm2068_vm2, %v2054_v19, 0.0  ;;  %v1869_v25 = vadd.f32 %v1868_v23, %v1845_v0  ;;  %v1892_v3 = vpop.f32.mrf.mxu3  ;;  %v2223_v12 = vsub.f32 1.5, %v2222_v21  ;;  %v1846_v33 = vpop.f32.mrf.mxu1 }
 0x198   : > { %v3658_v30 = vpop.eup %3657  ;;  %v4149_v32 = vmax.f32 %v2090_v42, 1e-07  ;;  %v1847_v27 = vadd.f32 %v1846_v33, %v1822_v6  ;;  %v2265_v33 = vand.u32 2147483648, %v4130_v16 }
 0x199   : > { %v3660_v37 = vpop.eup %3659  ;;  %v1893_v38 = vadd.f32 %v1892_v3, %v1869_v25  ;;  %v2224_v39 = vmul.f32 %v3654_v49, %v2223_v12  ;;  %v2256_v44 = vmul.f32 %v3658_v30, %v4130_v16  ;;  %v2186_v49 = vmul.f32 0.5, %v2185_v34 }
 0x19a   : > { %v4155_v46 = vmul.f32 %v3660_v37, %v4149_v32  ;;  %3661 = vrsqrt.f32 %v4149_v32  ;;  %v2007_v25 = vmul.f32 %v4030_v40, %v4030_v40  ;;  %v2157_v3 = vand.u32 2147483648, %v4099_v61 }
 0x19b   : > { %v2013_v14 = vmul.f32 %v1893_v38, %v1893_v38  ;;  %v2225_v50 = vmul.f32 %v2224_v39, %v4115_v54  ;;  %v2257_v51 = vmul.f32 %v3658_v30, %v2256_v44  ;;  %v2187_v23 = vsub.f32 1.5, %v2186_v49 }
 0x19c   : > { %v2155_v12 = vsel %vm2154_vm7, %v4099_v61, %v2153_v13  ;;  %v2193_v13 = vand.u32 2147483648, %v4109_v26  ;;  %vm2298_vm12 = vcmp.eq.f32.partialorder %v4149_v32, inf  ;;  %vm2300_vm14 = vcmp.eq.f32.partialorder %v4149_v32, 0.0 }
 0x19d   : > { %v2022_v2 = vadd.f32 %v2013_v14, %v2004_v31  ;;  %v2227_v5 = vsel %vm2226_vm5, %v4115_v54, %v2225_v50  ;;  %v2258_v57 = vmul.f32 0.5, %v2257_v51  ;;  %v2188_v37 = vmul.f32 %v4132_v55, %v2187_v23 }
 0x19e   : > { %v1870_v0 = vpop.f32.mrf.mxu2  ;;  %v2230_v9 = vsel %vm2228_vm6, %v2229_v1, %v2227_v5  ;;  %v1825_v4 = vpop.f32.mrf.mxu0  ;;  %v2158_v39 = vsel %vm2156_vm8, %v2157_v3, %v2155_v12  ;;  %v2031_v12 = vmul.f32 %v4038_v53, %v4038_v53 }
 0x19f   : > { %v1871_v15 = vadd.f32 %v1870_v0, %v1847_v27  ;;  %v1894_v62 = vpop.f32.mrf.mxu3  ;;  %v2259_v43 = vsub.f32 1.5, %v2258_v57  ;;  %v4168_v22 = vsub.f32 %v2230_v9, %v2122_v8  ;;  %v1849_v19 = vpop.f32.mrf.mxu1  ;;  %v2189_v55 = vmul.f32 %v2188_v37, %v4109_v26 }
 0x1a0   : > { %v3662_v17 = vpop.eup %3661  ;;  %v1850_v11 = vadd.f32 %v1849_v19, %v1825_v4 }
 0x1a1   : > { %v1895_v21 = vadd.f32 %v1894_v62, %v1871_v15  ;;  %v2260_v24 = vmul.f32 %v3658_v30, %v2259_v43  ;;  %v2292_v42 = vmul.f32 %v3662_v17, %v4149_v32  ;;  %v2076_v30 = vsel %vm2066_vm0, %v2022_v2, 0.0 }
 0x1a2   : > { %v4185_v47 = vmax.f32 %v2076_v30, 1e-07  ;;  %v2191_v9 = vsel %vm2190_vm11, %v4109_v26, %v2189_v55  ;;  %v2010_v62 = vmul.f32 %v4036_v18, %v4036_v18  ;;  %v2301_v43 = vand.u32 2147483648, %v4149_v32 }
 0x1a3   : > { %v2016_v6 = vmul.f32 %v1895_v21, %v1895_v21  ;;  %v2261_v31 = vmul.f32 %v2260_v24, %v4130_v16  ;;  %v2293_v40 = vmul.f32 %v3662_v17, %v2292_v42  ;;  %v2034_v55 = vmul.f32 %v4044_v7, %v4044_v7 }
 0x1a4   : > { %3663 = vrsqrt.f32 %v4185_v47  ;;  %vm2130_vm15 = vcmp.eq.f32.partialorder %v4185_v47, inf  ;;  %vm2132_vm4 = vcmp.eq.f32.partialorder %v4185_v47, 0.0 }
 0x1a5   : > { %v2025_v34 = vadd.f32 %v2016_v6, %v2007_v25  ;;  %v2263_v38 = vsel %vm2262_vm9, %v4130_v16, %v2261_v31  ;;  %v2294_v44 = vmul.f32 0.5, %v2293_v40  ;;  %v2194_v25 = vsel %vm2192_vm13, %v2193_v13, %v2191_v9 }
 0x1a6   : > { %v1873_v27 = vpop.f32.mrf.mxu2  ;;  %v2266_v61 = vsel %vm2264_vm10, %v2265_v33, %v2263_v38  ;;  %v1827_v50 = vpop.f32.mrf.mxu0 }
 0x1a7   : > { %v1874_v14 = vadd.f32 %v1873_v27, %v1850_v11  ;;  %v1897_v48 = vpop.f32.mrf.mxu3  ;;  %v4187_v51 = vsub.f32 %v2266_v61, %v2158_v39  ;;  %v1851_v52 = vpop.f32.mrf.mxu1  ;;  %v2295_v1 = vsub.f32 1.5, %v2294_v44  ;;  %v2079_v49 = vsel %vm2067_vm1, %v2025_v34, 0.0 }
 0x1a8   : > { %v4194_v0 = vmax.f32 %v2079_v49, 1e-07  ;;  %v1852_v8 = vadd.f32 %v1851_v52, %v1827_v50 }
 0x1a9   : > { %v1898_v2 = vadd.f32 %v1897_v48, %v1874_v14  ;;  %v2296_v5 = vmul.f32 %v3662_v17, %v2295_v1 }
 0x1aa   : > { %v3664_v3 = vpop.eup %3663  ;;  %3665 = vrsqrt.f32 %v4194_v0  ;;  %vm2166_vm6 = vcmp.eq.f32.partialorder %v4194_v0, inf  ;;  %vm2168_vm7 = vcmp.eq.f32.partialorder %v4194_v0, 0.0 }
 0x1ab   : > { %v2019_v57 = vmul.f32 %v1898_v2, %v1898_v2  ;;  %v2297_v15 = vmul.f32 %v2296_v5, %v4149_v32  ;;  %3667 = vrcp.f32 %v4185_v47  ;;  %v2124_v33 = vmul.f32 %v3664_v3, %v4185_v47 }
 0x1ac   : > { %3669 = vlog2.f32 %v4119_v35 }
 0x1ad   : > { %v2299_v23 = vsel %vm2298_vm12, %v4149_v32, %v2297_v15  ;;  %v2028_v24 = vadd.f32 %v2019_v57, %v2010_v62  ;;  %v2125_v48 = vmul.f32 %v3664_v3, %v2124_v33  ;;  %3671 = vrcp.f32 %v4194_v0 }
 0x1ae   : > { %v1875_v4 = vpop.f32.mrf.mxu2  ;;  %v1830_v21 = vpop.f32.mrf.mxu0  ;;  %v2302_v18 = vsel %vm2300_vm14, %v2301_v43, %v2299_v23 }
 0x1af   : > { %v1876_v17 = vadd.f32 %v1875_v4, %v1852_v8  ;;  %v1899_v19 = vpop.f32.mrf.mxu3  ;;  %v1854_v42 = vpop.f32.mrf.mxu1  ;;  %v4207_v11 = vsub.f32 %v2302_v18, %v2194_v25  ;;  %v2082_v26 = vsel %vm2068_vm2, %v2028_v24, 0.0  ;;  %v2126_v35 = vmul.f32 0.5, %v2125_v48 }
 0x1b0   : > { %v1855_v30 = vadd.f32 %v1854_v42, %v1830_v21  ;;  %v4215_v37 = vpop.eup %3665  ;;  %v4217_v38 = vmax.f32 %v2082_v26, 1e-07 }
 0x1b1   : > { %v1900_v6 = vadd.f32 %v1899_v19, %v1876_v17  ;;  %v3668_v50 = vpop.eup %3667  ;;  %v2160_v2 = vmul.f32 %v4215_v37, %v4194_v0  ;;  %v2127_v24 = vsub.f32 1.5, %v2126_v35 }
 0x1b2   : > { %v3670_v9 = vpop.eup %3669  ;;  %vm2202_vm10 = vcmp.eq.f32.partialorder %v4217_v38, inf  ;;  %vm2204_vm12 = vcmp.eq.f32.partialorder %v4217_v38, 0.0 }
 0x1b3   : > { %v2040_v31 = vmul.f32 %v1900_v6, %v1900_v6  ;;  %v2161_v62 = vmul.f32 %v4215_v37, %v2160_v2  ;;  %v3672_v4 = vpop.eup %3671  ;;  %v2398_v25 = vmul.f32 0.6931472, %v3670_v9 }
 0x1b5   : > { %v2049_v40 = vadd.f32 %v2040_v31, %v2031_v12  ;;  %v2037_v12 = vmul.f32 %v4046_v20, %v4046_v20 }
 0x1b6   : > { %v1878_v34 = vpop.f32.mrf.mxu2  ;;  %v1832_v61 = vpop.f32.mrf.mxu0 }
 0x1b7   : > { %v2085_v27 = vsel %vm2066_vm0, %v2049_v40, 0.0  ;;  %v1879_v39 = vadd.f32 %v1878_v34, %v1855_v30  ;;  %v1902_v53 = vpop.f32.mrf.mxu3  ;;  %v1856_v14 = vpop.f32.mrf.mxu1  ;;  %v2162_v30 = vmul.f32 0.5, %v2161_v62 }
 0x1b8   : > { %v4221_v44 = vmax.f32 %v2085_v27, 1e-07  ;;  %v1857_v8 = vadd.f32 %v1856_v14, %v1832_v61  ;;  %v2128_v27 = vmul.f32 %v3664_v3, %v2127_v24  ;;  %v2415_v61 = vand.u32 2147483647, %v2398_v25 }
 0x1b9   : > { %v1903_v52 = vadd.f32 %v1902_v53, %v1879_v39  ;;  %v2163_v20 = vsub.f32 1.5, %v2162_v30 }
 0x1ba   : > { %v2389_v1 = vmul.f32 %v3668_v50, %v4221_v44  ;;  %3673 = vrsqrt.f32 %v4221_v44  ;;  %v4234_v5 = vadd.f32 %v4221_v44, %v4115_v54  ;;  %v2129_v9 = vmul.f32 %v2128_v27, %v4185_v47 }
 0x1bb   : > { %v2043_v49 = vmul.f32 %v1903_v52, %v1903_v52  ;;  %3675 = vrsqrt.f32 %v4217_v38  ;;  %vm2238_vm3 = vcmp.eq.f32.partialorder %v4221_v44, inf  ;;  %vm2240_vm5 = vcmp.eq.f32.partialorder %v4221_v44, 0.0 }
 0x1bc   : > { %3677 = vlog2.f32 %v2389_v1 }
 0x1bd   : > { %v2052_v57 = vadd.f32 %v2043_v49, %v2034_v55  ;;  %3679 = vrcp.f32 %v4217_v38 }
 0x1be   : > { %v1880_v15 = vpop.f32.mrf.mxu2  ;;  %v1916_v17 = vpop.f32.mrf.mxu0 }
 0x1bf   : > { %v2088_v13 = vsel %vm2067_vm1, %v2052_v57, 0.0  ;;  %v1881_v7 = vadd.f32 %v1880_v15, %v1857_v8  ;;  %v1904_v43 = vpop.f32.mrf.mxu3  ;;  %v1940_v23 = vpop.f32.mrf.mxu1 }
 0x1c0   : > { %v3674_v19 = vpop.eup %3673  ;;  %v4239_v21 = vmax.f32 %v2088_v13, 1e-07  ;;  %v1941_v33 = vadd.f32 %v1940_v23, %v1916_v17  ;;  %v2164_v17 = vmul.f32 %v4215_v37, %v2163_v20  ;;  %v2241_v37 = vand.u32 2147483648, %v4221_v44 }
 0x1c1   : > { %v4241_v54 = vpop.eup %3675  ;;  %v1905_v42 = vadd.f32 %v1904_v43, %v1881_v7  ;;  %v2232_v18 = vmul.f32 %v3674_v19, %v4221_v44 }
 0x1c2   : > { %v3678_v6 = vpop.eup %3677  ;;  %v4248_v31 = vmul.f32 %v3672_v4, %v4239_v21  ;;  %3681 = vrsqrt.f32 %v4239_v21  ;;  %v2196_v39 = vmul.f32 %v4241_v54, %v4217_v38  ;;  %v2005_v4 = vmul.f32 %v4052_v29, %v4052_v29 }
 0x1c3   : > { %v2046_v26 = vmul.f32 %v1905_v42, %v1905_v42  ;;  %v2400_v40 = vmul.f32 0.6931472, %v3678_v6  ;;  %v2233_v34 = vmul.f32 %v3674_v19, %v2232_v18  ;;  %v3680_v52 = vpop.eup %3679  ;;  %v2133_v42 = vand.u32 2147483648, %v4185_v47 }
 0x1c4   : > { %v2197_v15 = vmul.f32 %v4241_v54, %v2196_v39  ;;  %v2131_v18 = vsel %vm2130_vm15, %v4185_v47, %v2129_v9  ;;  %vm2274_vm8 = vcmp.eq.f32.partialorder %v4239_v21, inf  ;;  %vm2276_vm9 = vcmp.eq.f32.partialorder %v4239_v21, 0.0 }
 0x1c5   : > { %v2055_v53 = vadd.f32 %v2046_v26, %v2037_v12  ;;  %v2416_v14 = vand.u32 2147483647, %v2400_v40  ;;  %v2234_v48 = vmul.f32 0.5, %v2233_v34 }
 0x1c6   : > { %v1964_v50 = vpop.f32.mrf.mxu2  ;;  %v1918_v49 = vpop.f32.mrf.mxu0  ;;  %v2198_v29 = vmul.f32 0.5, %v2197_v15 }
 0x1c7   : > { %v2091_v1 = vsel %vm2068_vm2, %v2055_v53, 0.0  ;;  %v1965_v2 = vadd.f32 %v1964_v50, %v1941_v33  ;;  %v1988_v55 = vpop.f32.mrf.mxu3  ;;  %v4255_v35 = vadd.f32 %v2416_v14, %v2415_v61  ;;  %v1942_v8 = vpop.f32.mrf.mxu1  ;;  %v2235_v62 = vsub.f32 1.5, %v2234_v48 }
 0x1c8   : > { %v3682_v57 = vpop.eup %3681  ;;  %v4257_v3 = vmax.f32 %v2091_v1, 1e-07  ;;  %v1943_v30 = vadd.f32 %v1942_v8, %v1918_v49  ;;  %v2165_v33 = vmul.f32 %v2164_v17, %v4194_v0  ;;  %v2134_v53 = vsel %vm2132_vm4, %v2133_v42, %v2131_v18 }
 0x1c9   : > { %v1989_v13 = vadd.f32 %v1988_v55, %v1965_v2  ;;  %v2268_v7 = vmul.f32 %v3682_v57, %v4239_v21  ;;  %v2236_v23 = vmul.f32 %v3674_v19, %v2235_v62  ;;  %v2008_v50 = vmul.f32 %v4054_v36, %v4054_v36 }
 0x1ca   : > { %v4265_v43 = vmul.f32 %v3680_v52, %v4257_v3  ;;  %3683 = vrsqrt.f32 %v4257_v3  ;;  %v2199_v47 = vsub.f32 1.5, %v2198_v29  ;;  %v2167_v49 = vsel %vm2166_vm6, %v4194_v0, %v2165_v33 }
 0x1cb   : > { %v2014_v24 = vmul.f32 %v1989_v13, %v1989_v13  ;;  %v2269_v25 = vmul.f32 %v3682_v57, %v2268_v7  ;;  %v2237_v6 = vmul.f32 %v2236_v23, %v4221_v44  ;;  %v2169_v8 = vand.u32 2147483648, %v4194_v0 }
 0x1cc   : > { %v2336_v36 = vmul.f32 %v4168_v22, %v4168_v22  ;;  %v2200_v23 = vmul.f32 %v4241_v54, %v2199_v47  ;;  %vm2310_vm11 = vcmp.eq.f32.partialorder %v4257_v3, inf  ;;  %vm2312_vm13 = vcmp.eq.f32.partialorder %v4257_v3, 0.0 }
 0x1cd   : > { %v2023_v12 = vadd.f32 %v2014_v24, %v2005_v4  ;;  %v2270_v19 = vmul.f32 0.5, %v2269_v25  ;;  %v2239_v40 = vsel %vm2238_vm3, %v4221_v44, %v2237_v6  ;;  %v2170_v17 = vsel %vm2168_vm7, %v2169_v8, %v2167_v49 }
 0x1ce   : > { %v1966_v26 = vpop.f32.mrf.mxu2  ;;  %v1921_v39 = vpop.f32.mrf.mxu0  ;;  %v2242_v61 = vsel %vm2240_vm5, %v2241_v37, %v2239_v40 }
 0x1cf   : > { %v1967_v34 = vadd.f32 %v1966_v26, %v1943_v30  ;;  %v1990_v27 = vpop.f32.mrf.mxu3  ;;  %v2271_v14 = vsub.f32 1.5, %v2270_v19  ;;  %v1945_v20 = vpop.f32.mrf.mxu1  ;;  %v2328_v52 = vsub.f32 %v2242_v61, %v2134_v53  ;;  %v2077_v1 = vsel %vm2066_vm0, %v2023_v12, 0.0 }
 0x1d0   : > { %v3684_v48 = vpop.eup %3683  ;;  %v1946_v15 = vadd.f32 %v1945_v20, %v1921_v39  ;;  %v4292_v4 = vmax.f32 %v2077_v1, 1e-07  ;;  %v2201_v26 = vmul.f32 %v2200_v23, %v4217_v38 }
 0x1d1   : > { %v1991_v2 = vadd.f32 %v1990_v27, %v1967_v34  ;;  %v2272_v44 = vmul.f32 %v3682_v57, %v2271_v14  ;;  %v2304_v55 = vmul.f32 %v3684_v48, %v4257_v3  ;;  %v2277_v57 = vand.u32 2147483648, %v4239_v21 }
 0x1d2   : > { %v2337_v7 = vmul.f32 %v2328_v52, %v2328_v52  ;;  %3685 = vrsqrt.f32 %v4292_v4  ;;  %v2011_v27 = vmul.f32 %v4060_v45, %v4060_v45  ;;  %v2203_v61 = vsel %vm2202_vm10, %v4217_v38, %v2201_v26 }
 0x1d3   : > { %v2017_v9 = vmul.f32 %v1991_v2, %v1991_v2  ;;  %v2273_v62 = vmul.f32 %v2272_v44, %v4239_v21  ;;  %v2305_v13 = vmul.f32 %v3684_v48, %v2304_v55  ;;  %v2205_v52 = vand.u32 2147483648, %v4217_v38 }
 0x1d4   : > { %v4298_v18 = vadd.f32 %v2337_v7, %v2336_v36  ;;  %v2032_v38 = vmul.f32 %v4062_v60, %v4062_v60 }
 0x1d5   : > { %v2275_v0 = vsel %vm2274_vm8, %v4239_v21, %v2273_v62  ;;  %v2026_v22 = vadd.f32 %v2017_v9, %v2008_v50  ;;  %v2306_v25 = vmul.f32 0.5, %v2305_v13  ;;  %v2206_v49 = vsel %vm2204_vm12, %v2205_v52, %v2203_v61 }
 0x1d6   : > { %v1969_v24 = vpop.f32.mrf.mxu2  ;;  %v2278_v42 = vsel %vm2276_vm9, %v2277_v57, %v2275_v0  ;;  %v1923_v12 = vpop.f32.mrf.mxu0 }
 0x1d7   : > { %v1970_v29 = vadd.f32 %v1969_v24, %v1946_v15  ;;  %v1993_v6 = vpop.f32.mrf.mxu3  ;;  %v4300_v30 = vsub.f32 %v2278_v42, %v2170_v17  ;;  %v1947_v37 = vpop.f32.mrf.mxu1  ;;  %v2307_v19 = vsub.f32 1.5, %v2306_v25  ;;  %v2080_v33 = vsel %vm2067_vm1, %v2026_v22, 0.0 }
 0x1d8   : > { %v4309_v39 = vmax.f32 %v2080_v33, 1e-07  ;;  %v1948_v53 = vadd.f32 %v1947_v37, %v1923_v12  ;;  %v4313_v50 = vpop.eup %3685 }
 0x1d9   : > { %v1994_v54 = vadd.f32 %v1993_v6, %v1970_v29  ;;  %v2308_v34 = vmul.f32 %v3684_v48, %v2307_v19  ;;  %v2313_v48 = vand.u32 2147483648, %v4257_v3  ;;  %v2136_v9 = vmul.f32 %v4313_v50, %v4292_v4 }
 0x1da   : > { %3687 = vrsqrt.f32 %v4309_v39  ;;  %vm2178_vm15 = vcmp.eq.f32.partialorder %v4309_v39, inf  ;;  %vm2180_vm3 = vcmp.eq.f32.partialorder %v4309_v39, 0.0 }
 0x1db   : > { %v2020_v40 = vmul.f32 %v1994_v54, %v1994_v54  ;;  %v2309_v14 = vmul.f32 %v2308_v34, %v4257_v3  ;;  %3689 = vrcp.f32 %v4292_v4  ;;  %v2137_v23 = vmul.f32 %v4313_v50, %v2136_v9 }
 0x1dc   : > { %3691 = vlog2.f32 %v4138_v56 }
 0x1dd   : > { %v2029_v20 = vadd.f32 %v2020_v40, %v2011_v27  ;;  %v2311_v2 = vsel %vm2310_vm11, %v4257_v3, %v2309_v14  ;;  %3693 = vlog2.f32 %v4248_v31  ;;  %v2138_v6 = vmul.f32 0.5, %v2137_v23 }
 0x1de   : > { %v1971_v47 = vpop.f32.mrf.mxu2  ;;  %v1926_v44 = vpop.f32.mrf.mxu0  ;;  %v2314_v8 = vsel %vm2312_vm13, %v2313_v48, %v2311_v2  ;;  %3695 = vlog2.f32 %v4155_v46  ;;  %v2035_v31 = vmul.f32 %v4068_v59, %v4068_v59 }
 0x1df   : > { %v1972_v45 = vadd.f32 %v1971_v47, %v1948_v53  ;;  %v1995_v1 = vpop.f32.mrf.mxu3  ;;  %v1950_v55 = vpop.f32.mrf.mxu1  ;;  %v4324_v15 = vsub.f32 %v2314_v8, %v2206_v49  ;;  %v2083_v62 = vsel %vm2068_vm2, %v2029_v20, 0.0  ;;  %v2139_v53 = vsub.f32 1.5, %v2138_v6 }
 0x1e0   : > { %v1951_v13 = vadd.f32 %v1950_v55, %v1926_v44  ;;  %v4332_v7 = vmax.f32 %v2083_v62, 1e-07  ;;  %v4335_v22 = vpop.eup %3687 }
 0x1e1   : > { %v1996_v36 = vadd.f32 %v1995_v1, %v1972_v45  ;;  %v3690_v56 = vpop.eup %3689  ;;  %v2172_v28 = vmul.f32 %v4335_v22, %v4309_v39  ;;  %v2038_v45 = vmul.f32 %v4070_v10, %v4070_v10 }
 0x1e2   : > { %3697 = vrsqrt.f32 %v4332_v7  ;;  %v3692_v12 = vpop.eup %3691  ;;  %vm2214_vm6 = vcmp.eq.f32.partialorder %v4332_v7, inf  ;;  %vm2216_vm7 = vcmp.eq.f32.partialorder %v4332_v7, 0.0 }
 0x1e3   : > { %v2041_v57 = vmul.f32 %v1996_v36, %v1996_v36  ;;  %v3694_v33 = vpop.eup %3693  ;;  %v2404_v27 = vmul.f32 0.6931472, %v3692_v12  ;;  %v2173_v20 = vmul.f32 %v4335_v22, %v2172_v28  ;;  %v2140_v36 = vmul.f32 %v4313_v50, %v2139_v53 }
 0x1e4   : > { %v3696_v61 = vpop.eup %3695  ;;  %v2406_v44 = vmul.f32 0.6931472, %v3694_v33 }
 0x1e5   : > { %v2050_v17 = vadd.f32 %v2041_v57, %v2032_v38  ;;  %v2418_v8 = vand.u32 2147483647, %v2404_v27  ;;  %v2174_v62 = vmul.f32 0.5, %v2173_v20 }
 0x1e6   : > { %v1974_v0 = vpop.f32.mrf.mxu2  ;;  %v1928_v37 = vpop.f32.mrf.mxu0 }
 0x1e7   : > { %v2086_v24 = vsel %vm2066_vm0, %v2050_v17, 0.0  ;;  %v1975_v42 = vadd.f32 %v1974_v0, %v1951_v13  ;;  %v1998_v25 = vpop.f32.mrf.mxu3  ;;  %v1952_v19 = vpop.f32.mrf.mxu1  ;;  %v2410_v13 = vmul.f32 0.6931472, %v3696_v61  ;;  %v2419_v17 = vand.u32 2147483647, %v2406_v44 }
 0x1e8   : > { %v4340_v60 = vmax.f32 %v2086_v24, 1e-07  ;;  %v1953_v34 = vadd.f32 %v1952_v19, %v1928_v37  ;;  %v4355_v52 = vpop.eup %3697  ;;  %vm2142_vm0 = vcmp.eq.f32.partialorder %v4292_v4, inf }
 0x1e9   : > { %v1999_v29 = vadd.f32 %v1998_v25, %v1975_v42  ;;  %v2208_v10 = vmul.f32 %v4355_v52, %v4332_v7  ;;  %v2141_v42 = vmul.f32 %v2140_v36, %v4292_v4 }
 0x1ea   : > { %v2390_v54 = vmul.f32 %v3690_v56, %v4340_v60  ;;  %3699 = vrsqrt.f32 %v4340_v60  ;;  %v2363_v46 = vadd.f32 %v4234_v5, %v4340_v60  ;;  %v2175_v56 = vsub.f32 1.5, %v2174_v62 }
 0x1eb   : > { %v2044_v26 = vmul.f32 %v1999_v29, %v1999_v29  ;;  %3701 = vrcp.f32 %v4309_v39  ;;  %v2209_v29 = vmul.f32 %v4355_v52, %v2208_v10  ;;  %vm2252_vm14 = vcmp.eq.f32.partialorder %v4340_v60, 0.0 }
 0x1ec   : > { %3703 = vlog2.f32 %v2390_v54  ;;  %v2364_v47 = vadd.f32 %v2363_v46, %v4130_v16  ;;  %v2176_v53 = vmul.f32 %v4335_v22, %v2175_v56 }
 0x1ed   : > { %v2053_v40 = vadd.f32 %v2044_v26, %v2035_v31  ;;  %3705 = vlog2.f32 %v4265_v43  ;;  %v2145_v26 = vand.u32 2147483648, %v4292_v4  ;;  %v2210_v61 = vmul.f32 0.5, %v2209_v29 }
 0x1ee   : > { %v1976_v14 = vpop.f32.mrf.mxu2  ;;  %v2365_v55 = vadd.f32 %v2364_v47, %v4239_v21  ;;  %v2177_v44 = vmul.f32 %v2176_v53, %v4309_v39 }
 0x1ef   : > { %v2089_v59 = vsel %vm2067_vm1, %v2053_v40, 0.0  ;;  %v1977_v48 = vadd.f32 %v1976_v14, %v1953_v34  ;;  %v2000_v2 = vpop.f32.mrf.mxu3  ;;  %vm2144_vm1 = vcmp.eq.f32.partialorder %v4292_v4, 0.0 }
 0x1f0   : > { %v3700_v5 = vpop.eup %3699  ;;  %v4362_v1 = vmax.f32 %v2089_v59, 1e-07  ;;  %v2253_v59 = vand.u32 2147483648, %v4340_v60 }
 0x1f1   : > { %v3702_v49 = vpop.eup %3701  ;;  %v2001_v16 = vadd.f32 %v2000_v2, %v1977_v48  ;;  %v2244_v41 = vmul.f32 %v3700_v5, %v4340_v60 }
 0x1f2   : > { %v3704_v9 = vpop.eup %3703  ;;  %v2393_v43 = vmul.f32 %v3702_v49, %v4362_v1  ;;  %3707 = vrsqrt.f32 %v4362_v1  ;;  %v2366_v50 = vadd.f32 %v2365_v55, %v4362_v1  ;;  %v2211_v55 = vsub.f32 1.5, %v2210_v61 }
 0x1f3   : > { %v2047_v38 = vmul.f32 %v2001_v16, %v2001_v16  ;;  %3709 = vrcp.f32 %v4332_v7  ;;  %v2402_v21 = vmul.f32 0.6931472, %v3704_v9  ;;  %v2245_v57 = vmul.f32 %v3700_v5, %v2244_v41  ;;  %v3706_v23 = vpop.eup %3705 }
 0x1f4   : > { %3711 = vlog2.f32 %v2393_v43  ;;  %v2367_v6 = vadd.f32 %v2366_v50, %v4149_v32  ;;  %v2412_v31 = vmul.f32 0.6931472, %v3706_v23  ;;  %v2143_v32 = vsel %vm2142_vm0, %v4292_v4, %v2141_v42 }
 0x1f5   : > { %v2056_v0 = vadd.f32 %v2047_v38, %v2038_v45  ;;  %v2417_v24 = vand.u32 2147483647, %v2402_v21  ;;  %v2246_v25 = vmul.f32 0.5, %v2245_v57  ;;  %v2146_v2 = vsel %vm2144_vm1, %v2145_v26, %v2143_v32 }
 0x1f6   : > { %v2368_v46 = vadd.f32 %v2367_v6, %v4257_v3  ;;  %v2421_v16 = vand.u32 2147483647, %v2410_v13  ;;  %v2422_v43 = vand.u32 2147483647, %v2412_v31  ;;  %v2179_v4 = vsel %vm2178_vm15, %v4309_v39, %v2177_v44 }
 0x1f7   : > { %v2092_v12 = vsel %vm2068_vm2, %v2056_v0, 0.0  ;;  %v2425_v37 = vadd.f32 %v4255_v35, %v2417_v24  ;;  %v2247_v19 = vsub.f32 1.5, %v2246_v25  ;;  %vm2250_vm2 = vcmp.eq.f32.partialorder %v4340_v60, inf }
 0x1f8   : > { %v3708_v54 = vpop.eup %3707  ;;  %v4381_v28 = vmax.f32 %v2092_v12, 1e-07  ;;  %v2212_v57 = vmul.f32 %v4355_v52, %v2211_v55  ;;  %v2339_v13 = vmul.f32 %v4187_v51, %v4187_v51  ;;  %v2181_v24 = vand.u32 2147483648, %v4309_v39 }
 0x1f9   : > { %v3710_v33 = vpop.eup %3709  ;;  %v2426_v40 = vadd.f32 %v2425_v37, %v2418_v8  ;;  %v2248_v34 = vmul.f32 %v3700_v5, %v2247_v19  ;;  %v2280_v58 = vmul.f32 %v3708_v54, %v4362_v1  ;;  %vm2286_vm4 = vcmp.eq.f32.partialorder %v4362_v1, inf }
 0x1fa   : > { %v3712_v27 = vpop.eup %3711  ;;  %v2396_v35 = vmul.f32 %v3710_v33, %v4381_v28  ;;  %3713 = vrsqrt.f32 %v4381_v28  ;;  %v4394_v48 = vadd.f32 %v2368_v46, %v4381_v28  ;;  %v2289_v42 = vand.u32 2147483648, %v4362_v1 }
 0x1fb   : > { %v2408_v14 = vmul.f32 0.6931472, %v3712_v27  ;;  %v2427_v20 = vadd.f32 %v2426_v40, %v2419_v17  ;;  %v2249_v47 = vmul.f32 %v2248_v34, %v4340_v60  ;;  %v2281_v3 = vmul.f32 %v3708_v54, %v2280_v58 }
 0x1fc   : > { %3715 = vlog2.f32 %v2396_v35  ;;  %vm2288_vm5 = vcmp.eq.f32.partialorder %v4362_v1, 0.0  ;;  %v2182_v51 = vsel %vm2180_vm3, %v2181_v24, %v2179_v4  ;;  %v2340_v12 = vmul.f32 %v4300_v30, %v4300_v30 }
 0x1fd   : > { %v2420_v5 = vand.u32 2147483647, %v2408_v14  ;;  %v2251_v45 = vsel %vm2250_vm2, %v4340_v60, %v2249_v47  ;;  %v2282_v22 = vmul.f32 0.5, %v2281_v3  ;;  %v2213_v39 = vmul.f32 %v2212_v57, %v4332_v7 }
 0x1fe   : > { %v2254_v49 = vsel %vm2252_vm14, %v2253_v59, %v2251_v45  ;;  %v2342_v40 = vmul.f32 %v4207_v11, %v4207_v11  ;;  %v2217_v32 = vand.u32 2147483648, %v4332_v7  ;;  %vm2322_vm8 = vcmp.eq.f32.partialorder %v4381_v28, inf }
 0x1ff   : > { %v2428_v8 = vadd.f32 %v2427_v20, %v2420_v5  ;;  %v2283_v36 = vsub.f32 1.5, %v2282_v22  ;;  %v2329_v41 = vsub.f32 %v2254_v49, %v2146_v2  ;;  %v2325_v34 = vand.u32 2147483648, %v4381_v28 }
 0x200   : > { %v3714_v9 = vpop.eup %3713  ;;  %vm2324_vm9 = vcmp.eq.f32.partialorder %v4381_v28, 0.0  ;;  %v2343_v27 = vmul.f32 %v4324_v15, %v4324_v15 }
 0x201   : > { %v2429_v62 = vadd.f32 %v2428_v8, %v2421_v16  ;;  %v2284_v10 = vmul.f32 %v3708_v54, %v2283_v36  ;;  %v2316_v60 = vmul.f32 %v3714_v9, %v4381_v28  ;;  %v2338_v38 = vmul.f32 %v2329_v41, %v2329_v41 }
 0x202   : > { %v3716_v21 = vpop.eup %3715 }
 0x203   : > { %v2414_v17 = vmul.f32 0.6931472, %v3716_v21  ;;  %v2430_v50 = vadd.f32 %v2429_v62, %v2422_v43  ;;  %v2285_v23 = vmul.f32 %v2284_v10, %v4362_v1  ;;  %v2317_v0 = vmul.f32 %v3714_v9, %v2316_v60 }
 0x204   : > { %v2346_v25 = vadd.f32 %v4298_v18, %v2338_v38  ;;  %v2443_v60 = vand.u32 127, %v2057_v63 }
 0x205   : > { %v2423_v56 = vand.u32 2147483647, %v2414_v17  ;;  %v2287_v29 = vsel %vm2286_vm4, %v4362_v1, %v2285_v23  ;;  %v2318_v52 = vmul.f32 0.5, %v2317_v0  ;;  %v2215_v1 = vsel %vm2214_vm6, %v4332_v7, %v2213_v39 }
 0x206   : > { %v2290_v6 = vsel %vm2288_vm5, %v2289_v42, %v2287_v29  ;;  %v2347_v37 = vadd.f32 %v2346_v25, %v2339_v13  ;;  %v2218_v53 = vsel %vm2216_vm7, %v2217_v32, %v2215_v1  ;;  %vm2444_vm10 = vcmp.eq.s32.totalorder %v2443_v60, 0 }
 0x207   : > { %v2431_v19 = vadd.f32 %v2430_v50, %v2423_v56  ;;  %v2319_v54 = vsub.f32 1.5, %v2318_v52  ;;  %v2332_v31 = vsub.f32 %v2290_v6, %v2182_v51  ;;  %vm2447_vm11 = vcmp.eq.s32.totalorder %v2443_v60, 1 }
 0x208   : > { %v2348_v26 = vadd.f32 %v2347_v37, %v2340_v12  ;;  %vm2451_vm12 = vcmp.eq.s32.totalorder %v2443_v60, 2 }
 0x209   : > { %2432 = vadd.xlane.f32.xlu1 %v2431_v19  ;;  %v2320_v18 = vmul.f32 %v3714_v9, %v2319_v54  ;;  %v2341_v46 = vmul.f32 %v2332_v31, %v2332_v31 }
 0x20b   : > { %v2321_v33 = vmul.f32 %v2320_v18, %v4381_v28  ;;  %v2349_v30 = vadd.f32 %v2348_v26, %v2341_v46 }
 0x20d   : > { %v2323_v58 = vsel %vm2322_vm8, %v4381_v28, %v2321_v33  ;;  %v2350_v35 = vadd.f32 %v2349_v30, %v2342_v40 }
 0x20e   : > { %v2326_v61 = vsel %vm2324_vm9, %v2325_v34, %v2323_v58 }
 0x20f   : > { %v2335_v11 = vsub.f32 %v2326_v61, %v2218_v53  ;;  %v2351_v14 = vadd.f32 %v2350_v35, %v2343_v27 }
 0x211   : > { %v2344_v20 = vmul.f32 %v2335_v11, %v2335_v11 }
 0x213   : > { %v2352_v47 = vadd.f32 %v2351_v14, %v2344_v20 }
 0x215   : > { %2353 = vadd.xlane.f32.xlu0 %v2352_v47 }
 0x21d   : > { %2370 = vadd.xlane.f32.xlu0 %v4394_v48 }
 0x27c   : > { %v2433_v7 = vpop.xlane.xlu1 %2432 }
 0x27d   : > { %v2434_v3 = vrot.slane %v2433_v7, 4 }
 0x27f   : > { %v2435_v22 = vadd.f32 %v2434_v3, %v2433_v7 }
 0x281   : > { %v2436_v44 = vrot.slane %v2435_v22, 2 }
 0x283   : > { %v2437_v36 = vadd.f32 %v2436_v44, %v2435_v22 }
 0x285   : > { %v2438_v9 = vrot.slane %v2437_v36, 1 }
 0x287   : > { %v2439_v10 = vadd.f32 %v2438_v9, %v2437_v36 }
 0x288   : > { %v2354_v59 = vpop.xlane.xlu0 %2353 }
 0x289   : > { %v2355_v5 = vrot.slane %v2354_v59, 4 }
 0x28b   : > { %v2356_v45 = vadd.f32 %v2355_v5, %v2354_v59 }
 0x28d   : > { %v2357_v28 = vrot.slane %v2356_v45, 2 }
 0x28f   : > { %v2358_v2 = vadd.f32 %v2357_v28, %v2356_v45 }
 0x290   : > { %v2371_v15 = vpop.xlane.xlu0 %2370 }
 0x291   : > { %v2372_v55 = vrot.slane %v2371_v15, 4  ;;  %v2359_v49 = vrot.slane %v2358_v2, 1 }
 0x293   : > { %v2373_v16 = vadd.f32 %v2372_v55, %v2371_v15  ;;  %v2360_v8 = vadd.f32 %v2359_v49, %v2358_v2 }
 0x295   : > { %v2374_v41 = vrot.slane %v2373_v16, 2  ;;  %3587 = vpush %v2360_v8 }
 0x297   : > { %v2375_v48 = vadd.f32 %v2374_v41, %v2373_v16 }
 0x299   : > { %v2376_v43 = vrot.slane %v2375_v48, 1 }
 0x29b   : > { %v2377_v62 = vadd.f32 %v2376_v43, %v2375_v48 }
 0x29d   : > { %3589 = vpush %v2377_v62 }
 0x29e   : > { %3591 = vpush %v2439_v10 }
 0x2c6   : > { %s3588_s22 = spop %3587 }
 0x2c7   : > { %v2445_v38 = vstv %s3588_s22 }
 0x2c8   : > { %v2446_v4 = vsel %vm2444_vm10, %v2445_v38, 0.0 }
 0x2ce   : > { %s3590_s25 = spop %3589 }
 0x2cf   : > { %v2448_v21 = vstv %s3590_s25  ;;  %s3592_s29 = spop %3591 }
 0x2d0   : > { %v2449_v57 = vsel %vm2447_vm11, %v2448_v21, 0.0  ;;  %s2441_s30 = smul.f32 0.5, %s3592_s29 }
 0x2d1   : > { %v2450_v63 = vadd.f32 %v2449_v57, %v2446_v4 }
 0x2d2   : > { %v2452_v13 = vstv %s2441_s30 }
 0x2d3   : > { %v2453_v17 = vsel %vm2451_vm12, %v2452_v13, 0.0 }
 0x2d4   : > { %v2454_v50 = vadd.f32 %v2453_v17, %v2450_v63 }
 0x2d6   : > { %2455 = vst [vmem:[%s201_s3] sm:$0xff] %v2454_v50 }
 0x2d7   : > { %3774 = shalt.err (!%p3771_p9)
}
 0x2d8   : > { %3597 = dma.vmem_to_hbm [thread:$0]  (%p3876_p6), %s2470_s4, 128, %s2472_s13, %s2457_s5  }
 0x2d9 PF: > { %s2483_s14 = sand.u32 1, %s3801_s9   ;;  %p3604_p11 = pnand %p2552_p1, %p3882_p10 }
 0x2da   : > { %s2484_s23 = scalar_lea.sflag [#allocation5], %s2483_s14 }
 0x2db   : > { %p3605_p12 = pneg %p3604_p11 }
 0x2dd   : > { %3796 = dma.done.wait (%p3605_p12), %s2484_s23, 128  }
 0x2de   : > { %3798 = vsyncadd (%p3605_p12), %s2484_s23, 4294967168  ;;  %p13_p13 = scmp.ge.s32.totalorder %s3858_s15, 4   ;;  %s4474_s9 = smov %s3805_s10 }
 0x2df   : > { %s4475_s10 = smov %s3809_s11  ;;  %s4476_s11 = smov %s3870_s18 }
 0x2e0   : > { %s4477_s12 = smov %s3858_s15  ;;  %15 = sbr.rel (!%p13_p13) target bundleno = 4 (0x4), region = 96 }
 0x2e5   :  { %2490 = vsyncpa [#allocation4], 1 }
 0x2e6   :  { %2492 = vsyncpa [#allocation4 + $0x1], 1 }
 0x2e7   :  { %2493 = vsyncpa [#allocation5], 1 }
 0x2e8   :  { %2495 = vsyncpa [#allocation5 + $0x1], 1 }

// kernel: tpu_custom_call.1
= control target key start
LH: loop header
LB: loop body
LE: loop exit
PB: predicated region body
PF: predicated region fallthrough
CT: control target
= control target key end

     0   :  { %7 = vsyncpa [#allocation4], 0  ;;  %s4467_s0 = inlined_call_operand.vmem [shape: bf16[2,42,512], index: 0, kind: input, shape index: {}]   ;;  %s4468_s1 = inlined_call_operand.hbm [shape: bf16[512,768], index: 1, kind: input, shape index: {}]   ;;  %s4469_s2 = inlined_call_operand.hbm [shape: f32[2,8,128], index: 2, kind: output, shape index: {}]  }
   0x1   :  { %8 = vsyncpa [#allocation5], 0 }
   0x2   :  { %10 = vsyncpa [#allocation5 + $0x1], 0  ;;  %s3833_s9 = smov 0   ;;  %s3835_s10 = smov 0  }
   0x3   :  { %s3837_s11 = smov 0   ;;  %s3839_s12 = smov 0  }
   0x4 LB: > { %s3854_s13 = sadd.s32 4294967295, %s3813_s12   ;;  %s2549_s14 = sadd.s32 4294967294, %s3813_s12   ;;  %s3813_s12 = sphi %s3839_s12, %s4477_s12   ;;  %s3809_s11 = sphi %s3837_s11, %s4476_s11   ;;  %s3805_s10 = sphi %s3835_s10, %s4475_s10   ;;  %s3801_s9 = sphi %s3833_s9, %s4474_s9  }
   0x5   : > { %s3858_s15 = sadd.s32 1, %s3813_s12   ;;  %s23_s16 = sadd.s32 1, %s3809_s11 }
   0x6   : > { %s20_s17 = ssub.s32 %s3813_s12, %s3858_s15  ;;  %p30_p0 = scmp.ne.s32.totalorder %s3809_s11, %s3805_s10 }
   0x7   : > { %p21_p1 = scmp.eq.s32.totalorder %s20_s17, 0  ;;  %p31_p2 = scmp.eq.s32.totalorder %s3813_s12, 0 }
   0x8   : > { %p81_p3 = scmp.eq.s32.totalorder %s3854_s13, 1  ;;  %p86_p4 = scmp.ne.s32.totalorder %s3805_s10, %s3801_s9 }
   0x9   : > { %s3870_s18 = scalar_select %p21_p1, %s3809_s11, %s23_s16  }
   0xa   : > { %p3872_p5 = por %p31_p2, %p30_p0  ;;  %p3876_p6 = por %p81_p3, %p30_p0 }
   0xb   : > { %p87_p7 = scmp.eq.s32.totalorder %s2549_s14, 1  ;;  %p2550_p8 = scmp.ge.s32.totalorder %s3813_s12, 1 }
   0xc   : > { %p94_p9 = scmp.lt.s32.totalorder %s3813_s12, 3  ;;  %p3607_p11 = scmp.eq.s32.totalorder %s3854_s13, 0 }
   0xd   : > { %p3882_p10 = por %p87_p7, %p86_p4  ;;  %s105_s25 = sshll.u32 %s4468_s1, 4  ;;  %s106_s25 = int_to_ptr.hbm [resolvable:$true] %s105_s25 }
   0xe   : > { %p3887_p12 = pnand %p2550_p8, %p94_p9  ;;  %s3815_s26 = smov [#allocation3]  }
   0xf   : > { %s107_s27 = sshll.u32 %s3815_s26, 4  ;;  %s3816_s28 = smov 384   ;;  %s108_s27 = int_to_ptr.vmem [resolvable:$true] %s107_s27 }
  0x10   : > { %p3599_p13 = pneg %p3887_p12  ;;  %s3817_s29 = smov 24  }
  0x11   : > { %p2552_p1 = scmp.ge.s32.totalorder %s3813_s12, 2 }
  0x12   : > { %p3600_p0 = pnand %p3607_p11, %p3599_p13 }
  0x13   : > { %117 = sbr.rel (%p2552_p1) target bundleno = 41 (0x29), region = 20 }
  0x14   : > { %3602 = dma.hbm_to_vmem [thread:$0]  (!%p3600_p0), %s106_s25, 24576, %s108_s27, [#allocation4], %s3816_s28, %s3816_s28, %s3817_s29  }
  0x18   : > { %120 = sbr.rel (!%p3872_p5) target bundleno = 41 (0x29), region = 24  ;;  %s122_s30 = sand.u32 (%p3872_p5), 1, %s3809_s11  }
  0x19   : > { %s3584_s3 = smul.u32 (%p3872_p5), 48, %s3813_s12 }
  0x1a   : > { %s3585_s4 = smul.u32 (%p3872_p5), 96, %s122_s30 }
  0x1b   : > { %s128_s7 = scalar_lea.vmem (%p3872_p5), %s4467_s0, %s3584_s3 }
  0x1c   : > { %v141_v0 = vld [vmem:[%s128_s7] sm:$0xff] (%p3872_p5)  ;;  %v143_v1 = vld [vmem:[%s128_s7 + $0x8] sm:$0xff] (%p3872_p5)  ;;  %v145_v2 = vld [vmem:[%s128_s7 + $0x10] sm:$0xff] (%p3872_p5)  ;;  %s124_s8 = scalar_lea.vmem (%p3872_p5), [#allocation2], %s3585_s4 }
  0x1d   : > { %142 = vst [vmem:[%s124_s8] sm:$0xff] %v141_v0  ;;  %v147_v3 = vld [vmem:[%s128_s7 + $0x18] sm:$0xff]  ;;  %v149_v4 = vld [vmem:[%s128_s7 + $0x20] sm:$0xff]  ;;  %v151_v5 = vld [vmem:[%s128_s7 + $0x28] sm:$0xff] }
  0x1e   : > { %144 = vst [vmem:[%s124_s8 + $0x8] sm:$0xff] %v143_v1  ;;  %v153_v6 = vld [vmem:[%s128_s7 + $0x60] sm:$0xff]  ;;  %v155_v7 = vld [vmem:[%s128_s7 + $0x68] sm:$0xff]  ;;  %v157_v8 = vld [vmem:[%s128_s7 + $0x70] sm:$0xff] }
  0x1f   : > { %146 = vst [vmem:[%s124_s8 + $0x10] sm:$0xff] %v145_v2  ;;  %v159_v9 = vld [vmem:[%s128_s7 + $0x78] sm:$0xff]  ;;  %v161_v10 = vld [vmem:[%s128_s7 + $0x80] sm:$0xff]  ;;  %v163_v11 = vld [vmem:[%s128_s7 + $0x88] sm:$0xff] }
  0x20   : > { %148 = vst [vmem:[%s124_s8 + $0x18] sm:$0xff] %v147_v3 }
  0x21   : > { %150 = vst [vmem:[%s124_s8 + $0x20] sm:$0xff] %v149_v4 }
  0x22   : > { %152 = vst [vmem:[%s124_s8 + $0x28] sm:$0xff] %v151_v5 }
  0x23   : > { %154 = vst [vmem:[%s124_s8 + $0x30] sm:$0xff] %v153_v6 }
  0x24   : > { %156 = vst [vmem:[%s124_s8 + $0x38] sm:$0xff] %v155_v7 }
  0x25   : > { %158 = vst [vmem:[%s124_s8 + $0x40] sm:$0xff] %v157_v8 }
  0x26   : > { %160 = vst [vmem:[%s124_s8 + $0x48] sm:$0xff] %v159_v9 }
  0x27   : > { %162 = vst [vmem:[%s124_s8 + $0x50] sm:$0xff] %v161_v10 }
  0x28   : > { %164 = vst [vmem:[%s124_s8 + $0x58] sm:$0xff] %v163_v11 }
  0x29 PF: > { %173 = sbr.rel (%p3887_p12) target bundleno = 729 (0x2d9), region = 47  ;;  %s3911_s14 = sand.u32 (!%p3887_p12), 1, %s3805_s10  }
  0x2a   : > { %s3586_s16 = smul.u32 (!%p3887_p12), 96, %s3911_s14 }
  0x2c   : > { %s3914_s17 = scalar_lea.vmem (!%p3887_p12), [#allocation2], %s3586_s16 }
  0x2e   : > { %3792 = dma.done.wait (%p3607_p11), [#allocation4], 24576  }
  0x2f   : > { %3794 = vsyncadd (%p3607_p11), [#allocation4], 4294942720  ;;  %v2776_v12 = vld [vmem:[#allocation3 + $0x150] sm:$0xf]  ;;  %v3437_v13 = vld [vmem:[#allocation3 + $0x164] sm:$0xf0] }
  0x30   : > { %v2968_v14 = vld [vmem:[#allocation3 + $0x2d0] sm:$0xf]  ;;  %v2777_v15 = vor.u32 %v3437_v13, %v2776_v12  ;;  %v3485_v16 = vld [vmem:[#allocation3 + $0x2e4] sm:$0xf0]  ;;  %v2752_v23 = vld [vmem:[#allocation3 + $0x120] sm:$0xf] }
  0x31   : > { %v3160_v17 = vld [vmem:[#allocation3 + $0x450] sm:$0xf]  ;;  %v3533_v18 = vld [vmem:[#allocation3 + $0x464] sm:$0xf0]  ;;  %v2969_v19 = vor.u32 %v3485_v16, %v2968_v14  ;;  %v3431_v25 = vld [vmem:[#allocation3 + $0x134] sm:$0xf0] }
  0x32   : > { %v3161_v20 = vor.u32 %v3533_v18, %v3160_v17  ;;  %v3352_v21 = vld [vmem:[#allocation3 + $0x5d0] sm:$0xf]  ;;  %v3581_v22 = vld [vmem:[#allocation3 + $0x5e4] sm:$0xf0]  ;;  %1427 = vmatpush.bf16.msra.mxu0 %v2777_v15  ;;  %v2944_v26 = vld [vmem:[#allocation3 + $0x2a0] sm:$0xf]  ;;  %v2753_v28 = vor.u32 %v3431_v25, %v2752_v23 }
  0x33   : > { %v3353_v24 = vor.u32 %v3581_v22, %v3352_v21  ;;  %v3479_v27 = vld [vmem:[#allocation3 + $0x2b4] sm:$0xf0]  ;;  %1451 = vmatpush.bf16.msra.mxu1 %v2969_v19  ;;  %v3136_v30 = vld [vmem:[#allocation3 + $0x420] sm:$0xf]  ;;  %v2728_v35 = vld [vmem:[#allocation3 + $0xf0] sm:$0xf] }
  0x34   : > { %1475 = vmatpush.bf16.msra.mxu2 %v3161_v20  ;;  %v2945_v29 = vor.u32 %v3479_v27, %v2944_v26  ;;  %v3527_v31 = vld [vmem:[#allocation3 + $0x434] sm:$0xf0]  ;;  %v3328_v32 = vld [vmem:[#allocation3 + $0x5a0] sm:$0xf]  ;;  %v3425_v36 = vld [vmem:[#allocation3 + $0x104] sm:$0xf0] }
  0x35   : > { %1499 = vmatpush.bf16.msra.mxu3 %v3353_v24  ;;  %v3137_v33 = vor.u32 %v3527_v31, %v3136_v30  ;;  %v3575_v34 = vld [vmem:[#allocation3 + $0x5b4] sm:$0xf0]  ;;  %v2920_v38 = vld [vmem:[#allocation3 + $0x270] sm:$0xf]  ;;  %v3473_v39 = vld [vmem:[#allocation3 + $0x284] sm:$0xf0]  ;;  %v2729_v41 = vor.u32 %v3425_v36, %v2728_v35 }
  0x36   : > { %v3329_v37 = vor.u32 %v3575_v34, %v3328_v32  ;;  %v3112_v40 = vld [vmem:[#allocation3 + $0x3f0] sm:$0xf]  ;;  %1428 = vmatpush.bf16.msra.mxu0 %v2753_v28  ;;  %v3521_v42 = vld [vmem:[#allocation3 + $0x404] sm:$0xf0]  ;;  %v2921_v45 = vor.u32 %v3473_v39, %v2920_v38  ;;  %v2704_v47 = vld [vmem:[#allocation3 + $0xc0] sm:$0xf] }
  0x37   : > { %v3304_v43 = vld [vmem:[#allocation3 + $0x570] sm:$0xf]  ;;  %v3569_v44 = vld [vmem:[#allocation3 + $0x584] sm:$0xf0]  ;;  %1452 = vmatpush.bf16.msra.mxu1 %v2945_v29  ;;  %v3113_v46 = vor.u32 %v3521_v42, %v3112_v40  ;;  %v3419_v48 = vld [vmem:[#allocation3 + $0xd4] sm:$0xf0] }
  0x38   : > { %1476 = vmatpush.bf16.msra.mxu2 %v3137_v33  ;;  %v2896_v49 = vld [vmem:[#allocation3 + $0x240] sm:$0xf]  ;;  %v3305_v50 = vor.u32 %v3569_v44, %v3304_v43  ;;  %v3467_v51 = vld [vmem:[#allocation3 + $0x254] sm:$0xf0]  ;;  %v2705_v56 = vor.u32 %v3419_v48, %v2704_v47  ;;  %v2680_v59 = vld [vmem:[#allocation3 + $0x90] sm:$0xf] }
  0x39   : > { %1500 = vmatpush.bf16.msra.mxu3 %v3329_v37  ;;  %v3088_v52 = vld [vmem:[#allocation3 + $0x3c0] sm:$0xf]  ;;  %v3515_v53 = vld [vmem:[#allocation3 + $0x3d4] sm:$0xf0]  ;;  %v2897_v57 = vor.u32 %v3467_v51, %v2896_v49  ;;  %v3413_v60 = vld [vmem:[#allocation3 + $0xa4] sm:$0xf0] }
  0x3a   : > { %v3280_v54 = vld [vmem:[#allocation3 + $0x540] sm:$0xf]  ;;  %v3563_v55 = vld [vmem:[#allocation3 + $0x554] sm:$0xf0]  ;;  %1429 = vmatpush.bf16.msra.mxu0 %v2729_v41  ;;  %v3089_v58 = vor.u32 %v3515_v53, %v3088_v52  ;;  %v2872_v61 = vld [vmem:[#allocation3 + $0x210] sm:$0xf]  ;;  %v2681_v4 = vor.u32 %v3413_v60, %v2680_v59 }
  0x3b   : > { %1453 = vmatpush.bf16.msra.mxu1 %v2921_v45  ;;  %v3281_v62 = vor.u32 %v3563_v55, %v3280_v54  ;;  %v3461_v63 = vld [vmem:[#allocation3 + $0x224] sm:$0xf0]  ;;  %v3064_v0 = vld [vmem:[#allocation3 + $0x390] sm:$0xf]  ;;  %v2656_v7 = vld [vmem:[#allocation3 + $0x60] sm:$0xf] }
  0x3c   : > { %1477 = vmatpush.bf16.msra.mxu2 %v3113_v46  ;;  %v3509_v1 = vld [vmem:[#allocation3 + $0x3a4] sm:$0xf0]  ;;  %v3256_v2 = vld [vmem:[#allocation3 + $0x510] sm:$0xf]  ;;  %v2873_v5 = vor.u32 %v3461_v63, %v2872_v61  ;;  %v3407_v8 = vld [vmem:[#allocation3 + $0x74] sm:$0xf0] }
  0x3d   : > { %1501 = vmatpush.bf16.msra.mxu3 %v3305_v50  ;;  %v3557_v3 = vld [vmem:[#allocation3 + $0x524] sm:$0xf0]  ;;  %v3065_v6 = vor.u32 %v3509_v1, %v3064_v0  ;;  %v2848_v9 = vld [vmem:[#allocation3 + $0x1e0] sm:$0xf]  ;;  %v3455_v11 = vld [vmem:[#allocation3 + $0x1f4] sm:$0xf0]  ;;  %v2657_v16 = vor.u32 %v3407_v8, %v2656_v7 }
  0x3e   : > { %1430 = vmatpush.bf16.msra.mxu0 %v2705_v56  ;;  %v3257_v10 = vor.u32 %v3557_v3, %v3256_v2  ;;  %v3040_v12 = vld [vmem:[#allocation3 + $0x360] sm:$0xf]  ;;  %v3503_v13 = vld [vmem:[#allocation3 + $0x374] sm:$0xf0]  ;;  %v2849_v17 = vor.u32 %v3455_v11, %v2848_v9  ;;  %v2632_v19 = vld [vmem:[#allocation3 + $0x30] sm:$0xf] }
  0x3f   : > { %1454 = vmatpush.bf16.msra.mxu1 %v2897_v57  ;;  %v3232_v14 = vld [vmem:[#allocation3 + $0x4e0] sm:$0xf]  ;;  %v3551_v15 = vld [vmem:[#allocation3 + $0x4f4] sm:$0xf0]  ;;  %v3041_v18 = vor.u32 %v3503_v13, %v3040_v12  ;;  %v3401_v20 = vld [vmem:[#allocation3 + $0x44] sm:$0xf0] }
  0x40   : > { %1478 = vmatpush.bf16.msra.mxu2 %v3089_v58  ;;  %v2824_v21 = vld [vmem:[#allocation3 + $0x1b0] sm:$0xf]  ;;  %v3233_v22 = vor.u32 %v3551_v15, %v3232_v14  ;;  %v3449_v23 = vld [vmem:[#allocation3 + $0x1c4] sm:$0xf0]  ;;  %v2608_v28 = vld [vmem:[#allocation3] sm:$0xf]  ;;  %v2633_v29 = vor.u32 %v3401_v20, %v2632_v19 }
  0x41   : > { %1502 = vmatpush.bf16.msra.mxu3 %v3281_v62  ;;  %v3016_v24 = vld [vmem:[#allocation3 + $0x330] sm:$0xf]  ;;  %v3497_v25 = vld [vmem:[#allocation3 + $0x344] sm:$0xf0]  ;;  %v3395_v30 = vld [vmem:[#allocation3 + $0x14] sm:$0xf0]  ;;  %v2825_v33 = vor.u32 %v3449_v23, %v2824_v21 }
  0x42   : > { %1431 = vmatpush.bf16.msra.mxu0 %v2681_v4  ;;  %v3208_v26 = vld [vmem:[#allocation3 + $0x4b0] sm:$0xf]  ;;  %v3545_v27 = vld [vmem:[#allocation3 + $0x4c4] sm:$0xf0]  ;;  %v2800_v31 = vld [vmem:[#allocation3 + $0x180] sm:$0xf]  ;;  %v3017_v34 = vor.u32 %v3497_v25, %v3016_v24  ;;  %v2609_v46 = vor.u32 %v3395_v30, %v2608_v28 }
  0x43   : > { %1455 = vmatpush.bf16.msra.mxu1 %v2873_v5  ;;  %v3443_v32 = vld [vmem:[#allocation3 + $0x194] sm:$0xf0]  ;;  %v2992_v35 = vld [vmem:[#allocation3 + $0x300] sm:$0xf]  ;;  %v3209_v38 = vor.u32 %v3545_v27, %v3208_v26  ;;  %v3382_v41 = vld [vmem:[%s3914_s17 + $0xc] sm:$0xf0] }
  0x44   : > { %1479 = vmatpush.bf16.msra.mxu2 %v3065_v6  ;;  %v3491_v36 = vld [vmem:[#allocation3 + $0x314] sm:$0xf0]  ;;  %v3184_v37 = vld [vmem:[#allocation3 + $0x480] sm:$0xf]  ;;  %v3380_v42 = vld [vmem:[%s3914_s17 + $0x4] sm:$0xf]  ;;  %v2801_v50 = vor.u32 %v3443_v32, %v2800_v31 }
  0x45   : > { %1503 = vmatpush.bf16.msra.mxu3 %v3257_v10  ;;  %v3539_v39 = vld [vmem:[#allocation3 + $0x494] sm:$0xf0]  ;;  %v2560_v40 = vld [vmem:[%s3914_s17] sm:$0xf]  ;;  %v2562_v43 = vld [vmem:[%s3914_s17 + $0x10] sm:$0xf0]  ;;  %v2993_v51 = vor.u32 %v3491_v36, %v2992_v35 }
  0x46   : > { %1432 = vmatpush.bf16.msra.mxu0 %v2657_v16  ;;  %v3530_v44 = vld [vmem:[#allocation3 + $0x454] sm:$0xf]  ;;  %v3162_v45 = vld [vmem:[#allocation3 + $0x468] sm:$0xf0]  ;;  %v2568_v47 = vld [vmem:[%s3914_s17 + $0x8] sm:$0xf]  ;;  %v3185_v55 = vor.u32 %v3539_v39, %v3184_v37  ;;  %v3928_v60 = vor.u32 %v3382_v41, %v2560_v40  ;;  %v3930_v1 = vor.u32 %v3380_v42, %v2562_v43 }
  0x47   : > { %1456 = vmatpush.bf16.msra.mxu1 %v2849_v17  ;;  %v3578_v48 = vld [vmem:[#allocation3 + $0x5d4] sm:$0xf]  ;;  %v3354_v49 = vld [vmem:[#allocation3 + $0x5e8] sm:$0xf0]  ;;  %v3383_v52 = vld [vmem:[%s3914_s17 + $0x14] sm:$0xf0]  ;;  %v3165_v56 = vor.u32 %v3530_v44, %v3162_v45 }
  0x48   : > { %1480 = vmatpush.bf16.msra.mxu2 %v3041_v18  ;;  %v3381_v53 = vld [vmem:[%s3914_s17 + $0xc] sm:$0xf]  ;;  %v2570_v54 = vld [vmem:[%s3914_s17 + $0x18] sm:$0xf0]  ;;  %v3434_v57 = vld [vmem:[#allocation3 + $0x154] sm:$0xf]  ;;  %v3357_v61 = vor.u32 %v3578_v48, %v3354_v49  ;;  %v3932_v2 = vor.u32 %v3383_v52, %v2568_v47 }
  0x49   : > { %1504 = vmatpush.bf16.msra.mxu3 %v3233_v22  ;;  %v2778_v58 = vld [vmem:[#allocation3 + $0x168] sm:$0xf0]  ;;  %v3482_v59 = vld [vmem:[#allocation3 + $0x2d4] sm:$0xf]  ;;  %v3524_v63 = vld [vmem:[#allocation3 + $0x424] sm:$0xf]  ;;  %v3934_v5 = vor.u32 %v3381_v53, %v2570_v54 }
  0x4a   : > { %1433 = vmatpush.bf16.msra.mxu0 %v2633_v29  ;;  %v2970_v62 = vld [vmem:[#allocation3 + $0x2e8] sm:$0xf0]  ;;  %v3138_v0 = vld [vmem:[#allocation3 + $0x438] sm:$0xf0]  ;;  %v3572_v3 = vld [vmem:[#allocation3 + $0x5a4] sm:$0xf]  ;;  %v2781_v6 = vor.u32 %v3434_v57, %v2778_v58 }
  0x4b   : > { %1457 = vmatpush.bf16.msra.mxu1 %v2825_v33  ;;  %v3330_v4 = vld [vmem:[#allocation3 + $0x5b8] sm:$0xf0]  ;;  %v2973_v7 = vor.u32 %v3482_v59, %v2970_v62  ;;  %v3141_v8 = vor.u32 %v3524_v63, %v3138_v0  ;;  %v3428_v9 = vld [vmem:[#allocation3 + $0x124] sm:$0xf]  ;;  %v3518_v14 = vld [vmem:[#allocation3 + $0x3f4] sm:$0xf] }
  0x4c   : > { %1481 = vmatpush.bf16.msra.mxu2 %v3017_v34  ;;  %v2754_v10 = vld [vmem:[#allocation3 + $0x138] sm:$0xf0]  ;;  %v3476_v11 = vld [vmem:[#allocation3 + $0x2a4] sm:$0xf]  ;;  %v3333_v12 = vor.u32 %v3572_v3, %v3330_v4  ;;  %v3114_v15 = vld [vmem:[#allocation3 + $0x408] sm:$0xf0] }
  0x4d   : > { %1505 = vmatpush.bf16.msra.mxu3 %v3209_v38  ;;  %v2946_v13 = vld [vmem:[#allocation3 + $0x2b8] sm:$0xf0]  ;;  %v3566_v16 = vld [vmem:[#allocation3 + $0x574] sm:$0xf]  ;;  %v3306_v17 = vld [vmem:[#allocation3 + $0x588] sm:$0xf0]  ;;  %v2757_v18 = vor.u32 %v3428_v9, %v2754_v10  ;;  %v3117_v20 = vor.u32 %v3518_v14, %v3114_v15 }
  0x4e   : > { %1434 = vmatpush.bf16.msra.mxu0 %v2609_v46  ;;  %v2949_v19 = vor.u32 %v3476_v11, %v2946_v13  ;;  %v3422_v21 = vld [vmem:[#allocation3 + $0xf4] sm:$0xf]  ;;  %v2730_v22 = vld [vmem:[#allocation3 + $0x108] sm:$0xf0]  ;;  %v3309_v24 = vor.u32 %v3566_v16, %v3306_v17  ;;  %v3512_v26 = vld [vmem:[#allocation3 + $0x3c4] sm:$0xf] }
  0x4f   : > { %1458 = vmatpush.bf16.msra.mxu1 %v2801_v50  ;;  %v3470_v23 = vld [vmem:[#allocation3 + $0x274] sm:$0xf]  ;;  %v2922_v25 = vld [vmem:[#allocation3 + $0x288] sm:$0xf0]  ;;  %v3090_v27 = vld [vmem:[#allocation3 + $0x3d8] sm:$0xf0]  ;;  %v2733_v30 = vor.u32 %v3422_v21, %v2730_v22 }
  0x50   : > { %1482 = vmatpush.bf16.msra.mxu2 %v2993_v51  ;;  %v3560_v28 = vld [vmem:[#allocation3 + $0x544] sm:$0xf]  ;;  %v3282_v29 = vld [vmem:[#allocation3 + $0x558] sm:$0xf0]  ;;  %v2576_v31 = vld [vmem:[%s3914_s17 + $0x20] sm:$0xf]  ;;  %v2925_v33 = vor.u32 %v3470_v23, %v2922_v25  ;;  %v3093_v34 = vor.u32 %v3512_v26, %v3090_v27 }
  0x51   : > { %1506 = vmatpush.bf16.msra.mxu3 %v3185_v55  ;;  %1435 = vmatmul.bf16.vlgmr.msra.gmra.mxu0 %v3928_v60  ;;  %v3386_v32 = vld [vmem:[%s3914_s17 + $0x2c] sm:$0xf0]  ;;  %v3416_v35 = vld [vmem:[#allocation3 + $0xc4] sm:$0xf]  ;;  %v2706_v36 = vld [vmem:[#allocation3 + $0xd8] sm:$0xf0]  ;;  %v3285_v40 = vor.u32 %v3560_v28, %v3282_v29 }
  0x52   : > { %1459 = vmatmul.bf16.vlgmr.msra.gmra.mxu1 %v3930_v1  ;;  %1523 = vmatpush.bf16.msrb.mxu0 %v2781_v6  ;;  %v3464_v37 = vld [vmem:[#allocation3 + $0x244] sm:$0xf]  ;;  %v2578_v39 = vld [vmem:[%s3914_s17 + $0x30] sm:$0xf0]  ;;  %v2898_v41 = vld [vmem:[#allocation3 + $0x258] sm:$0xf0]  ;;  %v2709_v50 = vor.u32 %v3416_v35, %v2706_v36 }
  0x53   : > { %1483 = vmatmul.bf16.vlgmr.msra.gmra.mxu2 %v3932_v2  ;;  %1547 = vmatpush.bf16.msrb.mxu1 %v2973_v7  ;;  %v3384_v38 = vld [vmem:[%s3914_s17 + $0x24] sm:$0xf]  ;;  %v3506_v42 = vld [vmem:[#allocation3 + $0x394] sm:$0xf]  ;;  %v3066_v43 = vld [vmem:[#allocation3 + $0x3a8] sm:$0xf0]  ;;  %v2901_v51 = vor.u32 %v3464_v37, %v2898_v41 }
  0x54   : > { %1571 = vmatpush.bf16.msrb.mxu2 %v3165_v56  ;;  %1507 = vmatmul.bf16.vlgmr.msra.gmra.mxu3 %v3934_v5  ;;  %v2584_v44 = vld [vmem:[%s3914_s17 + $0x28] sm:$0xf]  ;;  %v3554_v45 = vld [vmem:[#allocation3 + $0x514] sm:$0xf]  ;;  %v3258_v46 = vld [vmem:[#allocation3 + $0x528] sm:$0xf0]  ;;  %v3069_v52 = vor.u32 %v3506_v42, %v3066_v43  ;;  %v3948_v56 = vor.u32 %v3386_v32, %v2576_v31  ;;  %v3950_v62 = vor.u32 %v3384_v38, %v2578_v39 }
  0x55   : > { %1595 = vmatpush.bf16.msrb.mxu3 %v3357_v61  ;;  %v3387_v47 = vld [vmem:[%s3914_s17 + $0x34] sm:$0xf0]  ;;  %v3385_v48 = vld [vmem:[%s3914_s17 + $0x2c] sm:$0xf]  ;;  %v2586_v49 = vld [vmem:[%s3914_s17 + $0x38] sm:$0xf0]  ;;  %v3261_v57 = vor.u32 %v3554_v45, %v3258_v46 }
  0x56   : > { %1524 = vmatpush.bf16.msrb.mxu0 %v2757_v18  ;;  %v3410_v53 = vld [vmem:[#allocation3 + $0x94] sm:$0xf]  ;;  %v2682_v54 = vld [vmem:[#allocation3 + $0xa8] sm:$0xf0]  ;;  %v3500_v59 = vld [vmem:[#allocation3 + $0x364] sm:$0xf]  ;;  %v3952_v63 = vor.u32 %v3387_v47, %v2584_v44  ;;  %v3954_v4 = vor.u32 %v3385_v48, %v2586_v49 }
  0x57   : > { %1548 = vmatpush.bf16.msrb.mxu1 %v2949_v19  ;;  %v3458_v55 = vld [vmem:[#allocation3 + $0x214] sm:$0xf]  ;;  %v2874_v58 = vld [vmem:[#allocation3 + $0x228] sm:$0xf0]  ;;  %v3042_v61 = vld [vmem:[#allocation3 + $0x378] sm:$0xf0]  ;;  %v2685_v6 = vor.u32 %v3410_v53, %v2682_v54 }
  0x58   : > { %1572 = vmatpush.bf16.msrb.mxu2 %v3141_v8  ;;  %v3548_v0 = vld [vmem:[#allocation3 + $0x4e4] sm:$0xf]  ;;  %v3234_v3 = vld [vmem:[#allocation3 + $0x4f8] sm:$0xf0]  ;;  %v2877_v7 = vor.u32 %v3458_v55, %v2874_v58  ;;  %v3045_v8 = vor.u32 %v3500_v59, %v3042_v61  ;;  %v3494_v14 = vld [vmem:[#allocation3 + $0x334] sm:$0xf] }
  0x59   : > { %1596 = vmatpush.bf16.msrb.mxu3 %v3333_v12  ;;  %v3404_v9 = vld [vmem:[#allocation3 + $0x64] sm:$0xf]  ;;  %v2658_v10 = vld [vmem:[#allocation3 + $0x78] sm:$0xf0]  ;;  %v3237_v12 = vor.u32 %v3548_v0, %v3234_v3  ;;  %v3018_v15 = vld [vmem:[#allocation3 + $0x348] sm:$0xf0] }
  0x5a   : > { %1525 = vmatpush.bf16.msrb.mxu0 %v2733_v30  ;;  %v3452_v11 = vld [vmem:[#allocation3 + $0x1e4] sm:$0xf]  ;;  %v2850_v13 = vld [vmem:[#allocation3 + $0x1f8] sm:$0xf0]  ;;  %v3542_v16 = vld [vmem:[#allocation3 + $0x4b4] sm:$0xf]  ;;  %v2661_v18 = vor.u32 %v3404_v9, %v2658_v10  ;;  %v3021_v21 = vor.u32 %v3494_v14, %v3018_v15 }
  0x5b   : > { %1549 = vmatpush.bf16.msrb.mxu1 %v2925_v33  ;;  %v3210_v17 = vld [vmem:[#allocation3 + $0x4c8] sm:$0xf0]  ;;  %v3398_v19 = vld [vmem:[#allocation3 + $0x34] sm:$0xf]  ;;  %v3488_v26 = vld [vmem:[#allocation3 + $0x304] sm:$0xf] }
  0x5c   : > { %1573 = vmatpush.bf16.msrb.mxu2 %v3117_v20  ;;  %v2853_v20 = vor.u32 %v3452_v11, %v2850_v13  ;;  %v2634_v22 = vld [vmem:[#allocation3 + $0x48] sm:$0xf0]  ;;  %v3446_v23 = vld [vmem:[#allocation3 + $0x1b4] sm:$0xf]  ;;  %v3213_v25 = vor.u32 %v3542_v16, %v3210_v17  ;;  %v2994_v27 = vld [vmem:[#allocation3 + $0x318] sm:$0xf0] }
  0x5d   : > { %1597 = vmatpush.bf16.msrb.mxu3 %v3309_v24  ;;  %v2826_v24 = vld [vmem:[#allocation3 + $0x1c8] sm:$0xf0]  ;;  %v3536_v28 = vld [vmem:[#allocation3 + $0x484] sm:$0xf]  ;;  %v3186_v29 = vld [vmem:[#allocation3 + $0x498] sm:$0xf0]  ;;  %v2637_v32 = vor.u32 %v3398_v19, %v2634_v22  ;;  %v2997_v38 = vor.u32 %v3488_v26, %v2994_v27 }
  0x5e   : > { %1526 = vmatpush.bf16.msrb.mxu0 %v2709_v50  ;;  %v3168_v30 = vld [vmem:[#allocation3 + $0x458] sm:$0xf]  ;;  %v3534_v31 = vld [vmem:[#allocation3 + $0x46c] sm:$0xf0]  ;;  %v2592_v35 = vld [vmem:[%s3914_s17 + $0x40] sm:$0xf]  ;;  %v2829_v37 = vor.u32 %v3446_v23, %v2826_v24  ;;  %v3189_v44 = vor.u32 %v3536_v28, %v3186_v29 }
  0x5f   : > { %1550 = vmatpush.bf16.msrb.mxu1 %v2901_v51  ;;  %v3360_v33 = vld [vmem:[#allocation3 + $0x5d8] sm:$0xf]  ;;  %v3390_v36 = vld [vmem:[%s3914_s17 + $0x4c] sm:$0xf0]  ;;  %v3392_v39 = vld [vmem:[#allocation3 + $0x4] sm:$0xf]  ;;  %v3169_v46 = vor.u32 %v3534_v31, %v3168_v30 }
  0x60   : > { %1574 = vmatpush.bf16.msrb.mxu2 %v3093_v34  ;;  %v3582_v34 = vld [vmem:[#allocation3 + $0x5ec] sm:$0xf0]  ;;  %v3440_v41 = vld [vmem:[#allocation3 + $0x184] sm:$0xf]  ;;  %v2594_v43 = vld [vmem:[%s3914_s17 + $0x50] sm:$0xf0] }
  0x61   : > { %1598 = vmatpush.bf16.msrb.mxu3 %v3285_v40  ;;  %1440 = vmatmul.bf16.gmra.mxu0 %v3948_v56  ;;  %v2610_v40 = vld [vmem:[#allocation3 + $0x18] sm:$0xf0]  ;;  %v3388_v42 = vld [vmem:[%s3914_s17 + $0x44] sm:$0xf]  ;;  %v2784_v47 = vld [vmem:[#allocation3 + $0x158] sm:$0xf]  ;;  %v3361_v50 = vor.u32 %v3582_v34, %v3360_v33 }
  0x62   : > { %1464 = vmatmul.bf16.gmra.mxu1 %v3950_v62  ;;  %1527 = vmatpush.bf16.msrb.mxu0 %v2685_v6  ;;  %v2802_v45 = vld [vmem:[#allocation3 + $0x198] sm:$0xf0]  ;;  %v3438_v48 = vld [vmem:[#allocation3 + $0x16c] sm:$0xf0]  ;;  %v2600_v49 = vld [vmem:[%s3914_s17 + $0x48] sm:$0xf]  ;;  %v3968_v6 = vor.u32 %v3390_v36, %v2592_v35  ;;  %v3970_v11 = vor.u32 %v3388_v42, %v2594_v43 }
  0x63   : > { %1488 = vmatmul.bf16.gmra.mxu2 %v3952_v63  ;;  %1551 = vmatpush.bf16.msrb.mxu1 %v2877_v7  ;;  %v2976_v51 = vld [vmem:[#allocation3 + $0x2d8] sm:$0xf]  ;;  %v3389_v54 = vld [vmem:[%s3914_s17 + $0x4c] sm:$0xf]  ;;  %v2602_v55 = vld [vmem:[%s3914_s17 + $0x58] sm:$0xf0]  ;;  %v2805_v58 = vor.u32 %v3440_v41, %v2802_v45  ;;  %v2785_v59 = vor.u32 %v3438_v48, %v2784_v47 }
  0x64   : > { %1575 = vmatpush.bf16.msrb.mxu2 %v3069_v52  ;;  %1512 = vmatmul.bf16.gmra.mxu3 %v3954_v4  ;;  %v3486_v52 = vld [vmem:[#allocation3 + $0x2ec] sm:$0xf0]  ;;  %v3391_v53 = vld [vmem:[%s3914_s17 + $0x54] sm:$0xf0]  ;;  %v3144_v61 = vld [vmem:[#allocation3 + $0x428] sm:$0xf]  ;;  %v3974_v15 = vor.u32 %v3389_v54, %v2602_v55 }
  0x65   : > { %1599 = vmatpush.bf16.msrb.mxu3 %v3261_v57  ;;  %v2613_v57 = vor.u32 %v3392_v39, %v2610_v40  ;;  %v3528_v0 = vld [vmem:[#allocation3 + $0x43c] sm:$0xf0]  ;;  %v3336_v3 = vld [vmem:[#allocation3 + $0x5a8] sm:$0xf]  ;;  %v2977_v7 = vor.u32 %v3486_v52, %v2976_v51  ;;  %v3120_v19 = vld [vmem:[#allocation3 + $0x3f8] sm:$0xf] }
  0x66   : > { %1528 = vmatpush.bf16.msrb.mxu0 %v2661_v18  ;;  %v2760_v9 = vld [vmem:[#allocation3 + $0x128] sm:$0xf]  ;;  %v3432_v10 = vld [vmem:[#allocation3 + $0x13c] sm:$0xf0]  ;;  %v3145_v16 = vor.u32 %v3528_v0, %v3144_v61  ;;  %v3312_v22 = vld [vmem:[#allocation3 + $0x578] sm:$0xf] }
  0x67   : > { %1552 = vmatpush.bf16.msrb.mxu1 %v2853_v20  ;;  %v2952_v13 = vld [vmem:[#allocation3 + $0x2a8] sm:$0xf]  ;;  %v3480_v14 = vld [vmem:[#allocation3 + $0x2bc] sm:$0xf0]  ;;  %v2761_v18 = vor.u32 %v3432_v10, %v2760_v9  ;;  %v3522_v20 = vld [vmem:[#allocation3 + $0x40c] sm:$0xf0] }
  0x68   : > { %1576 = vmatpush.bf16.msrb.mxu2 %v3045_v8  ;;  %v3576_v8 = vld [vmem:[#allocation3 + $0x5bc] sm:$0xf0]  ;;  %v3570_v23 = vld [vmem:[#allocation3 + $0x58c] sm:$0xf0]  ;;  %v3121_v24 = vor.u32 %v3522_v20, %v3120_v19  ;;  %v2928_v27 = vld [vmem:[#allocation3 + $0x278] sm:$0xf] }
  0x69   : > { %1600 = vmatpush.bf16.msrb.mxu3 %v3237_v12  ;;  %v3972_v12 = vor.u32 %v3391_v53, %v2600_v49  ;;  %v3337_v17 = vor.u32 %v3576_v8, %v3336_v3  ;;  %v3426_v26 = vld [vmem:[#allocation3 + $0x10c] sm:$0xf0]  ;;  %v3313_v28 = vor.u32 %v3570_v23, %v3312_v22  ;;  %v3096_v31 = vld [vmem:[#allocation3 + $0x3c8] sm:$0xf]  ;;  %v3564_v35 = vld [vmem:[#allocation3 + $0x55c] sm:$0xf0] }
  0x6a   : > { %1529 = vmatpush.bf16.msrb.mxu0 %v2637_v32  ;;  %v3474_v30 = vld [vmem:[#allocation3 + $0x28c] sm:$0xf0]  ;;  %v3516_v32 = vld [vmem:[#allocation3 + $0x3dc] sm:$0xf0]  ;;  %v3288_v34 = vld [vmem:[#allocation3 + $0x548] sm:$0xf] }
  0x6b   : > { %1553 = vmatpush.bf16.msrb.mxu1 %v2829_v37  ;;  %v2929_v33 = vor.u32 %v3474_v30, %v2928_v27  ;;  %v2712_v36 = vld [vmem:[#allocation3 + $0xc8] sm:$0xf]  ;;  %v3420_v37 = vld [vmem:[#allocation3 + $0xdc] sm:$0xf0]  ;;  %v3097_v40 = vor.u32 %v3516_v32, %v3096_v31  ;;  %v3289_v41 = vor.u32 %v3564_v35, %v3288_v34  ;;  %v3072_v43 = vld [vmem:[#allocation3 + $0x398] sm:$0xf] }
  0x6c   : > { %1577 = vmatpush.bf16.msrb.mxu2 %v3021_v21  ;;  %v2953_v21 = vor.u32 %v3480_v14, %v2952_v13  ;;  %v3468_v39 = vld [vmem:[#allocation3 + $0x25c] sm:$0xf0]  ;;  %v2713_v42 = vor.u32 %v3420_v37, %v2712_v36  ;;  %v3264_v45 = vld [vmem:[#allocation3 + $0x518] sm:$0xf]  ;;  %v3558_v47 = vld [vmem:[#allocation3 + $0x52c] sm:$0xf0] }
  0x6d   : > { %1601 = vmatpush.bf16.msrb.mxu3 %v3213_v25  ;;  %v2736_v25 = vld [vmem:[#allocation3 + $0xf8] sm:$0xf]  ;;  %v3414_v49 = vld [vmem:[#allocation3 + $0xac] sm:$0xf0]  ;;  %v3265_v53 = vor.u32 %v3558_v47, %v3264_v45  ;;  %v3048_v55 = vld [vmem:[#allocation3 + $0x368] sm:$0xf] }
  0x6e   : > { %1530 = vmatpush.bf16.msrb.mxu0 %v2613_v57  ;;  %v2737_v29 = vor.u32 %v3426_v26, %v2736_v25  ;;  %v2688_v48 = vld [vmem:[#allocation3 + $0x98] sm:$0xf]  ;;  %v3462_v51 = vld [vmem:[#allocation3 + $0x22c] sm:$0xf0]  ;;  %v3504_v57 = vld [vmem:[#allocation3 + $0x37c] sm:$0xf0] }
  0x6f   : > { %1554 = vmatpush.bf16.msrb.mxu1 %v2805_v58  ;;  %v2689_v54 = vor.u32 %v3414_v49, %v2688_v48  ;;  %v3240_v61 = vld [vmem:[#allocation3 + $0x4e8] sm:$0xf]  ;;  %v3552_v0 = vld [vmem:[#allocation3 + $0x4fc] sm:$0xf0]  ;;  %v3546_v20 = vld [vmem:[#allocation3 + $0x4cc] sm:$0xf0] }
  0x70   : > { %1578 = vmatpush.bf16.msrb.mxu2 %v2997_v38  ;;  %v2904_v38 = vld [vmem:[#allocation3 + $0x248] sm:$0xf]  ;;  %v3408_v8 = vld [vmem:[#allocation3 + $0x7c] sm:$0xf0]  ;;  %v3402_v22 = vld [vmem:[#allocation3 + $0x4c] sm:$0xf0] }
  0x71   : > { %1602 = vmatpush.bf16.msrb.mxu3 %v3189_v44  ;;  %1445 = vmatmul.bf16.gmra.mxu0 %v3968_v6  ;;  %v3510_v44 = vld [vmem:[#allocation3 + $0x3ac] sm:$0xf0]  ;;  %v2664_v3 = vld [vmem:[#allocation3 + $0x68] sm:$0xf]  ;;  %v3456_v10 = vld [vmem:[#allocation3 + $0x1fc] sm:$0xf0] }
  0x72   : > { %1619 = vmatpush.bf16.msra.mxu0 %v2785_v59  ;;  %1469 = vmatmul.bf16.gmra.mxu1 %v3970_v11  ;;  %v3073_v52 = vor.u32 %v3510_v44, %v3072_v43  ;;  %v3049_v59 = vor.u32 %v3504_v57, %v3048_v55  ;;  %v2856_v9 = vld [vmem:[#allocation3 + $0x1e8] sm:$0xf]  ;;  %v2665_v13 = vor.u32 %v3408_v8, %v2664_v3  ;;  %v2832_v25 = vld [vmem:[#allocation3 + $0x1b8] sm:$0xf]  ;;  %v3450_v26 = vld [vmem:[#allocation3 + $0x1cc] sm:$0xf0] }
  0x73   : > { %1643 = vmatpush.bf16.msra.mxu1 %v2977_v7  ;;  %1493 = vmatmul.bf16.gmra.mxu2 %v3972_v12  ;;  %v3241_v7 = vor.u32 %v3552_v0, %v3240_v61  ;;  %v2857_v14 = vor.u32 %v3456_v10, %v2856_v9  ;;  %v3000_v27 = vld [vmem:[#allocation3 + $0x308] sm:$0xf]  ;;  %v3540_v31 = vld [vmem:[#allocation3 + $0x49c] sm:$0xf0]  ;;  %v3362_v44 = vld [vmem:[#allocation3 + $0x5f0] sm:$0xf0] }
  0x74   : > { %1667 = vmatpush.bf16.msra.mxu2 %v3169_v46  ;;  %1517 = vmatmul.bf16.gmra.mxu3 %v3974_v15  ;;  %v2905_v46 = vor.u32 %v3468_v39, %v2904_v38  ;;  %v3192_v30 = vld [vmem:[#allocation3 + $0x488] sm:$0xf]  ;;  %v3396_v34 = vld [vmem:[#allocation3 + $0x1c] sm:$0xf0]  ;;  %v3435_v45 = vld [vmem:[#allocation3 + $0x15c] sm:$0xf] }
  0x75   : > { %1691 = vmatpush.bf16.msra.mxu3 %v3361_v50  ;;  %v2880_v50 = vld [vmem:[#allocation3 + $0x218] sm:$0xf]  ;;  %v2808_v35 = vld [vmem:[#allocation3 + $0x188] sm:$0xf]  ;;  %v3193_v36 = vor.u32 %v3540_v31, %v3192_v30  ;;  %v3444_v37 = vld [vmem:[#allocation3 + $0x19c] sm:$0xf0] }
  0x76   : > { %1620 = vmatpush.bf16.msra.mxu0 %v2761_v18  ;;  %v2881_v58 = vor.u32 %v3462_v51, %v2880_v50  ;;  %v3216_v18 = vld [vmem:[#allocation3 + $0x4b8] sm:$0xf]  ;;  %v2809_v39 = vor.u32 %v3444_v37, %v2808_v35  ;;  %v3483_v49 = vld [vmem:[#allocation3 + $0x2dc] sm:$0xf]  ;;  %v2978_v50 = vld [vmem:[#allocation3 + $0x2f0] sm:$0xf0] }
  0x77   : > { %1644 = vmatpush.bf16.msra.mxu1 %v2953_v21  ;;  %v2640_v21 = vld [vmem:[#allocation3 + $0x38] sm:$0xf]  ;;  %v3217_v23 = vor.u32 %v3546_v20, %v3216_v18  ;;  %v3525_v51 = vld [vmem:[#allocation3 + $0x42c] sm:$0xf]  ;;  %v3338_v55 = vld [vmem:[#allocation3 + $0x5c0] sm:$0xf0] }
  0x78   : > { %1668 = vmatpush.bf16.msra.mxu2 %v3145_v16  ;;  %v3024_v16 = vld [vmem:[#allocation3 + $0x338] sm:$0xf]  ;;  %v2762_v61 = vld [vmem:[#allocation3 + $0x140] sm:$0xf0]  ;;  %v3477_v0 = vld [vmem:[#allocation3 + $0x2ac] sm:$0xf] }
  0x79   : > { %1692 = vmatpush.bf16.msra.mxu3 %v3337_v17  ;;  %v3498_v17 = vld [vmem:[#allocation3 + $0x34c] sm:$0xf0]  ;;  %v3519_v8 = vld [vmem:[#allocation3 + $0x3fc] sm:$0xf]  ;;  %v3122_v9 = vld [vmem:[#allocation3 + $0x410] sm:$0xf0] }
  0x7a   : > { %1621 = vmatpush.bf16.msra.mxu0 %v2737_v29  ;;  %v3025_v19 = vor.u32 %v3498_v17, %v3024_v16  ;;  %v3492_v29 = vld [vmem:[#allocation3 + $0x31c] sm:$0xf0]  ;;  %v3125_v16 = vor.u32 %v3519_v8, %v3122_v9  ;;  %v3423_v18 = vld [vmem:[#allocation3 + $0xfc] sm:$0xf]  ;;  %v2714_v31 = vld [vmem:[#allocation3 + $0xe0] sm:$0xf0] }
  0x7b   : > { %1645 = vmatpush.bf16.msra.mxu1 %v2929_v33  ;;  %v3001_v32 = vor.u32 %v3492_v29, %v3000_v27  ;;  %v2616_v33 = vld [vmem:[#allocation3 + $0x8] sm:$0xf]  ;;  %v3471_v20 = vld [vmem:[#allocation3 + $0x27c] sm:$0xf]  ;;  %v3561_v27 = vld [vmem:[#allocation3 + $0x54c] sm:$0xf] }
  0x7c   : > { %1669 = vmatpush.bf16.msra.mxu2 %v3121_v24  ;;  %v2641_v24 = vor.u32 %v3402_v22, %v2640_v21  ;;  %v2617_v38 = vor.u32 %v3396_v34, %v2616_v33  ;;  %v2930_v22 = vld [vmem:[#allocation3 + $0x290] sm:$0xf0]  ;;  %v3417_v29 = vld [vmem:[#allocation3 + $0xcc] sm:$0xf]  ;;  %v2906_v33 = vld [vmem:[#allocation3 + $0x260] sm:$0xf0] }
  0x7d   : > { %1693 = vmatpush.bf16.msra.mxu3 %v3313_v28  ;;  %v2833_v28 = vor.u32 %v3450_v26, %v2832_v25  ;;  %v2933_v25 = vor.u32 %v3471_v20, %v2930_v22  ;;  %v2717_v34 = vor.u32 %v3417_v29, %v2714_v31  ;;  %v3074_v37 = vld [vmem:[#allocation3 + $0x3b0] sm:$0xf0]  ;;  %v2810_v29 = vld [vmem:[#allocation3 + $0x1a0] sm:$0xf0]  ;;  %s2061_s19 = smul.u32 24, %s3854_s13  ;;  %s2557_s23 = sshll.u32 %s3911_s14, 3 }
  0x7e   : > { %1622 = vmatpush.bf16.msra.mxu0 %v2713_v42  ;;  %v3579_v42 = vld [vmem:[#allocation3 + $0x5dc] sm:$0xf]  ;;  %v3218_v9 = vld [vmem:[#allocation3 + $0x4d0] sm:$0xf0]  ;;  %s3375_s24 = sshll.u32 %s3854_s13, 3  ;;  %s201_s3 = scalar_lea.vmem [#allocation6], %s2557_s23 }
  0x7f   : > { %1646 = vmatpush.bf16.msra.mxu1 %v2905_v46  ;;  %v2786_v46 = vld [vmem:[#allocation3 + $0x170] sm:$0xf0]  ;;  %v3365_v47 = vor.u32 %v3579_v42, %v3362_v44  ;;  %v3459_v44 = vld [vmem:[#allocation3 + $0x21c] sm:$0xf]  ;;  %s2467_s28 = scalar_lea.hbm %s4469_s2, %s3375_s24  ;;  %s2469_s4 = sshll.u32 %s201_s3, 4  ;;  %s2470_s4 = int_to_ptr.vmem [resolvable:$true] %s2469_s4 }
  0x80   : > { %1670 = vmatpush.bf16.msra.mxu2 %v3097_v40  ;;  %v3531_v40 = vld [vmem:[#allocation3 + $0x45c] sm:$0xf]  ;;  %v2789_v48 = vor.u32 %v3435_v45, %v2786_v46  ;;  %v2690_v42 = vld [vmem:[#allocation3 + $0xb0] sm:$0xf0]  ;;  %s2471_s13 = sshll.u32 %s2467_s28, 4  ;;  %s2457_s5 = scalar_lea.sflag [#allocation5], %s3911_s14  ;;  %s2472_s13 = int_to_ptr.hbm [resolvable:$true] %s2471_s13 }
  0x81   : > { %1694 = vmatpush.bf16.msra.mxu3 %v3289_v41  ;;  %1531 = vmatmul.bf16.vlgmr.msrb.gmra.mxu0 %v3928_v60  ;;  %v3170_v41 = vld [vmem:[#allocation3 + $0x470] sm:$0xf0]  ;;  %s3761_s6 = sshra.s32 %s2472_s13, 4  ;;  %s3767_s17 = scalar_lea.hbm %s4469_s2, 16  ;;  %s3762_s6 = int_to_ptr.hbm [resolvable:$true] %s3761_s6 }
  0x82   : > { %1623 = vmatpush.bf16.msra.mxu0 %v2689_v54  ;;  %1555 = vmatmul.bf16.vlgmr.msrb.gmra.mxu1 %v3930_v1  ;;  %v3173_v43 = vor.u32 %v3531_v40, %v3170_v41  ;;  %v3573_v54 = vld [vmem:[#allocation3 + $0x5ac] sm:$0xf]  ;;  %v3266_v40 = vld [vmem:[#allocation3 + $0x530] sm:$0xf0]  ;;  %v3411_v41 = vld [vmem:[#allocation3 + $0x9c] sm:$0xf]  ;;  %p3768_p5 = scmp.lt.s32.totalorder %s3762_s6, %s4469_s2 }
  0x83   : > { %1647 = vmatpush.bf16.msra.mxu1 %v2881_v58  ;;  %1579 = vmatmul.bf16.vlgmr.msrb.gmra.mxu2 %v3932_v2  ;;  %v3341_v58 = vor.u32 %v3573_v54, %v3338_v55  ;;  %v2882_v45 = vld [vmem:[#allocation3 + $0x230] sm:$0xf0]  ;;  %v2693_v46 = vor.u32 %v3411_v41, %v2690_v42  ;;  %v2666_v55 = vld [vmem:[#allocation3 + $0x80] sm:$0xf0]  ;;  %v3487_v42 = vld [vmem:[#allocation3 + $0x2f4] sm:$0xf0] }
  0x84   : > { %1671 = vmatpush.bf16.msra.mxu2 %v3073_v52  ;;  %1603 = vmatmul.bf16.vlgmr.msrb.gmra.mxu3 %v3934_v5  ;;  %v2981_v52 = vor.u32 %v3483_v49, %v2978_v50  ;;  %v3050_v49 = vld [vmem:[#allocation3 + $0x380] sm:$0xf0]  ;;  %s3763_s7 = scalar_lea.hbm %s3762_s6, 8 }
  0x85   : > { %1695 = vmatpush.bf16.msra.mxu3 %v3265_v53  ;;  %v3146_v53 = vld [vmem:[#allocation3 + $0x440] sm:$0xf0]  ;;  %p3764_p2 = scmp.ne.s32.totalorder %s3762_s6, %s3763_s7  ;;  %p3769_p7 = scmp.lt.s32.totalorder %s3767_s17, %s3763_s7 }
  0x86   : > { %1624 = vmatpush.bf16.msra.mxu0 %v2665_v13  ;;  %v3149_v57 = vor.u32 %v3525_v51, %v3146_v53  ;;  %v3567_v13 = vld [vmem:[#allocation3 + $0x57c] sm:$0xf]  ;;  %v3549_v51 = vld [vmem:[#allocation3 + $0x4ec] sm:$0xf] }
  0x87   : > { %1648 = vmatpush.bf16.msra.mxu1 %v2857_v14  ;;  %v3314_v14 = vld [vmem:[#allocation3 + $0x590] sm:$0xf0]  ;;  %v3405_v53 = vld [vmem:[#allocation3 + $0x6c] sm:$0xf]  ;;  %p3765_p3 = pnand %p3764_p2, %p3876_p6  ;;  %p3770_p8 = por %p3769_p7, %p3768_p5 }
  0x88   : > { %1672 = vmatpush.bf16.msra.mxu2 %v3049_v59  ;;  %v3429_v59 = vld [vmem:[#allocation3 + $0x12c] sm:$0xf]  ;;  %v3317_v17 = vor.u32 %v3567_v13, %v3314_v14  ;;  %v2642_v13 = vld [vmem:[#allocation3 + $0x50] sm:$0xf0] }
  0x89   : > { %1696 = vmatpush.bf16.msra.mxu3 %v3241_v7  ;;  %v2765_v3 = vor.u32 %v3429_v59, %v2762_v61  ;;  %v2954_v7 = vld [vmem:[#allocation3 + $0x2c0] sm:$0xf0]  ;;  %v2669_v59 = vor.u32 %v3405_v53, %v2666_v55  ;;  %v3481_v53 = vld [vmem:[#allocation3 + $0x2c4] sm:$0xf0]  ;;  %p3766_p4 = pneg %p3765_p3 }
  0x8a   : > { %1625 = vmatpush.bf16.msra.mxu0 %v2641_v24  ;;  %v2957_v10 = vor.u32 %v3477_v0, %v2954_v7  ;;  %v3098_v24 = vld [vmem:[#allocation3 + $0x3e0] sm:$0xf0]  ;;  %v3495_v0 = vld [vmem:[#allocation3 + $0x33c] sm:$0xf] }
  0x8b   : > { %1649 = vmatpush.bf16.msra.mxu1 %v2833_v28  ;;  %v3290_v28 = vld [vmem:[#allocation3 + $0x560] sm:$0xf0]  ;;  %v3543_v7 = vld [vmem:[#allocation3 + $0x4bc] sm:$0xf]  ;;  %p3771_p9 = pnand %p3770_p8, %p3766_p4 }
  0x8c   : > { %1673 = vmatpush.bf16.msra.mxu2 %v3025_v19  ;;  %v2738_v19 = vld [vmem:[#allocation3 + $0x110] sm:$0xf0]  ;;  %v3293_v30 = vor.u32 %v3561_v27, %v3290_v28  ;;  %v3221_v14 = vor.u32 %v3543_v7, %v3218_v9  ;;  %v2618_v27 = vld [vmem:[#allocation3 + $0x20] sm:$0xf0]  ;;  %v3441_v28 = vld [vmem:[#allocation3 + $0x18c] sm:$0xf] }
  0x8d   : > { %1697 = vmatpush.bf16.msra.mxu3 %v3217_v23  ;;  %v2741_v21 = vor.u32 %v3423_v18, %v2738_v19  ;;  %v3513_v23 = vld [vmem:[#allocation3 + $0x3cc] sm:$0xf]  ;;  %v2834_v18 = vld [vmem:[#allocation3 + $0x1d0] sm:$0xf0]  ;;  %v2813_v31 = vor.u32 %v3441_v28, %v2810_v29  ;;  %v2744_v9 = vld [vmem:[#allocation3 + $0x100] sm:$0xf] }
  0x8e   : > { %1626 = vmatpush.bf16.msra.mxu0 %v2617_v38  ;;  %v3101_v26 = vor.u32 %v3513_v23, %v3098_v24  ;;  %v3555_v38 = vld [vmem:[#allocation3 + $0x51c] sm:$0xf]  ;;  %v3489_v19 = vld [vmem:[#allocation3 + $0x30c] sm:$0xf]  ;;  %v3194_v24 = vld [vmem:[#allocation3 + $0x4a0] sm:$0xf0] }
  0x8f   : > { %1650 = vmatpush.bf16.msra.mxu1 %v2809_v39  ;;  %v3537_v23 = vld [vmem:[#allocation3 + $0x48c] sm:$0xf]  ;;  %v3296_v29 = vld [vmem:[#allocation3 + $0x550] sm:$0xf] }
  0x90   : > { %1674 = vmatpush.bf16.msra.mxu2 %v3001_v32  ;;  %v3465_v32 = vld [vmem:[#allocation3 + $0x24c] sm:$0xf] }
  0x91   : > { %1698 = vmatpush.bf16.msra.mxu3 %v3193_v36  ;;  %1536 = vmatmul.bf16.gmra.mxu0 %v3948_v56  ;;  %v2909_v35 = vor.u32 %v3465_v32, %v2906_v33  ;;  %v3507_v36 = vld [vmem:[#allocation3 + $0x39c] sm:$0xf]  ;;  %v3176_v32 = vld [vmem:[#allocation3 + $0x460] sm:$0xf]  ;;  %v3535_v33 = vld [vmem:[#allocation3 + $0x474] sm:$0xf0] }
  0x92   : > { %1560 = vmatmul.bf16.gmra.mxu1 %v3950_v62  ;;  %1715 = vmatpush.bf16.msrb.mxu0 %v2789_v48  ;;  %v3077_v39 = vor.u32 %v3507_v36, %v3074_v37  ;;  %v3501_v48 = vld [vmem:[#allocation3 + $0x36c] sm:$0xf]  ;;  %v3583_v36 = vld [vmem:[#allocation3 + $0x5f4] sm:$0xf0] }
  0x93   : > { %1584 = vmatmul.bf16.gmra.mxu2 %v3952_v63  ;;  %1739 = vmatpush.bf16.msrb.mxu1 %v2981_v52  ;;  %v3053_v50 = vor.u32 %v3501_v48, %v3050_v49  ;;  %v3242_v52 = vld [vmem:[#allocation3 + $0x500] sm:$0xf0]  ;;  %v3577_v48 = vld [vmem:[#allocation3 + $0x5c4] sm:$0xf0]  ;;  %v2768_v49 = vld [vmem:[#allocation3 + $0x130] sm:$0xf] }
  0x94   : > { %1608 = vmatmul.bf16.gmra.mxu3 %v3954_v4  ;;  %1763 = vmatpush.bf16.msrb.mxu2 %v3173_v43  ;;  %v3269_v43 = vor.u32 %v3555_v38, %v3266_v40  ;;  %v3245_v54 = vor.u32 %v3549_v51, %v3242_v52  ;;  %v2792_v38 = vld [vmem:[#allocation3 + $0x160] sm:$0xf]  ;;  %v3433_v51 = vld [vmem:[#allocation3 + $0x144] sm:$0xf0]  ;;  %v2960_v52 = vld [vmem:[#allocation3 + $0x2b0] sm:$0xf] }
  0x95   : > { %1787 = vmatpush.bf16.msrb.mxu3 %v3365_v47  ;;  %v2885_v47 = vor.u32 %v3459_v44, %v2882_v45  ;;  %v2984_v40 = vld [vmem:[#allocation3 + $0x2e0] sm:$0xf]  ;;  %v3529_v44 = vld [vmem:[#allocation3 + $0x444] sm:$0xf0] }
  0x96   : > { %1716 = vmatpush.bf16.msrb.mxu0 %v2765_v3  ;;  %v3026_v3 = vld [vmem:[#allocation3 + $0x350] sm:$0xf0]  ;;  %v2985_v45 = vor.u32 %v3487_v42, %v2984_v40  ;;  %v3272_v40 = vld [vmem:[#allocation3 + $0x520] sm:$0xf] }
  0x97   : > { %1740 = vmatpush.bf16.msrb.mxu1 %v2957_v10  ;;  %v3029_v8 = vor.u32 %v3495_v0, %v3026_v3  ;;  %v3399_v10 = vld [vmem:[#allocation3 + $0x3c] sm:$0xf]  ;;  %v3523_v0 = vld [vmem:[#allocation3 + $0x414] sm:$0xf0]  ;;  %v3320_v3 = vld [vmem:[#allocation3 + $0x580] sm:$0xf] }
  0x98   : > { %1764 = vmatpush.bf16.msrb.mxu2 %v3149_v57  ;;  %v3453_v57 = vld [vmem:[#allocation3 + $0x1ec] sm:$0xf] }
  0x99   : > { %1788 = vmatpush.bf16.msrb.mxu3 %v3341_v58  ;;  %v2858_v58 = vld [vmem:[#allocation3 + $0x200] sm:$0xf0] }
  0x9a   : > { %1717 = vmatpush.bf16.msrb.mxu0 %v2741_v21  ;;  %v2861_v61 = vor.u32 %v3453_v57, %v2858_v58  ;;  %v3002_v21 = vld [vmem:[#allocation3 + $0x320] sm:$0xf0]  ;;  %v2769_v57 = vor.u32 %v3433_v51, %v2768_v49  ;;  %v2696_v51 = vld [vmem:[#allocation3 + $0xa0] sm:$0xf] }
  0x9b   : > { %1741 = vmatpush.bf16.msrb.mxu1 %v2933_v25  ;;  %v3005_v22 = vor.u32 %v3489_v19, %v3002_v21  ;;  %v3393_v25 = vld [vmem:[#allocation3 + $0xc] sm:$0xf]  ;;  %v3517_v21 = vld [vmem:[#allocation3 + $0x3e4] sm:$0xf0] }
  0x9c   : > { %1765 = vmatpush.bf16.msrb.mxu2 %v3125_v16  ;;  %v2645_v16 = vor.u32 %v3399_v10, %v2642_v13  ;;  %v3427_v10 = vld [vmem:[#allocation3 + $0x114] sm:$0xf0] }
  0x9d   : > { %1789 = vmatpush.bf16.msrb.mxu3 %v3317_v17  ;;  %v3447_v17 = vld [vmem:[#allocation3 + $0x1bc] sm:$0xf] }
  0x9e   : > { %1718 = vmatpush.bf16.msrb.mxu0 %v2717_v34  ;;  %v2837_v20 = vor.u32 %v3447_v17, %v2834_v18  ;;  %v3368_v34 = vld [vmem:[#allocation3 + $0x5e0] sm:$0xf]  ;;  %v3475_v17 = vld [vmem:[#allocation3 + $0x294] sm:$0xf0]  ;;  %v3104_v18 = vld [vmem:[#allocation3 + $0x3d0] sm:$0xf] }
  0x9f   : > { %1742 = vmatpush.bf16.msrb.mxu1 %v2909_v35  ;;  %v3177_v35 = vor.u32 %v3535_v33, %v3176_v32  ;;  %v3369_v37 = vor.u32 %v3583_v36, %v3368_v34  ;;  %v3421_v33 = vld [vmem:[#allocation3 + $0xe4] sm:$0xf0]  ;;  %v2912_v34 = vld [vmem:[#allocation3 + $0x250] sm:$0xf] }
  0xa0   : > { %1766 = vmatpush.bf16.msrb.mxu2 %v3101_v26  ;;  %v3197_v26 = vor.u32 %v3537_v23, %v3194_v24 }
  0xa1   : > { %1541 = vmatmul.bf16.gmra.mxu0 %v3968_v6  ;;  %1790 = vmatpush.bf16.msrb.mxu3 %v3293_v30  ;;  %v2621_v30 = vor.u32 %v3393_v25, %v2618_v27  ;;  %v3105_v25 = vor.u32 %v3517_v21, %v3104_v18 }
  0xa2   : > { %1565 = vmatmul.bf16.gmra.mxu1 %v3970_v11  ;;  %1719 = vmatpush.bf16.msrb.mxu0 %v2693_v46 }
  0xa3   : > { %1589 = vmatmul.bf16.gmra.mxu2 %v3972_v12  ;;  %1743 = vmatpush.bf16.msrb.mxu1 %v2885_v47  ;;  %v3344_v47 = vld [vmem:[#allocation3 + $0x5b0] sm:$0xf] }
  0xa4   : > { %1613 = vmatmul.bf16.gmra.mxu3 %v3974_v15  ;;  %1767 = vmatpush.bf16.msrb.mxu2 %v3077_v39  ;;  %v3439_v39 = vld [vmem:[#allocation3 + $0x174] sm:$0xf0] }
  0xa5   : > { %1791 = vmatpush.bf16.msrb.mxu3 %v3269_v43  ;;  %v2793_v41 = vor.u32 %v3439_v39, %v2792_v38  ;;  %v3152_v43 = vld [vmem:[#allocation3 + $0x430] sm:$0xf]  ;;  %v3080_v38 = vld [vmem:[#allocation3 + $0x3a0] sm:$0xf]  ;;  %v3511_v39 = vld [vmem:[#allocation3 + $0x3b4] sm:$0xf0] }
  0xa6   : > { %1720 = vmatpush.bf16.msrb.mxu0 %v2669_v59  ;;  %v3153_v46 = vor.u32 %v3529_v44, %v3152_v43  ;;  %v2961_v59 = vor.u32 %v3481_v53, %v2960_v52  ;;  %v3081_v42 = vor.u32 %v3511_v39, %v3080_v38  ;;  %v3559_v43 = vld [vmem:[#allocation3 + $0x534] sm:$0xf0]  ;;  %v2888_v53 = vld [vmem:[#allocation3 + $0x220] sm:$0xf]  ;;  %v3493_v38 = vld [vmem:[#allocation3 + $0x324] sm:$0xf0] }
  0xa7   : > { %1744 = vmatpush.bf16.msrb.mxu1 %v2861_v61  ;;  %v3128_v61 = vld [vmem:[#allocation3 + $0x400] sm:$0xf]  ;;  %v3415_v52 = vld [vmem:[#allocation3 + $0xb4] sm:$0xf0] }
  0xa8   : > { %1768 = vmatpush.bf16.msrb.mxu2 %v3053_v50  ;;  %v3345_v50 = vor.u32 %v3577_v48, %v3344_v47  ;;  %v3129_v7 = vor.u32 %v3523_v0, %v3128_v61  ;;  %v3273_v47 = vor.u32 %v3559_v43, %v3272_v40  ;;  %v3248_v0 = vld [vmem:[#allocation3 + $0x4f0] sm:$0xf] }
  0xa9   : > { %1792 = vmatpush.bf16.msrb.mxu3 %v3245_v54  ;;  %v2624_v43 = vld [vmem:[#allocation3 + $0x10] sm:$0xf] }
  0xaa   : > { %1721 = vmatpush.bf16.msrb.mxu0 %v2645_v16  ;;  %v2936_v16 = vld [vmem:[#allocation3 + $0x280] sm:$0xf] }
  0xab   : > { %1745 = vmatpush.bf16.msrb.mxu1 %v2837_v20  ;;  %v2937_v20 = vor.u32 %v3475_v17, %v2936_v16 }
  0xac   : > { %1769 = vmatpush.bf16.msrb.mxu2 %v3029_v8  ;;  %v3571_v8 = vld [vmem:[#allocation3 + $0x594] sm:$0xf0] }
  0xad   : > { %1793 = vmatpush.bf16.msrb.mxu3 %v3221_v14  ;;  %v3321_v13 = vor.u32 %v3571_v8, %v3320_v3  ;;  %v2745_v14 = vor.u32 %v3427_v10, %v2744_v9  ;;  %v3553_v3 = vld [vmem:[#allocation3 + $0x504] sm:$0xf0]  ;;  %v2864_v10 = vld [vmem:[#allocation3 + $0x1f0] sm:$0xf] }
  0xae   : > { %1722 = vmatpush.bf16.msrb.mxu0 %v2621_v30  ;;  %v3565_v30 = vld [vmem:[#allocation3 + $0x564] sm:$0xf0]  ;;  %v3249_v8 = vor.u32 %v3553_v3, %v3248_v0  ;;  %v3370_v3 = vld [vmem:[#allocation3 + $0x5f8] sm:$0xf0] }
  0xaf   : > { %1746 = vmatpush.bf16.msrb.mxu1 %v2813_v31  ;;  %v2720_v31 = vld [vmem:[#allocation3 + $0xd0] sm:$0xf]  ;;  %v3297_v32 = vor.u32 %v3565_v30, %v3296_v29  ;;  %v3409_v9 = vld [vmem:[#allocation3 + $0x84] sm:$0xf0]  ;;  %v3547_v29 = vld [vmem:[#allocation3 + $0x4d4] sm:$0xf0] }
  0xb0   : > { %1770 = vmatpush.bf16.msrb.mxu2 %v3005_v22  ;;  %v2721_v36 = vor.u32 %v3421_v33, %v2720_v31  ;;  %v2648_v30 = vld [vmem:[#allocation3 + $0x40] sm:$0xf]  ;;  %v3403_v31 = vld [vmem:[#allocation3 + $0x54] sm:$0xf0] }
  0xb1   : > { %1627 = vmatmul.bf16.vlgmr.msra.gmra.mxu0 %v3928_v60  ;;  %1794 = vmatpush.bf16.msrb.mxu3 %v3197_v26  ;;  %v2649_v33 = vor.u32 %v3403_v31, %v2648_v30  ;;  %v3346_v30 = vld [vmem:[#allocation3 + $0x5c8] sm:$0xf0]  ;;  %v3430_v31 = vld [vmem:[#allocation3 + $0x134] sm:$0xf] }
  0xb2   : > { %1651 = vmatmul.bf16.vlgmr.msra.gmra.mxu1 %v3930_v1  ;;  %1811 = vmatpush.bf16.msra.mxu0 %v2793_v41 }
  0xb3   : > { %1675 = vmatmul.bf16.vlgmr.msra.gmra.mxu2 %v3932_v2  ;;  %1835 = vmatpush.bf16.msra.mxu1 %v2985_v45 }
  0xb4   : > { %1699 = vmatmul.bf16.vlgmr.msra.gmra.mxu3 %v3934_v5  ;;  %1859 = vmatpush.bf16.msra.mxu2 %v3177_v35  ;;  %v3469_v35 = vld [vmem:[#allocation3 + $0x264] sm:$0xf0] }
  0xb5   : > { %1883 = vmatpush.bf16.msra.mxu3 %v3369_v37  ;;  %v2913_v37 = vor.u32 %v3469_v35, %v2912_v34  ;;  %v2840_v34 = vld [vmem:[#allocation3 + $0x1c0] sm:$0xf]  ;;  %v3451_v35 = vld [vmem:[#allocation3 + $0x1d4] sm:$0xf0] }
  0xb6   : > { %1812 = vmatpush.bf16.msra.mxu0 %v2769_v57  ;;  %v3056_v57 = vld [vmem:[#allocation3 + $0x370] sm:$0xf] }
  0xb7   : > { %1836 = vmatpush.bf16.msra.mxu1 %v2961_v59 }
  0xb8   : > { %1860 = vmatpush.bf16.msra.mxu2 %v3153_v46 }
  0xb9   : > { %1884 = vmatpush.bf16.msra.mxu3 %v3345_v50 }
  0xba   : > { %1813 = vmatpush.bf16.msra.mxu0 %v2745_v14 }
  0xbb   : > { %1837 = vmatpush.bf16.msra.mxu1 %v2937_v20 }
  0xbc   : > { %1861 = vmatpush.bf16.msra.mxu2 %v3129_v7  ;;  %v2672_v7 = vld [vmem:[#allocation3 + $0x70] sm:$0xf] }
  0xbd   : > { %1885 = vmatpush.bf16.msra.mxu3 %v3321_v13  ;;  %v3457_v13 = vld [vmem:[#allocation3 + $0x204] sm:$0xf0]  ;;  %v2673_v16 = vor.u32 %v3409_v9, %v2672_v7 }
  0xbe   : > { %1814 = vmatpush.bf16.msra.mxu0 %v2721_v36  ;;  %v2865_v17 = vor.u32 %v3457_v13, %v2864_v10  ;;  %v3008_v36 = vld [vmem:[#allocation3 + $0x310] sm:$0xf] }
  0xbf   : > { %1838 = vmatpush.bf16.msra.mxu1 %v2913_v37  ;;  %v2841_v37 = vor.u32 %v3451_v35, %v2840_v34  ;;  %v3009_v40 = vor.u32 %v3493_v38, %v3008_v36  ;;  %v2770_v34 = vld [vmem:[#allocation3 + $0x148] sm:$0xf0]  ;;  %v3478_v35 = vld [vmem:[#allocation3 + $0x2b4] sm:$0xf] }
  0xc0   : > { %1862 = vmatpush.bf16.msra.mxu2 %v3105_v25  ;;  %v3499_v25 = vld [vmem:[#allocation3 + $0x354] sm:$0xf0]  ;;  %v2962_v36 = vld [vmem:[#allocation3 + $0x2c8] sm:$0xf0] }
  0xc1   : > { %1632 = vmatmul.bf16.gmra.mxu0 %v3948_v56  ;;  %1886 = vmatpush.bf16.msra.mxu3 %v3297_v32 }
  0xc2   : > { %1656 = vmatmul.bf16.gmra.mxu1 %v3950_v62 }
  0xc3   : > { %1680 = vmatmul.bf16.gmra.mxu2 %v3952_v63 }
  0xc4   : > { %1704 = vmatmul.bf16.gmra.mxu3 %v3954_v4  ;;  %1863 = vmatpush.bf16.msra.mxu2 %v3081_v42  ;;  %v3541_v42 = vld [vmem:[#allocation3 + $0x4a4] sm:$0xf0] }
  0xc5   : > { %1887 = vmatpush.bf16.msra.mxu3 %v3273_v47 }
  0xc9   : > { %1888 = vmatpush.bf16.msra.mxu3 %v3249_v8 }
  0xce   : > { %v1436_v54 = vpop.f32.mrf.mxu0 }
  0xcf   : > { %v1460_v55 = vpop.f32.mrf.mxu1 }
  0xd0   : > { %v1461_v58 = vadd.f32 %v1460_v55, %v1436_v54  ;;  %v2697_v54 = vor.u32 %v3415_v52, %v2696_v51  ;;  %v3463_v55 = vld [vmem:[#allocation3 + $0x234] sm:$0xf0]  ;;  %v3445_v51 = vld [vmem:[#allocation3 + $0x1a4] sm:$0xf0] }
  0xd1   : > { %1637 = vmatmul.bf16.gmra.mxu0 %v3968_v6  ;;  %v2889_v59 = vor.u32 %v3463_v55, %v2888_v53 }
  0xd2   : > { %1661 = vmatmul.bf16.gmra.mxu1 %v3970_v11  ;;  %1815 = vmatpush.bf16.msra.mxu0 %v2697_v54 }
  0xd3   : > { %1685 = vmatmul.bf16.gmra.mxu2 %v3972_v12  ;;  %1839 = vmatpush.bf16.msra.mxu1 %v2889_v59  ;;  %v3178_v59 = vld [vmem:[#allocation3 + $0x478] sm:$0xf0] }
  0xd4   : > { %1709 = vmatmul.bf16.gmra.mxu3 %v3974_v15 }
  0xd6   : > { %v1484_v19 = vpop.f32.mrf.mxu2  ;;  %v1438_v24 = vpop.f32.mrf.mxu0  ;;  %1816 = vmatpush.bf16.msra.mxu0 %v2673_v16 }
  0xd7   : > { %v1485_v22 = vadd.f32 %v1484_v19, %v1461_v58  ;;  %v1508_v23 = vpop.f32.mrf.mxu3  ;;  %v1462_v26 = vpop.f32.mrf.mxu1  ;;  %v3505_v58 = vld [vmem:[#allocation3 + $0x384] sm:$0xf0]  ;;  %1840 = vmatpush.bf16.msra.mxu1 %v2865_v17 }
  0xd8   : > { %v1463_v28 = vadd.f32 %v1462_v26, %v1438_v24  ;;  %v3057_v61 = vor.u32 %v3505_v58, %v3056_v57  ;;  %v3032_v24 = vld [vmem:[#allocation3 + $0x340] sm:$0xf]  ;;  %v3532_v58 = vld [vmem:[#allocation3 + $0x464] sm:$0xf] }
  0xd9   : > { %v4004_v27 = vadd.f32 %v1508_v23, %v1485_v22  ;;  %v3224_v26 = vld [vmem:[#allocation3 + $0x4c0] sm:$0xf]  ;;  %v3181_v0 = vor.u32 %v3532_v58, %v3178_v59  ;;  %v2938_v58 = vld [vmem:[#allocation3 + $0x298] sm:$0xf0]  ;;  %v3514_v59 = vld [vmem:[#allocation3 + $0x3d4] sm:$0xf] }
  0xda   : > { %1864 = vmatpush.bf16.msra.mxu2 %v3057_v61  ;;  %v3225_v32 = vor.u32 %v3547_v29, %v3224_v26  ;;  %1817 = vmatpush.bf16.msra.mxu0 %v2649_v33  ;;  %v3580_v61 = vld [vmem:[#allocation3 + $0x5e4] sm:$0xf]  ;;  %v3574_v29 = vld [vmem:[#allocation3 + $0x5b4] sm:$0xf] }
  0xdb   : > { %1841 = vmatpush.bf16.msra.mxu1 %v2841_v37  ;;  %v3373_v8 = vor.u32 %v3580_v61, %v3370_v3  ;;  %v3349_v33 = vor.u32 %v3574_v29, %v3346_v30  ;;  %v3106_v3 = vld [vmem:[#allocation3 + $0x3e8] sm:$0xf0]  ;;  %v3508_v29 = vld [vmem:[#allocation3 + $0x3a4] sm:$0xf]  ;;  %v3082_v30 = vld [vmem:[#allocation3 + $0x3b8] sm:$0xf0] }
  0xdc   : > { %1889 = vmatpush.bf16.msra.mxu3 %v3225_v32 }
  0xde   : > { %v1486_v41 = vpop.f32.mrf.mxu2  ;;  %v1441_v46 = vpop.f32.mrf.mxu0 }
  0xdf   : > { %v1487_v44 = vadd.f32 %v1486_v41, %v1463_v28  ;;  %v1510_v45 = vpop.f32.mrf.mxu3  ;;  %v1465_v48 = vpop.f32.mrf.mxu1  ;;  %v3033_v28 = vor.u32 %v3499_v25, %v3032_v24  ;;  %v3200_v41 = vld [vmem:[#allocation3 + $0x490] sm:$0xf]  ;;  %v3526_v24 = vld [vmem:[#allocation3 + $0x434] sm:$0xf]  ;;  %v3154_v25 = vld [vmem:[#allocation3 + $0x448] sm:$0xf0] }
  0xe0   : > { %v1466_v50 = vadd.f32 %v1465_v48, %v1441_v46  ;;  %v3201_v47 = vor.u32 %v3541_v42, %v3200_v41  ;;  %v3397_v48 = vld [vmem:[#allocation3 + $0x24] sm:$0xf0]  ;;  %v2773_v41 = vor.u32 %v3430_v31, %v2770_v34  ;;  %v3556_v31 = vld [vmem:[#allocation3 + $0x524] sm:$0xf]  ;;  %v3274_v34 = vld [vmem:[#allocation3 + $0x538] sm:$0xf0] }
  0xe1   : > { %v4006_v49 = vadd.f32 %v1510_v45, %v1487_v44  ;;  %1723 = vmatmul.bf16.vlgmr.msrb.gmra.mxu0 %v3928_v60  ;;  %1865 = vmatpush.bf16.msra.mxu2 %v3033_v28  ;;  %v2625_v53 = vor.u32 %v3397_v48, %v2624_v43  ;;  %v3157_v28 = vor.u32 %v3526_v24, %v3154_v25  ;;  %v3466_v24 = vld [vmem:[#allocation3 + $0x254] sm:$0xf]  ;;  %v2914_v25 = vld [vmem:[#allocation3 + $0x268] sm:$0xf0] }
  0xe2   : > { %1747 = vmatmul.bf16.vlgmr.msrb.gmra.mxu1 %v3930_v1  ;;  %1890 = vmatpush.bf16.msra.mxu3 %v3201_v47  ;;  %v3568_v47 = vld [vmem:[#allocation3 + $0x584] sm:$0xf] }
  0xe3   : > { %1771 = vmatmul.bf16.vlgmr.msrb.gmra.mxu2 %v3932_v2  ;;  %1818 = vmatpush.bf16.msra.mxu0 %v2625_v53 }
  0xe4   : > { %1795 = vmatmul.bf16.vlgmr.msrb.gmra.mxu3 %v3934_v5 }
  0xe5   : > { %1866 = vmatpush.bf16.msra.mxu2 %v3009_v40 }
  0xe6   : > { %v1489_v14 = vpop.f32.mrf.mxu2  ;;  %v1443_v20 = vpop.f32.mrf.mxu0  ;;  %1979 = vmatpush.bf16.msrb.mxu3 %v3373_v8 }
  0xe7   : > { %v1490_v18 = vadd.f32 %v1489_v14, %v1466_v50  ;;  %v1513_v19 = vpop.f32.mrf.mxu3  ;;  %v1467_v21 = vpop.f32.mrf.mxu1  ;;  %v2816_v50 = vld [vmem:[#allocation3 + $0x190] sm:$0xf] }
  0xe8   : > { %v1468_v23 = vadd.f32 %v1467_v21, %v1443_v20  ;;  %v2817_v57 = vor.u32 %v3445_v51, %v2816_v50  ;;  %v3484_v20 = vld [vmem:[#allocation3 + $0x2e4] sm:$0xf]  ;;  %v3322_v50 = vld [vmem:[#allocation3 + $0x598] sm:$0xf0] }
  0xe9   : > { %v4012_v22 = vadd.f32 %v1513_v19, %v1490_v18  ;;  %1955 = vmatpush.bf16.msrb.mxu2 %v3181_v0  ;;  %v3436_v18 = vld [vmem:[#allocation3 + $0x164] sm:$0xf]  ;;  %v2794_v19 = vld [vmem:[#allocation3 + $0x178] sm:$0xf0]  ;;  %v3325_v53 = vor.u32 %v3568_v47, %v3322_v50  ;;  %v3058_v50 = vld [vmem:[#allocation3 + $0x388] sm:$0xf0] }
  0xea   : > { %1842 = vmatpush.bf16.msra.mxu1 %v2817_v57  ;;  %v2797_v21 = vor.u32 %v3436_v18, %v2794_v19  ;;  %1980 = vmatpush.bf16.msrb.mxu3 %v3349_v33  ;;  %v3424_v51 = vld [vmem:[#allocation3 + $0x104] sm:$0xf]  ;;  %v3562_v18 = vld [vmem:[#allocation3 + $0x554] sm:$0xf]  ;;  %v3298_v19 = vld [vmem:[#allocation3 + $0x568] sm:$0xf0]  ;;  %v3085_v33 = vor.u32 %v3508_v29, %v3082_v30 }
  0xeb   : > { %v3472_v57 = vld [vmem:[#allocation3 + $0x284] sm:$0xf]  ;;  %v2890_v47 = vld [vmem:[#allocation3 + $0x238] sm:$0xf0] }
  0xec   : > { %1907 = vmatpush.bf16.msrb.mxu0 %v2797_v21  ;;  %v2941_v0 = vor.u32 %v3472_v57, %v2938_v58  ;;  %v3301_v21 = vor.u32 %v3562_v18, %v3298_v19  ;;  %v3406_v57 = vld [vmem:[#allocation3 + $0x74] sm:$0xf] }
  0xed   : > { %1956 = vmatpush.bf16.msrb.mxu2 %v3157_v28  ;;  %v2917_v28 = vor.u32 %v3466_v24, %v2914_v25  ;;  %v3226_v25 = vld [vmem:[#allocation3 + $0x4d8] sm:$0xf0] }
  0xee   : > { %v1491_v39 = vpop.f32.mrf.mxu2  ;;  %v1446_v46 = vpop.f32.mrf.mxu0  ;;  %1981 = vmatpush.bf16.msrb.mxu3 %v3325_v53  ;;  %v3550_v53 = vld [vmem:[#allocation3 + $0x4f4] sm:$0xf] }
  0xef   : > { %v1492_v44 = vadd.f32 %v1491_v39, %v1468_v23  ;;  %v1515_v45 = vpop.f32.mrf.mxu3  ;;  %v1470_v52 = vpop.f32.mrf.mxu1  ;;  %v2986_v23 = vld [vmem:[#allocation3 + $0x2f8] sm:$0xf0] }
  0xf0   : > { %v1471_v55 = vadd.f32 %v1470_v52, %v1446_v46  ;;  %v2989_v26 = vor.u32 %v3484_v20, %v2986_v23  ;;  %v3130_v46 = vld [vmem:[#allocation3 + $0x418] sm:$0xf0]  ;;  %1908 = vmatpush.bf16.msrb.mxu0 %v2773_v41  ;;  %v3418_v20 = vld [vmem:[#allocation3 + $0xd4] sm:$0xf]  ;;  %v2722_v23 = vld [vmem:[#allocation3 + $0xe8] sm:$0xf0] }
  0xf1   : > { %v4014_v54 = vadd.f32 %v1515_v45, %v1492_v44  ;;  %1728 = vmatmul.bf16.gmra.mxu0 %v3948_v56  ;;  %v2965_v44 = vor.u32 %v3478_v35, %v2962_v36  ;;  %v3520_v45 = vld [vmem:[#allocation3 + $0x404] sm:$0xf]  ;;  %v2746_v52 = vld [vmem:[#allocation3 + $0x118] sm:$0xf0] }
  0xf2   : > { %1752 = vmatmul.bf16.gmra.mxu1 %v3950_v62  ;;  %v3133_v48 = vor.u32 %v3520_v45, %v3130_v46  ;;  %1982 = vmatpush.bf16.msrb.mxu3 %v3301_v21  ;;  %v3460_v45 = vld [vmem:[#allocation3 + $0x224] sm:$0xf]  ;;  %v3034_v21 = vld [vmem:[#allocation3 + $0x358] sm:$0xf0] }
  0xf3   : > { %1776 = vmatmul.bf16.gmra.mxu2 %v3952_v63  ;;  %1931 = vmatpush.bf16.msrb.mxu1 %v2989_v26  ;;  %v2725_v26 = vor.u32 %v3418_v20, %v2722_v23  ;;  %v3496_v20 = vld [vmem:[#allocation3 + $0x344] sm:$0xf] }
  0xf4   : > { %1800 = vmatmul.bf16.gmra.mxu3 %v3954_v4  ;;  %1957 = vmatpush.bf16.msrb.mxu2 %v3133_v48  ;;  %v3502_v48 = vld [vmem:[#allocation3 + $0x374] sm:$0xf]  ;;  %v3544_v23 = vld [vmem:[#allocation3 + $0x4c4] sm:$0xf]  ;;  %v3037_v24 = vor.u32 %v3496_v20, %v3034_v21 }
  0xf5   : > { %v3229_v29 = vor.u32 %v3544_v23, %v3226_v25 }
  0xf6   : > { %v1494_v7 = vpop.f32.mrf.mxu2  ;;  %v1448_v13 = vpop.f32.mrf.mxu0 }
  0xf7   : > { %v1495_v9 = vadd.f32 %v1494_v7, %v1471_v55  ;;  %v1518_v10 = vpop.f32.mrf.mxu3  ;;  %v1472_v14 = vpop.f32.mrf.mxu1  ;;  %1932 = vmatpush.bf16.msrb.mxu1 %v2965_v44  ;;  %v2749_v55 = vor.u32 %v3424_v51, %v2746_v52  ;;  %v2698_v44 = vld [vmem:[#allocation3 + $0xb8] sm:$0xf0]  ;;  %v2893_v51 = vor.u32 %v3460_v45, %v2890_v47  ;;  %v3061_v52 = vor.u32 %v3502_v48, %v3058_v50  ;;  %v2626_v47 = vld [vmem:[#allocation3 + $0x28] sm:$0xf0]  ;;  %v3442_v48 = vld [vmem:[#allocation3 + $0x194] sm:$0xf] }
  0xf8   : > { %v1473_v17 = vadd.f32 %v1472_v14, %v1448_v13  ;;  %v2818_v50 = vld [vmem:[#allocation3 + $0x1a8] sm:$0xf0] }
  0xf9   : > { %v4020_v16 = vadd.f32 %v1518_v10, %v1495_v9  ;;  %v3109_v10 = vor.u32 %v3514_v59, %v3106_v3  ;;  %1909 = vmatpush.bf16.msrb.mxu0 %v2749_v55  ;;  %v3250_v55 = vld [vmem:[#allocation3 + $0x508] sm:$0xf0] }
  0xfa   : > { %v3253_v58 = vor.u32 %v3550_v53, %v3250_v55  ;;  %v2674_v59 = vld [vmem:[#allocation3 + $0x88] sm:$0xf0] }
  0xfb   : > { %1933 = vmatpush.bf16.msrb.mxu1 %v2941_v0  ;;  %1958 = vmatpush.bf16.msrb.mxu2 %v3109_v10  ;;  %v2866_v0 = vld [vmem:[#allocation3 + $0x208] sm:$0xf0] }
  0xfd   : > { %1910 = vmatpush.bf16.msrb.mxu0 %v2725_v26  ;;  %v3400_v26 = vld [vmem:[#allocation3 + $0x44] sm:$0xf] }
  0xfe   : > { %v1496_v32 = vpop.f32.mrf.mxu2  ;;  %v1532_v39 = vpop.f32.mrf.mxu0 }
  0xff   : > { %v1497_v37 = vadd.f32 %v1496_v32, %v1473_v17  ;;  %v1520_v38 = vpop.f32.mrf.mxu3  ;;  %v1556_v40 = vpop.f32.mrf.mxu1  ;;  %1934 = vmatpush.bf16.msrb.mxu1 %v2917_v28  ;;  %1959 = vmatpush.bf16.msrb.mxu2 %v3085_v33  ;;  %v2650_v28 = vld [vmem:[#allocation3 + $0x58] sm:$0xf0]  ;;  %v3490_v33 = vld [vmem:[#allocation3 + $0x314] sm:$0xf] }
 0x100   : > { %v1557_v43 = vadd.f32 %v1556_v40, %v1532_v39  ;;  %v2653_v30 = vor.u32 %v3400_v26, %v2650_v28 }
 0x101   : > { %v4022_v42 = vadd.f32 %v1520_v38, %v1497_v37  ;;  %1733 = vmatmul.bf16.gmra.mxu0 %v3968_v6  ;;  %v3277_v38 = vor.u32 %v3556_v31, %v3274_v34  ;;  %v3448_v31 = vld [vmem:[#allocation3 + $0x1c4] sm:$0xf] }
 0x102   : > { %1757 = vmatmul.bf16.gmra.mxu1 %v3970_v11 }
 0x103   : > { %1781 = vmatmul.bf16.gmra.mxu2 %v3972_v12  ;;  %1983 = vmatpush.bf16.msrb.mxu3 %v3277_v38  ;;  %v3538_v38 = vld [vmem:[#allocation3 + $0x494] sm:$0xf] }
 0x104   : > { %1805 = vmatmul.bf16.gmra.mxu3 %v3974_v15  ;;  %1935 = vmatpush.bf16.msrb.mxu1 %v2893_v51 }
 0x105   : > { %1960 = vmatpush.bf16.msrb.mxu2 %v3061_v52 }
 0x106   : > { %v1580_v61 = vpop.f32.mrf.mxu2  ;;  %v1534_v9 = vpop.f32.mrf.mxu0 }
 0x107   : > { %v1581_v7 = vadd.f32 %v1580_v61, %v1557_v43  ;;  %v1604_v8 = vpop.f32.mrf.mxu3  ;;  %v1558_v13 = vpop.f32.mrf.mxu1  ;;  %v3412_v43 = vld [vmem:[#allocation3 + $0xa4] sm:$0xf]  ;;  %v3454_v61 = vld [vmem:[#allocation3 + $0x1f4] sm:$0xf]  ;;  %1984 = vmatpush.bf16.msrb.mxu3 %v3253_v58 }
 0x108   : > { %v1559_v17 = vadd.f32 %v1558_v13, %v1534_v9  ;;  %v2701_v46 = vor.u32 %v3412_v43, %v2698_v44 }
 0x109   : > { %v4028_v14 = vadd.f32 %v1604_v8, %v1581_v7  ;;  %v2677_v7 = vor.u32 %v3406_v57, %v2674_v59  ;;  %v2869_v8 = vor.u32 %v3454_v61, %v2866_v0  ;;  %1961 = vmatpush.bf16.msrb.mxu2 %v3037_v24  ;;  %v2821_v57 = vor.u32 %v3442_v48, %v2818_v50 }
 0x10a   : > { %1911 = vmatpush.bf16.msrb.mxu0 %v2701_v46 }
 0x10b   : > { %1936 = vmatpush.bf16.msrb.mxu1 %v2869_v8  ;;  %1985 = vmatpush.bf16.msrb.mxu3 %v3229_v29 }
 0x10e   : > { %v1582_v32 = vpop.f32.mrf.mxu2  ;;  %v1537_v37 = vpop.f32.mrf.mxu0  ;;  %1912 = vmatpush.bf16.msrb.mxu0 %v2677_v7 }
 0x10f   : > { %v1583_v35 = vadd.f32 %v1582_v32, %v1559_v17  ;;  %v1606_v36 = vpop.f32.mrf.mxu3  ;;  %v1561_v39 = vpop.f32.mrf.mxu1  ;;  %v2842_v32 = vld [vmem:[#allocation3 + $0x1d8] sm:$0xf0] }
 0x110   : > { %v1562_v41 = vadd.f32 %v1561_v39, %v1537_v37  ;;  %v2845_v34 = vor.u32 %v3448_v31, %v2842_v32  ;;  %v3202_v39 = vld [vmem:[#allocation3 + $0x4a8] sm:$0xf0] }
 0x111   : > { %v4030_v40 = vadd.f32 %v1606_v36, %v1583_v35  ;;  %1819 = vmatmul.bf16.vlgmr.msra.gmra.mxu0 %v3928_v60  ;;  %v3010_v35 = vld [vmem:[#allocation3 + $0x328] sm:$0xf0]  ;;  %v3205_v46 = vor.u32 %v3538_v38, %v3202_v39 }
 0x112   : > { %1843 = vmatmul.bf16.vlgmr.msra.gmra.mxu1 %v3930_v1  ;;  %1913 = vmatpush.bf16.msrb.mxu0 %v2653_v30  ;;  %v3013_v37 = vor.u32 %v3490_v33, %v3010_v35 }
 0x113   : > { %1867 = vmatmul.bf16.vlgmr.msra.gmra.mxu2 %v3932_v2  ;;  %1937 = vmatpush.bf16.msrb.mxu1 %v2845_v34 }
 0x114   : > { %1891 = vmatmul.bf16.vlgmr.msra.gmra.mxu3 %v3934_v5  ;;  %1962 = vmatpush.bf16.msrb.mxu2 %v3013_v37 }
 0x115   : > { %1986 = vmatpush.bf16.msrb.mxu3 %v3205_v46 }
 0x116   : > { %v1585_v3 = vpop.f32.mrf.mxu2  ;;  %v1539_v13 = vpop.f32.mrf.mxu0 }
 0x117   : > { %v1586_v9 = vadd.f32 %v1585_v3, %v1562_v41  ;;  %v1609_v10 = vpop.f32.mrf.mxu3  ;;  %v1563_v17 = vpop.f32.mrf.mxu1  ;;  %v3394_v41 = vld [vmem:[#allocation3 + $0x14] sm:$0xf]  ;;  %1938 = vmatpush.bf16.msrb.mxu1 %v2821_v57 }
 0x118   : > { %v1564_v19 = vadd.f32 %v1563_v17, %v1539_v13  ;;  %v2629_v52 = vor.u32 %v3394_v41, %v2626_v47 }
 0x119   : > { %v4036_v18 = vadd.f32 %v1609_v10, %v1586_v9 }
 0x11a   : > { %1914 = vmatpush.bf16.msrb.mxu0 %v2629_v52 }
 0x11e   : > { %v1587_v36 = vpop.f32.mrf.mxu2  ;;  %v1542_v45 = vpop.f32.mrf.mxu0 }
 0x11f   : > { %v1588_v43 = vadd.f32 %v1587_v36, %v1564_v19  ;;  %v1611_v44 = vpop.f32.mrf.mxu3  ;;  %v1566_v51 = vpop.f32.mrf.mxu1 }
 0x120   : > { %v1567_v55 = vadd.f32 %v1566_v51, %v1542_v45 }
 0x121   : > { %v4038_v53 = vadd.f32 %v1611_v44, %v1588_v43  ;;  %1824 = vmatmul.bf16.gmra.mxu0 %v3948_v56 }
 0x122   : > { %1848 = vmatmul.bf16.gmra.mxu1 %v3950_v62 }
 0x123   : > { %1872 = vmatmul.bf16.gmra.mxu2 %v3952_v63 }
 0x124   : > { %1896 = vmatmul.bf16.gmra.mxu3 %v3954_v4 }
 0x126   : > { %v1590_v58 = vpop.f32.mrf.mxu2  ;;  %v1544_v0 = vpop.f32.mrf.mxu0 }
 0x127   : > { %v1591_v59 = vadd.f32 %v1590_v58, %v1567_v55  ;;  %v1614_v61 = vpop.f32.mrf.mxu3  ;;  %v1568_v3 = vpop.f32.mrf.mxu1 }
 0x128   : > { %v1569_v8 = vadd.f32 %v1568_v3, %v1544_v0 }
 0x129   : > { %v4044_v7 = vadd.f32 %v1614_v61, %v1591_v59 }
 0x12e   : > { %v1592_v9 = vpop.f32.mrf.mxu2  ;;  %v1628_v17 = vpop.f32.mrf.mxu0 }
 0x12f   : > { %v1593_v10 = vadd.f32 %v1592_v9, %v1569_v8  ;;  %v1616_v13 = vpop.f32.mrf.mxu3  ;;  %v1652_v19 = vpop.f32.mrf.mxu1 }
 0x130   : > { %v1653_v21 = vadd.f32 %v1652_v19, %v1628_v17 }
 0x131   : > { %v4046_v20 = vadd.f32 %v1616_v13, %v1593_v10  ;;  %1829 = vmatmul.bf16.gmra.mxu0 %v3968_v6 }
 0x132   : > { %1853 = vmatmul.bf16.gmra.mxu1 %v3970_v11 }
 0x133   : > { %1877 = vmatmul.bf16.gmra.mxu2 %v3972_v12 }
 0x134   : > { %1901 = vmatmul.bf16.gmra.mxu3 %v3974_v15 }
 0x136   : > { %v1676_v23 = vpop.f32.mrf.mxu2  ;;  %v1630_v26 = vpop.f32.mrf.mxu0 }
 0x137   : > { %v1677_v24 = vadd.f32 %v1676_v23, %v1653_v21  ;;  %v1700_v25 = vpop.f32.mrf.mxu3  ;;  %v1654_v28 = vpop.f32.mrf.mxu1  ;;  %v2062_v23 = vstv %s2061_s19 }
 0x138   : > { %v1655_v30 = vadd.f32 %v1654_v28, %v1630_v26 }
 0x139   : > { %v4052_v29 = vadd.f32 %v1700_v25, %v1677_v24 }
 0x13e   : > { %v1678_v31 = vpop.f32.mrf.mxu2  ;;  %v1633_v34 = vpop.f32.mrf.mxu0 }
 0x13f   : > { %v1679_v32 = vadd.f32 %v1678_v31, %v1655_v30  ;;  %v1702_v33 = vpop.f32.mrf.mxu3  ;;  %v1657_v35 = vpop.f32.mrf.mxu1 }
 0x140   : > { %v1658_v37 = vadd.f32 %v1657_v35, %v1633_v34 }
 0x141   : > { %v4054_v36 = vadd.f32 %v1702_v33, %v1679_v32  ;;  %1915 = vmatmul.bf16.vlgmr.msrb.gmra.mxu0 %v3928_v60 }
 0x142   : > { %1939 = vmatmul.bf16.vlgmr.msrb.gmra.mxu1 %v3930_v1 }
 0x143   : > { %1963 = vmatmul.bf16.vlgmr.msrb.gmra.mxu2 %v3932_v2 }
 0x144   : > { %1987 = vmatmul.bf16.vlgmr.msrb.gmra.mxu3 %v3934_v5 }
 0x146   : > { %v1681_v38 = vpop.f32.mrf.mxu2  ;;  %v1635_v43 = vpop.f32.mrf.mxu0 }
 0x147   : > { %v1682_v39 = vadd.f32 %v1681_v38, %v1658_v37  ;;  %v1705_v41 = vpop.f32.mrf.mxu3  ;;  %v1659_v44 = vpop.f32.mrf.mxu1 }
 0x148   : > { %v1660_v46 = vadd.f32 %v1659_v44, %v1635_v43 }
 0x149   : > { %v4060_v45 = vadd.f32 %v1705_v41, %v1682_v39 }
 0x14e   : > { %v1683_v47 = vpop.f32.mrf.mxu2  ;;  %v1638_v51 = vpop.f32.mrf.mxu0 }
 0x14f   : > { %v1684_v48 = vadd.f32 %v1683_v47, %v1660_v46  ;;  %v1707_v50 = vpop.f32.mrf.mxu3  ;;  %v1662_v52 = vpop.f32.mrf.mxu1 }
 0x150   : > { %v1663_v1 = vadd.f32 %v1662_v52, %v1638_v51 }
 0x151   : > { %v4062_v60 = vadd.f32 %v1707_v50, %v1684_v48  ;;  %1920 = vmatmul.bf16.gmra.mxu0 %v3948_v56 }
 0x152   : > { %1944 = vmatmul.bf16.gmra.mxu1 %v3950_v62 }
 0x153   : > { %1968 = vmatmul.bf16.gmra.mxu2 %v3952_v63  ;;  %v2057_v63 = vlaneseq }
 0x154   : > { %1992 = vmatmul.bf16.gmra.mxu3 %v3954_v4 }
 0x155   : > { %v2058_v19 = vshrl.u32 %v2057_v63, 7 }
 0x156   : > { %v1686_v2 = vpop.f32.mrf.mxu2  ;;  %v1640_v57 = vpop.f32.mrf.mxu0 }
 0x157   : > { %v1687_v5 = vadd.f32 %v1686_v2, %v1663_v1  ;;  %v1710_v55 = vpop.f32.mrf.mxu3  ;;  %v1664_v58 = vpop.f32.mrf.mxu1  ;;  %v4080_v28 = vadd.s32 %v2062_v23, %v2058_v19  ;;  %v2059_v33 = vadd.s32 8, %v2058_v19  ;;  %v2060_v1 = vadd.s32 16, %v2058_v19 }
 0x158   : > { %v1665_v61 = vadd.f32 %v1664_v58, %v1640_v57 }
 0x159   : > { %v4068_v59 = vadd.f32 %v1710_v55, %v1687_v5  ;;  %vm2066_vm0 = vcmp.lt.s32.totalorder %v4080_v28, 42  ;;  %v4087_v41 = vadd.s32 %v2062_v23, %v2059_v33  ;;  %v4097_v58 = vadd.s32 %v2062_v23, %v2060_v1 }
 0x15b   : > { %vm2067_vm1 = vcmp.lt.s32.totalorder %v4087_v41, 42  ;;  %vm2068_vm2 = vcmp.lt.s32.totalorder %v4097_v58, 42 }
 0x15e   : > { %v1688_v0 = vpop.f32.mrf.mxu2  ;;  %v1724_v9 = vpop.f32.mrf.mxu0 }
 0x15f   : > { %v1689_v3 = vadd.f32 %v1688_v0, %v1665_v61  ;;  %v1712_v8 = vpop.f32.mrf.mxu3  ;;  %v1748_v56 = vpop.f32.mrf.mxu1 }
 0x160   : > { %v1749_v62 = vadd.f32 %v1748_v56, %v1724_v9 }
 0x161   : > { %v4070_v10 = vadd.f32 %v1712_v8, %v1689_v3  ;;  %1925 = vmatmul.bf16.gmra.mxu0 %v3968_v6  ;;  %v2003_v6 = vmul.f32 %v4004_v27, %v4004_v27  ;;  %v2006_v27 = vmul.f32 %v4006_v49, %v4006_v49  ;;  %v2009_v49 = vmul.f32 %v4012_v22, %v4012_v22 }
 0x162   : > { %1949 = vmatmul.bf16.gmra.mxu1 %v3970_v11 }
 0x163   : > { %1973 = vmatmul.bf16.gmra.mxu2 %v3972_v12 }
 0x164   : > { %1997 = vmatmul.bf16.gmra.mxu3 %v3974_v15 }
 0x166   : > { %v1772_v4 = vpop.f32.mrf.mxu2  ;;  %v1726_v21 = vpop.f32.mrf.mxu0 }
 0x167   : > { %v1773_v13 = vadd.f32 %v1772_v4, %v1749_v62  ;;  %v1796_v17 = vpop.f32.mrf.mxu3  ;;  %v1750_v24 = vpop.f32.mrf.mxu1 }
 0x168   : > { %v1751_v26 = vadd.f32 %v1750_v24, %v1726_v21 }
 0x169   : > { %v1797_v25 = vadd.f32 %v1796_v17, %v1773_v13  ;;  %v2030_v17 = vmul.f32 %v4014_v54, %v4014_v54 }
 0x16b   : > { %v2012_v11 = vmul.f32 %v1797_v25, %v1797_v25 }
 0x16d   : > { %v2021_v12 = vadd.f32 %v2012_v11, %v2003_v6 }
 0x16e   : > { %v1774_v30 = vpop.f32.mrf.mxu2  ;;  %v1729_v32 = vpop.f32.mrf.mxu0 }
 0x16f   : > { %v1775_v15 = vadd.f32 %v1774_v30, %v1751_v26  ;;  %v1798_v31 = vpop.f32.mrf.mxu3  ;;  %v1753_v34 = vpop.f32.mrf.mxu1  ;;  %v2075_v38 = vsel %vm2066_vm0, %v2021_v12, 0.0 }
 0x170   : > { %v1754_v37 = vadd.f32 %v1753_v34, %v1729_v32  ;;  %v4089_v43 = vmax.f32 %v2075_v38, 1e-07  ;;  %v2033_v38 = vmul.f32 %v4020_v16, %v4020_v16 }
 0x171   : > { %v1799_v35 = vadd.f32 %v1798_v31, %v1775_v15 }
 0x172   : > { %3645 = vrsqrt.f32 %v4089_v43  ;;  %vm2118_vm3 = vcmp.eq.f32.partialorder %v4089_v43, inf  ;;  %vm2120_vm4 = vcmp.eq.f32.partialorder %v4089_v43, 0.0 }
 0x173   : > { %v2015_v39 = vmul.f32 %v1799_v35, %v1799_v35 }
 0x175   : > { %v2024_v44 = vadd.f32 %v2015_v39, %v2006_v27 }
 0x176   : > { %v1777_v46 = vpop.f32.mrf.mxu2  ;;  %v1731_v50 = vpop.f32.mrf.mxu0 }
 0x177   : > { %v1778_v47 = vadd.f32 %v1777_v46, %v1754_v37  ;;  %v1801_v48 = vpop.f32.mrf.mxu3  ;;  %v1755_v51 = vpop.f32.mrf.mxu1  ;;  %v2078_v5 = vsel %vm2067_vm1, %v2024_v44, 0.0 }
 0x178   : > { %v1756_v2 = vadd.f32 %v1755_v51, %v1731_v50  ;;  %v4099_v61 = vmax.f32 %v2078_v5, 1e-07  ;;  %v3646_v3 = vpop.eup %3645 }
 0x179   : > { %v1802_v52 = vadd.f32 %v1801_v48, %v1778_v47  ;;  %v2112_v22 = vmul.f32 %v3646_v3, %v4089_v43 }
 0x17a   : > { %3647 = vrsqrt.f32 %v4099_v61  ;;  %vm2154_vm7 = vcmp.eq.f32.partialorder %v4099_v61, inf  ;;  %vm2156_vm8 = vcmp.eq.f32.partialorder %v4099_v61, 0.0 }
 0x17b   : > { %v2018_v55 = vmul.f32 %v1802_v52, %v1802_v52  ;;  %3649 = vrcp.f32 %v4089_v43  ;;  %v2113_v25 = vmul.f32 %v3646_v3, %v2112_v22 }
 0x17c   : > { %3651 = vrcp.f32 %v4099_v61 }
 0x17d   : > { %v2027_v57 = vadd.f32 %v2018_v55, %v2009_v49  ;;  %v2114_v37 = vmul.f32 0.5, %v2113_v25 }
 0x17e   : > { %v1779_v0 = vpop.f32.mrf.mxu2  ;;  %v1734_v56 = vpop.f32.mrf.mxu0 }
 0x17f   : > { %v1780_v8 = vadd.f32 %v1779_v0, %v1756_v2  ;;  %v1803_v9 = vpop.f32.mrf.mxu3  ;;  %v1758_v62 = vpop.f32.mrf.mxu1  ;;  %v2081_v21 = vsel %vm2068_vm2, %v2027_v57, 0.0  ;;  %v2115_v47 = vsub.f32 1.5, %v2114_v37 }
 0x180   : > { %v1759_v13 = vadd.f32 %v1758_v62, %v1734_v56  ;;  %v4109_v26 = vmax.f32 %v2081_v21, 1e-07  ;;  %v4113_v15 = vpop.eup %3647 }
 0x181   : > { %v1804_v4 = vadd.f32 %v1803_v9, %v1780_v8  ;;  %v3650_v32 = vpop.eup %3649  ;;  %v2148_v39 = vmul.f32 %v4113_v15, %v4099_v61  ;;  %v2036_v9 = vmul.f32 %v4022_v42, %v4022_v42  ;;  %v2116_v62 = vmul.f32 %v3646_v3, %v2115_v47 }
 0x182   : > { %v3652_v48 = vpop.eup %3651  ;;  %vm2190_vm11 = vcmp.eq.f32.partialorder %v4109_v26, inf  ;;  %vm2192_vm13 = vcmp.eq.f32.partialorder %v4109_v26, 0.0 }
 0x183   : > { %v2039_v19 = vmul.f32 %v1804_v4, %v1804_v4  ;;  %v2149_v2 = vmul.f32 %v4113_v15, %v2148_v39 }
 0x185   : > { %v2048_v23 = vadd.f32 %v2039_v19, %v2030_v17 }
 0x186   : > { %v1782_v24 = vpop.f32.mrf.mxu2  ;;  %v1736_v30 = vpop.f32.mrf.mxu0 }
 0x187   : > { %v2084_v6 = vsel %vm2066_vm0, %v2048_v23, 0.0  ;;  %v1783_v11 = vadd.f32 %v1782_v24, %v1759_v13  ;;  %v1806_v12 = vpop.f32.mrf.mxu3  ;;  %v1760_v31 = vpop.f32.mrf.mxu1  ;;  %v2150_v13 = vmul.f32 0.5, %v2149_v2  ;;  %v2117_v24 = vmul.f32 %v2116_v62, %v4089_v43 }
 0x188   : > { %v4115_v54 = vmax.f32 %v2084_v6, 1e-07  ;;  %v1761_v34 = vadd.f32 %v1760_v31, %v1736_v30  ;;  %v2004_v31 = vmul.f32 %v4028_v14, %v4028_v14 }
 0x189   : > { %v1807_v33 = vadd.f32 %v1806_v12, %v1783_v11  ;;  %v2151_v11 = vsub.f32 1.5, %v2150_v13  ;;  %v2119_v47 = vsel %vm2118_vm3, %v4089_v43, %v2117_v24 }
 0x18a   : > { %v4119_v35 = vmul.f32 %v3650_v32, %v4115_v54  ;;  %3653 = vrsqrt.f32 %v4115_v54  ;;  %vm2226_vm5 = vcmp.eq.f32.partialorder %v4115_v54, inf  ;;  %vm2228_vm6 = vcmp.eq.f32.partialorder %v4115_v54, 0.0 }
 0x18b   : > { %v2042_v27 = vmul.f32 %v1807_v33, %v1807_v33  ;;  %3655 = vrsqrt.f32 %v4109_v26 }
 0x18d   : > { %v2051_v44 = vadd.f32 %v2042_v27, %v2033_v38 }
 0x18e   : > { %v1784_v46 = vpop.f32.mrf.mxu2  ;;  %v1820_v1 = vpop.f32.mrf.mxu0 }
 0x18f   : > { %v2087_v50 = vsel %vm2067_vm1, %v2051_v44, 0.0  ;;  %v1785_v51 = vadd.f32 %v1784_v46, %v1761_v34  ;;  %v1808_v52 = vpop.f32.mrf.mxu3  ;;  %v1844_v5 = vpop.f32.mrf.mxu1 }
 0x190   : > { %v3654_v49 = vpop.eup %3653  ;;  %v4130_v16 = vmax.f32 %v2087_v50, 1e-07  ;;  %v1845_v0 = vadd.f32 %v1844_v5, %v1820_v1  ;;  %v2229_v1 = vand.u32 2147483648, %v4115_v54 }
 0x191   : > { %v4132_v55 = vpop.eup %3655  ;;  %v1809_v57 = vadd.f32 %v1808_v52, %v1785_v51  ;;  %v2220_v8 = vmul.f32 %v3654_v49, %v4115_v54  ;;  %v2121_v52 = vand.u32 2147483648, %v4089_v43 }
 0x192   : > { %v4138_v56 = vmul.f32 %v3652_v48, %v4130_v16  ;;  %3657 = vrsqrt.f32 %v4130_v16  ;;  %v2184_v17 = vmul.f32 %v4132_v55, %v4109_v26  ;;  %v2152_v48 = vmul.f32 %v4113_v15, %v2151_v11 }
 0x193   : > { %v2045_v4 = vmul.f32 %v1809_v57, %v1809_v57  ;;  %3659 = vrcp.f32 %v4109_v26  ;;  %v2221_v22 = vmul.f32 %v3654_v49, %v2220_v8  ;;  %v2122_v8 = vsel %vm2120_vm4, %v2121_v52, %v2119_v47 }
 0x194   : > { %v2185_v34 = vmul.f32 %v4132_v55, %v2184_v17  ;;  %v2153_v13 = vmul.f32 %v2152_v48, %v4099_v61  ;;  %vm2262_vm9 = vcmp.eq.f32.partialorder %v4130_v16, inf  ;;  %vm2264_vm10 = vcmp.eq.f32.partialorder %v4130_v16, 0.0 }
 0x195   : > { %v2054_v19 = vadd.f32 %v2045_v4, %v2036_v9  ;;  %v2222_v21 = vmul.f32 0.5, %v2221_v22 }
 0x196   : > { %v1868_v23 = vpop.f32.mrf.mxu2  ;;  %v1822_v6 = vpop.f32.mrf.mxu0 }
 0x197   : > { %v2090_v42 = vsel %vm2068_vm2, %v2054_v19, 0.0  ;;  %v1869_v25 = vadd.f32 %v1868_v23, %v1845_v0  ;;  %v1892_v3 = vpop.f32.mrf.mxu3  ;;  %v2223_v12 = vsub.f32 1.5, %v2222_v21  ;;  %v1846_v33 = vpop.f32.mrf.mxu1 }
 0x198   : > { %v3658_v30 = vpop.eup %3657  ;;  %v4149_v32 = vmax.f32 %v2090_v42, 1e-07  ;;  %v1847_v27 = vadd.f32 %v1846_v33, %v1822_v6  ;;  %v2265_v33 = vand.u32 2147483648, %v4130_v16 }
 0x199   : > { %v3660_v37 = vpop.eup %3659  ;;  %v1893_v38 = vadd.f32 %v1892_v3, %v1869_v25  ;;  %v2224_v39 = vmul.f32 %v3654_v49, %v2223_v12  ;;  %v2256_v44 = vmul.f32 %v3658_v30, %v4130_v16  ;;  %v2186_v49 = vmul.f32 0.5, %v2185_v34 }
 0x19a   : > { %v4155_v46 = vmul.f32 %v3660_v37, %v4149_v32  ;;  %3661 = vrsqrt.f32 %v4149_v32  ;;  %v2007_v25 = vmul.f32 %v4030_v40, %v4030_v40  ;;  %v2157_v3 = vand.u32 2147483648, %v4099_v61 }
 0x19b   : > { %v2013_v14 = vmul.f32 %v1893_v38, %v1893_v38  ;;  %v2225_v50 = vmul.f32 %v2224_v39, %v4115_v54  ;;  %v2257_v51 = vmul.f32 %v3658_v30, %v2256_v44  ;;  %v2187_v23 = vsub.f32 1.5, %v2186_v49 }
 0x19c   : > { %v2155_v12 = vsel %vm2154_vm7, %v4099_v61, %v2153_v13  ;;  %v2193_v13 = vand.u32 2147483648, %v4109_v26  ;;  %vm2298_vm12 = vcmp.eq.f32.partialorder %v4149_v32, inf  ;;  %vm2300_vm14 = vcmp.eq.f32.partialorder %v4149_v32, 0.0 }
 0x19d   : > { %v2022_v2 = vadd.f32 %v2013_v14, %v2004_v31  ;;  %v2227_v5 = vsel %vm2226_vm5, %v4115_v54, %v2225_v50  ;;  %v2258_v57 = vmul.f32 0.5, %v2257_v51  ;;  %v2188_v37 = vmul.f32 %v4132_v55, %v2187_v23 }
 0x19e   : > { %v1870_v0 = vpop.f32.mrf.mxu2  ;;  %v2230_v9 = vsel %vm2228_vm6, %v2229_v1, %v2227_v5  ;;  %v1825_v4 = vpop.f32.mrf.mxu0  ;;  %v2158_v39 = vsel %vm2156_vm8, %v2157_v3, %v2155_v12  ;;  %v2031_v12 = vmul.f32 %v4038_v53, %v4038_v53 }
 0x19f   : > { %v1871_v15 = vadd.f32 %v1870_v0, %v1847_v27  ;;  %v1894_v62 = vpop.f32.mrf.mxu3  ;;  %v2259_v43 = vsub.f32 1.5, %v2258_v57  ;;  %v4168_v22 = vsub.f32 %v2230_v9, %v2122_v8  ;;  %v1849_v19 = vpop.f32.mrf.mxu1  ;;  %v2189_v55 = vmul.f32 %v2188_v37, %v4109_v26 }
 0x1a0   : > { %v3662_v17 = vpop.eup %3661  ;;  %v1850_v11 = vadd.f32 %v1849_v19, %v1825_v4 }
 0x1a1   : > { %v1895_v21 = vadd.f32 %v1894_v62, %v1871_v15  ;;  %v2260_v24 = vmul.f32 %v3658_v30, %v2259_v43  ;;  %v2292_v42 = vmul.f32 %v3662_v17, %v4149_v32  ;;  %v2076_v30 = vsel %vm2066_vm0, %v2022_v2, 0.0 }
 0x1a2   : > { %v4185_v47 = vmax.f32 %v2076_v30, 1e-07  ;;  %v2191_v9 = vsel %vm2190_vm11, %v4109_v26, %v2189_v55  ;;  %v2010_v62 = vmul.f32 %v4036_v18, %v4036_v18  ;;  %v2301_v43 = vand.u32 2147483648, %v4149_v32 }
 0x1a3   : > { %v2016_v6 = vmul.f32 %v1895_v21, %v1895_v21  ;;  %v2261_v31 = vmul.f32 %v2260_v24, %v4130_v16  ;;  %v2293_v40 = vmul.f32 %v3662_v17, %v2292_v42  ;;  %v2034_v55 = vmul.f32 %v4044_v7, %v4044_v7 }
 0x1a4   : > { %3663 = vrsqrt.f32 %v4185_v47  ;;  %vm2130_vm15 = vcmp.eq.f32.partialorder %v4185_v47, inf  ;;  %vm2132_vm4 = vcmp.eq.f32.partialorder %v4185_v47, 0.0 }
 0x1a5   : > { %v2025_v34 = vadd.f32 %v2016_v6, %v2007_v25  ;;  %v2263_v38 = vsel %vm2262_vm9, %v4130_v16, %v2261_v31  ;;  %v2294_v44 = vmul.f32 0.5, %v2293_v40  ;;  %v2194_v25 = vsel %vm2192_vm13, %v2193_v13, %v2191_v9 }
 0x1a6   : > { %v1873_v27 = vpop.f32.mrf.mxu2  ;;  %v2266_v61 = vsel %vm2264_vm10, %v2265_v33, %v2263_v38  ;;  %v1827_v50 = vpop.f32.mrf.mxu0 }
 0x1a7   : > { %v1874_v14 = vadd.f32 %v1873_v27, %v1850_v11  ;;  %v1897_v48 = vpop.f32.mrf.mxu3  ;;  %v4187_v51 = vsub.f32 %v2266_v61, %v2158_v39  ;;  %v1851_v52 = vpop.f32.mrf.mxu1  ;;  %v2295_v1 = vsub.f32 1.5, %v2294_v44  ;;  %v2079_v49 = vsel %vm2067_vm1, %v2025_v34, 0.0 }
 0x1a8   : > { %v4194_v0 = vmax.f32 %v2079_v49, 1e-07  ;;  %v1852_v8 = vadd.f32 %v1851_v52, %v1827_v50 }
 0x1a9   : > { %v1898_v2 = vadd.f32 %v1897_v48, %v1874_v14  ;;  %v2296_v5 = vmul.f32 %v3662_v17, %v2295_v1 }
 0x1aa   : > { %v3664_v3 = vpop.eup %3663  ;;  %3665 = vrsqrt.f32 %v4194_v0  ;;  %vm2166_vm6 = vcmp.eq.f32.partialorder %v4194_v0, inf  ;;  %vm2168_vm7 = vcmp.eq.f32.partialorder %v4194_v0, 0.0 }
 0x1ab   : > { %v2019_v57 = vmul.f32 %v1898_v2, %v1898_v2  ;;  %v2297_v15 = vmul.f32 %v2296_v5, %v4149_v32  ;;  %3667 = vrcp.f32 %v4185_v47  ;;  %v2124_v33 = vmul.f32 %v3664_v3, %v4185_v47 }
 0x1ac   : > { %3669 = vlog2.f32 %v4119_v35 }
 0x1ad   : > { %v2299_v23 = vsel %vm2298_vm12, %v4149_v32, %v2297_v15  ;;  %v2028_v24 = vadd.f32 %v2019_v57, %v2010_v62  ;;  %v2125_v48 = vmul.f32 %v3664_v3, %v2124_v33  ;;  %3671 = vrcp.f32 %v4194_v0 }
 0x1ae   : > { %v1875_v4 = vpop.f32.mrf.mxu2  ;;  %v1830_v21 = vpop.f32.mrf.mxu0  ;;  %v2302_v18 = vsel %vm2300_vm14, %v2301_v43, %v2299_v23 }
 0x1af   : > { %v1876_v17 = vadd.f32 %v1875_v4, %v1852_v8  ;;  %v1899_v19 = vpop.f32.mrf.mxu3  ;;  %v1854_v42 = vpop.f32.mrf.mxu1  ;;  %v4207_v11 = vsub.f32 %v2302_v18, %v2194_v25  ;;  %v2082_v26 = vsel %vm2068_vm2, %v2028_v24, 0.0  ;;  %v2126_v35 = vmul.f32 0.5, %v2125_v48 }
 0x1b0   : > { %v1855_v30 = vadd.f32 %v1854_v42, %v1830_v21  ;;  %v4215_v37 = vpop.eup %3665  ;;  %v4217_v38 = vmax.f32 %v2082_v26, 1e-07 }
 0x1b1   : > { %v1900_v6 = vadd.f32 %v1899_v19, %v1876_v17  ;;  %v3668_v50 = vpop.eup %3667  ;;  %v2160_v2 = vmul.f32 %v4215_v37, %v4194_v0  ;;  %v2127_v24 = vsub.f32 1.5, %v2126_v35 }
 0x1b2   : > { %v3670_v9 = vpop.eup %3669  ;;  %vm2202_vm10 = vcmp.eq.f32.partialorder %v4217_v38, inf  ;;  %vm2204_vm12 = vcmp.eq.f32.partialorder %v4217_v38, 0.0 }
 0x1b3   : > { %v2040_v31 = vmul.f32 %v1900_v6, %v1900_v6  ;;  %v2161_v62 = vmul.f32 %v4215_v37, %v2160_v2  ;;  %v3672_v4 = vpop.eup %3671  ;;  %v2398_v25 = vmul.f32 0.6931472, %v3670_v9 }
 0x1b5   : > { %v2049_v40 = vadd.f32 %v2040_v31, %v2031_v12  ;;  %v2037_v12 = vmul.f32 %v4046_v20, %v4046_v20 }
 0x1b6   : > { %v1878_v34 = vpop.f32.mrf.mxu2  ;;  %v1832_v61 = vpop.f32.mrf.mxu0 }
 0x1b7   : > { %v2085_v27 = vsel %vm2066_vm0, %v2049_v40, 0.0  ;;  %v1879_v39 = vadd.f32 %v1878_v34, %v1855_v30  ;;  %v1902_v53 = vpop.f32.mrf.mxu3  ;;  %v1856_v14 = vpop.f32.mrf.mxu1  ;;  %v2162_v30 = vmul.f32 0.5, %v2161_v62 }
 0x1b8   : > { %v4221_v44 = vmax.f32 %v2085_v27, 1e-07  ;;  %v1857_v8 = vadd.f32 %v1856_v14, %v1832_v61  ;;  %v2128_v27 = vmul.f32 %v3664_v3, %v2127_v24  ;;  %v2415_v61 = vand.u32 2147483647, %v2398_v25 }
 0x1b9   : > { %v1903_v52 = vadd.f32 %v1902_v53, %v1879_v39  ;;  %v2163_v20 = vsub.f32 1.5, %v2162_v30 }
 0x1ba   : > { %v2389_v1 = vmul.f32 %v3668_v50, %v4221_v44  ;;  %3673 = vrsqrt.f32 %v4221_v44  ;;  %v4234_v5 = vadd.f32 %v4221_v44, %v4115_v54  ;;  %v2129_v9 = vmul.f32 %v2128_v27, %v4185_v47 }
 0x1bb   : > { %v2043_v49 = vmul.f32 %v1903_v52, %v1903_v52  ;;  %3675 = vrsqrt.f32 %v4217_v38  ;;  %vm2238_vm3 = vcmp.eq.f32.partialorder %v4221_v44, inf  ;;  %vm2240_vm5 = vcmp.eq.f32.partialorder %v4221_v44, 0.0 }
 0x1bc   : > { %3677 = vlog2.f32 %v2389_v1 }
 0x1bd   : > { %v2052_v57 = vadd.f32 %v2043_v49, %v2034_v55  ;;  %3679 = vrcp.f32 %v4217_v38 }
 0x1be   : > { %v1880_v15 = vpop.f32.mrf.mxu2  ;;  %v1916_v17 = vpop.f32.mrf.mxu0 }
 0x1bf   : > { %v2088_v13 = vsel %vm2067_vm1, %v2052_v57, 0.0  ;;  %v1881_v7 = vadd.f32 %v1880_v15, %v1857_v8  ;;  %v1904_v43 = vpop.f32.mrf.mxu3  ;;  %v1940_v23 = vpop.f32.mrf.mxu1 }
 0x1c0   : > { %v3674_v19 = vpop.eup %3673  ;;  %v4239_v21 = vmax.f32 %v2088_v13, 1e-07  ;;  %v1941_v33 = vadd.f32 %v1940_v23, %v1916_v17  ;;  %v2164_v17 = vmul.f32 %v4215_v37, %v2163_v20  ;;  %v2241_v37 = vand.u32 2147483648, %v4221_v44 }
 0x1c1   : > { %v4241_v54 = vpop.eup %3675  ;;  %v1905_v42 = vadd.f32 %v1904_v43, %v1881_v7  ;;  %v2232_v18 = vmul.f32 %v3674_v19, %v4221_v44 }
 0x1c2   : > { %v3678_v6 = vpop.eup %3677  ;;  %v4248_v31 = vmul.f32 %v3672_v4, %v4239_v21  ;;  %3681 = vrsqrt.f32 %v4239_v21  ;;  %v2196_v39 = vmul.f32 %v4241_v54, %v4217_v38  ;;  %v2005_v4 = vmul.f32 %v4052_v29, %v4052_v29 }
 0x1c3   : > { %v2046_v26 = vmul.f32 %v1905_v42, %v1905_v42  ;;  %v2400_v40 = vmul.f32 0.6931472, %v3678_v6  ;;  %v2233_v34 = vmul.f32 %v3674_v19, %v2232_v18  ;;  %v3680_v52 = vpop.eup %3679  ;;  %v2133_v42 = vand.u32 2147483648, %v4185_v47 }
 0x1c4   : > { %v2197_v15 = vmul.f32 %v4241_v54, %v2196_v39  ;;  %v2131_v18 = vsel %vm2130_vm15, %v4185_v47, %v2129_v9  ;;  %vm2274_vm8 = vcmp.eq.f32.partialorder %v4239_v21, inf  ;;  %vm2276_vm9 = vcmp.eq.f32.partialorder %v4239_v21, 0.0 }
 0x1c5   : > { %v2055_v53 = vadd.f32 %v2046_v26, %v2037_v12  ;;  %v2416_v14 = vand.u32 2147483647, %v2400_v40  ;;  %v2234_v48 = vmul.f32 0.5, %v2233_v34 }
 0x1c6   : > { %v1964_v50 = vpop.f32.mrf.mxu2  ;;  %v1918_v49 = vpop.f32.mrf.mxu0  ;;  %v2198_v29 = vmul.f32 0.5, %v2197_v15 }
 0x1c7   : > { %v2091_v1 = vsel %vm2068_vm2, %v2055_v53, 0.0  ;;  %v1965_v2 = vadd.f32 %v1964_v50, %v1941_v33  ;;  %v1988_v55 = vpop.f32.mrf.mxu3  ;;  %v4255_v35 = vadd.f32 %v2416_v14, %v2415_v61  ;;  %v1942_v8 = vpop.f32.mrf.mxu1  ;;  %v2235_v62 = vsub.f32 1.5, %v2234_v48 }
 0x1c8   : > { %v3682_v57 = vpop.eup %3681  ;;  %v4257_v3 = vmax.f32 %v2091_v1, 1e-07  ;;  %v1943_v30 = vadd.f32 %v1942_v8, %v1918_v49  ;;  %v2165_v33 = vmul.f32 %v2164_v17, %v4194_v0  ;;  %v2134_v53 = vsel %vm2132_vm4, %v2133_v42, %v2131_v18 }
 0x1c9   : > { %v1989_v13 = vadd.f32 %v1988_v55, %v1965_v2  ;;  %v2268_v7 = vmul.f32 %v3682_v57, %v4239_v21  ;;  %v2236_v23 = vmul.f32 %v3674_v19, %v2235_v62  ;;  %v2008_v50 = vmul.f32 %v4054_v36, %v4054_v36 }
 0x1ca   : > { %v4265_v43 = vmul.f32 %v3680_v52, %v4257_v3  ;;  %3683 = vrsqrt.f32 %v4257_v3  ;;  %v2199_v47 = vsub.f32 1.5, %v2198_v29  ;;  %v2167_v49 = vsel %vm2166_vm6, %v4194_v0, %v2165_v33 }
 0x1cb   : > { %v2014_v24 = vmul.f32 %v1989_v13, %v1989_v13  ;;  %v2269_v25 = vmul.f32 %v3682_v57, %v2268_v7  ;;  %v2237_v6 = vmul.f32 %v2236_v23, %v4221_v44  ;;  %v2169_v8 = vand.u32 2147483648, %v4194_v0 }
 0x1cc   : > { %v2336_v36 = vmul.f32 %v4168_v22, %v4168_v22  ;;  %v2200_v23 = vmul.f32 %v4241_v54, %v2199_v47  ;;  %vm2310_vm11 = vcmp.eq.f32.partialorder %v4257_v3, inf  ;;  %vm2312_vm13 = vcmp.eq.f32.partialorder %v4257_v3, 0.0 }
 0x1cd   : > { %v2023_v12 = vadd.f32 %v2014_v24, %v2005_v4  ;;  %v2270_v19 = vmul.f32 0.5, %v2269_v25  ;;  %v2239_v40 = vsel %vm2238_vm3, %v4221_v44, %v2237_v6  ;;  %v2170_v17 = vsel %vm2168_vm7, %v2169_v8, %v2167_v49 }
 0x1ce   : > { %v1966_v26 = vpop.f32.mrf.mxu2  ;;  %v1921_v39 = vpop.f32.mrf.mxu0  ;;  %v2242_v61 = vsel %vm2240_vm5, %v2241_v37, %v2239_v40 }
 0x1cf   : > { %v1967_v34 = vadd.f32 %v1966_v26, %v1943_v30  ;;  %v1990_v27 = vpop.f32.mrf.mxu3  ;;  %v2271_v14 = vsub.f32 1.5, %v2270_v19  ;;  %v1945_v20 = vpop.f32.mrf.mxu1  ;;  %v2328_v52 = vsub.f32 %v2242_v61, %v2134_v53  ;;  %v2077_v1 = vsel %vm2066_vm0, %v2023_v12, 0.0 }
 0x1d0   : > { %v3684_v48 = vpop.eup %3683  ;;  %v1946_v15 = vadd.f32 %v1945_v20, %v1921_v39  ;;  %v4292_v4 = vmax.f32 %v2077_v1, 1e-07  ;;  %v2201_v26 = vmul.f32 %v2200_v23, %v4217_v38 }
 0x1d1   : > { %v1991_v2 = vadd.f32 %v1990_v27, %v1967_v34  ;;  %v2272_v44 = vmul.f32 %v3682_v57, %v2271_v14  ;;  %v2304_v55 = vmul.f32 %v3684_v48, %v4257_v3  ;;  %v2277_v57 = vand.u32 2147483648, %v4239_v21 }
 0x1d2   : > { %v2337_v7 = vmul.f32 %v2328_v52, %v2328_v52  ;;  %3685 = vrsqrt.f32 %v4292_v4  ;;  %v2011_v27 = vmul.f32 %v4060_v45, %v4060_v45  ;;  %v2203_v61 = vsel %vm2202_vm10, %v4217_v38, %v2201_v26 }
 0x1d3   : > { %v2017_v9 = vmul.f32 %v1991_v2, %v1991_v2  ;;  %v2273_v62 = vmul.f32 %v2272_v44, %v4239_v21  ;;  %v2305_v13 = vmul.f32 %v3684_v48, %v2304_v55  ;;  %v2205_v52 = vand.u32 2147483648, %v4217_v38 }
 0x1d4   : > { %v4298_v18 = vadd.f32 %v2337_v7, %v2336_v36  ;;  %v2032_v38 = vmul.f32 %v4062_v60, %v4062_v60 }
 0x1d5   : > { %v2275_v0 = vsel %vm2274_vm8, %v4239_v21, %v2273_v62  ;;  %v2026_v22 = vadd.f32 %v2017_v9, %v2008_v50  ;;  %v2306_v25 = vmul.f32 0.5, %v2305_v13  ;;  %v2206_v49 = vsel %vm2204_vm12, %v2205_v52, %v2203_v61 }
 0x1d6   : > { %v1969_v24 = vpop.f32.mrf.mxu2  ;;  %v2278_v42 = vsel %vm2276_vm9, %v2277_v57, %v2275_v0  ;;  %v1923_v12 = vpop.f32.mrf.mxu0 }
 0x1d7   : > { %v1970_v29 = vadd.f32 %v1969_v24, %v1946_v15  ;;  %v1993_v6 = vpop.f32.mrf.mxu3  ;;  %v4300_v30 = vsub.f32 %v2278_v42, %v2170_v17  ;;  %v1947_v37 = vpop.f32.mrf.mxu1  ;;  %v2307_v19 = vsub.f32 1.5, %v2306_v25  ;;  %v2080_v33 = vsel %vm2067_vm1, %v2026_v22, 0.0 }
 0x1d8   : > { %v4309_v39 = vmax.f32 %v2080_v33, 1e-07  ;;  %v1948_v53 = vadd.f32 %v1947_v37, %v1923_v12  ;;  %v4313_v50 = vpop.eup %3685 }
 0x1d9   : > { %v1994_v54 = vadd.f32 %v1993_v6, %v1970_v29  ;;  %v2308_v34 = vmul.f32 %v3684_v48, %v2307_v19  ;;  %v2313_v48 = vand.u32 2147483648, %v4257_v3  ;;  %v2136_v9 = vmul.f32 %v4313_v50, %v4292_v4 }
 0x1da   : > { %3687 = vrsqrt.f32 %v4309_v39  ;;  %vm2178_vm15 = vcmp.eq.f32.partialorder %v4309_v39, inf  ;;  %vm2180_vm3 = vcmp.eq.f32.partialorder %v4309_v39, 0.0 }
 0x1db   : > { %v2020_v40 = vmul.f32 %v1994_v54, %v1994_v54  ;;  %v2309_v14 = vmul.f32 %v2308_v34, %v4257_v3  ;;  %3689 = vrcp.f32 %v4292_v4  ;;  %v2137_v23 = vmul.f32 %v4313_v50, %v2136_v9 }
 0x1dc   : > { %3691 = vlog2.f32 %v4138_v56 }
 0x1dd   : > { %v2029_v20 = vadd.f32 %v2020_v40, %v2011_v27  ;;  %v2311_v2 = vsel %vm2310_vm11, %v4257_v3, %v2309_v14  ;;  %3693 = vlog2.f32 %v4248_v31  ;;  %v2138_v6 = vmul.f32 0.5, %v2137_v23 }
 0x1de   : > { %v1971_v47 = vpop.f32.mrf.mxu2  ;;  %v1926_v44 = vpop.f32.mrf.mxu0  ;;  %v2314_v8 = vsel %vm2312_vm13, %v2313_v48, %v2311_v2  ;;  %3695 = vlog2.f32 %v4155_v46  ;;  %v2035_v31 = vmul.f32 %v4068_v59, %v4068_v59 }
 0x1df   : > { %v1972_v45 = vadd.f32 %v1971_v47, %v1948_v53  ;;  %v1995_v1 = vpop.f32.mrf.mxu3  ;;  %v1950_v55 = vpop.f32.mrf.mxu1  ;;  %v4324_v15 = vsub.f32 %v2314_v8, %v2206_v49  ;;  %v2083_v62 = vsel %vm2068_vm2, %v2029_v20, 0.0  ;;  %v2139_v53 = vsub.f32 1.5, %v2138_v6 }
 0x1e0   : > { %v1951_v13 = vadd.f32 %v1950_v55, %v1926_v44  ;;  %v4332_v7 = vmax.f32 %v2083_v62, 1e-07  ;;  %v4335_v22 = vpop.eup %3687 }
 0x1e1   : > { %v1996_v36 = vadd.f32 %v1995_v1, %v1972_v45  ;;  %v3690_v56 = vpop.eup %3689  ;;  %v2172_v28 = vmul.f32 %v4335_v22, %v4309_v39  ;;  %v2038_v45 = vmul.f32 %v4070_v10, %v4070_v10 }
 0x1e2   : > { %3697 = vrsqrt.f32 %v4332_v7  ;;  %v3692_v12 = vpop.eup %3691  ;;  %vm2214_vm6 = vcmp.eq.f32.partialorder %v4332_v7, inf  ;;  %vm2216_vm7 = vcmp.eq.f32.partialorder %v4332_v7, 0.0 }
 0x1e3   : > { %v2041_v57 = vmul.f32 %v1996_v36, %v1996_v36  ;;  %v3694_v33 = vpop.eup %3693  ;;  %v2404_v27 = vmul.f32 0.6931472, %v3692_v12  ;;  %v2173_v20 = vmul.f32 %v4335_v22, %v2172_v28  ;;  %v2140_v36 = vmul.f32 %v4313_v50, %v2139_v53 }
 0x1e4   : > { %v3696_v61 = vpop.eup %3695  ;;  %v2406_v44 = vmul.f32 0.6931472, %v3694_v33 }
 0x1e5   : > { %v2050_v17 = vadd.f32 %v2041_v57, %v2032_v38  ;;  %v2418_v8 = vand.u32 2147483647, %v2404_v27  ;;  %v2174_v62 = vmul.f32 0.5, %v2173_v20 }
 0x1e6   : > { %v1974_v0 = vpop.f32.mrf.mxu2  ;;  %v1928_v37 = vpop.f32.mrf.mxu0 }
 0x1e7   : > { %v2086_v24 = vsel %vm2066_vm0, %v2050_v17, 0.0  ;;  %v1975_v42 = vadd.f32 %v1974_v0, %v1951_v13  ;;  %v1998_v25 = vpop.f32.mrf.mxu3  ;;  %v1952_v19 = vpop.f32.mrf.mxu1  ;;  %v2410_v13 = vmul.f32 0.6931472, %v3696_v61  ;;  %v2419_v17 = vand.u32 2147483647, %v2406_v44 }
 0x1e8   : > { %v4340_v60 = vmax.f32 %v2086_v24, 1e-07  ;;  %v1953_v34 = vadd.f32 %v1952_v19, %v1928_v37  ;;  %v4355_v52 = vpop.eup %3697  ;;  %vm2142_vm0 = vcmp.eq.f32.partialorder %v4292_v4, inf }
 0x1e9   : > { %v1999_v29 = vadd.f32 %v1998_v25, %v1975_v42  ;;  %v2208_v10 = vmul.f32 %v4355_v52, %v4332_v7  ;;  %v2141_v42 = vmul.f32 %v2140_v36, %v4292_v4 }
 0x1ea   : > { %v2390_v54 = vmul.f32 %v3690_v56, %v4340_v60  ;;  %3699 = vrsqrt.f32 %v4340_v60  ;;  %v2363_v46 = vadd.f32 %v4234_v5, %v4340_v60  ;;  %v2175_v56 = vsub.f32 1.5, %v2174_v62 }
 0x1eb   : > { %v2044_v26 = vmul.f32 %v1999_v29, %v1999_v29  ;;  %3701 = vrcp.f32 %v4309_v39  ;;  %v2209_v29 = vmul.f32 %v4355_v52, %v2208_v10  ;;  %vm2252_vm14 = vcmp.eq.f32.partialorder %v4340_v60, 0.0 }
 0x1ec   : > { %3703 = vlog2.f32 %v2390_v54  ;;  %v2364_v47 = vadd.f32 %v2363_v46, %v4130_v16  ;;  %v2176_v53 = vmul.f32 %v4335_v22, %v2175_v56 }
 0x1ed   : > { %v2053_v40 = vadd.f32 %v2044_v26, %v2035_v31  ;;  %3705 = vlog2.f32 %v4265_v43  ;;  %v2145_v26 = vand.u32 2147483648, %v4292_v4  ;;  %v2210_v61 = vmul.f32 0.5, %v2209_v29 }
 0x1ee   : > { %v1976_v14 = vpop.f32.mrf.mxu2  ;;  %v2365_v55 = vadd.f32 %v2364_v47, %v4239_v21  ;;  %v2177_v44 = vmul.f32 %v2176_v53, %v4309_v39 }
 0x1ef   : > { %v2089_v59 = vsel %vm2067_vm1, %v2053_v40, 0.0  ;;  %v1977_v48 = vadd.f32 %v1976_v14, %v1953_v34  ;;  %v2000_v2 = vpop.f32.mrf.mxu3  ;;  %vm2144_vm1 = vcmp.eq.f32.partialorder %v4292_v4, 0.0 }
 0x1f0   : > { %v3700_v5 = vpop.eup %3699  ;;  %v4362_v1 = vmax.f32 %v2089_v59, 1e-07  ;;  %v2253_v59 = vand.u32 2147483648, %v4340_v60 }
 0x1f1   : > { %v3702_v49 = vpop.eup %3701  ;;  %v2001_v16 = vadd.f32 %v2000_v2, %v1977_v48  ;;  %v2244_v41 = vmul.f32 %v3700_v5, %v4340_v60 }
 0x1f2   : > { %v3704_v9 = vpop.eup %3703  ;;  %v2393_v43 = vmul.f32 %v3702_v49, %v4362_v1  ;;  %3707 = vrsqrt.f32 %v4362_v1  ;;  %v2366_v50 = vadd.f32 %v2365_v55, %v4362_v1  ;;  %v2211_v55 = vsub.f32 1.5, %v2210_v61 }
 0x1f3   : > { %v2047_v38 = vmul.f32 %v2001_v16, %v2001_v16  ;;  %3709 = vrcp.f32 %v4332_v7  ;;  %v2402_v21 = vmul.f32 0.6931472, %v3704_v9  ;;  %v2245_v57 = vmul.f32 %v3700_v5, %v2244_v41  ;;  %v3706_v23 = vpop.eup %3705 }
 0x1f4   : > { %3711 = vlog2.f32 %v2393_v43  ;;  %v2367_v6 = vadd.f32 %v2366_v50, %v4149_v32  ;;  %v2412_v31 = vmul.f32 0.6931472, %v3706_v23  ;;  %v2143_v32 = vsel %vm2142_vm0, %v4292_v4, %v2141_v42 }
 0x1f5   : > { %v2056_v0 = vadd.f32 %v2047_v38, %v2038_v45  ;;  %v2417_v24 = vand.u32 2147483647, %v2402_v21  ;;  %v2246_v25 = vmul.f32 0.5, %v2245_v57  ;;  %v2146_v2 = vsel %vm2144_vm1, %v2145_v26, %v2143_v32 }
 0x1f6   : > { %v2368_v46 = vadd.f32 %v2367_v6, %v4257_v3  ;;  %v2421_v16 = vand.u32 2147483647, %v2410_v13  ;;  %v2422_v43 = vand.u32 2147483647, %v2412_v31  ;;  %v2179_v4 = vsel %vm2178_vm15, %v4309_v39, %v2177_v44 }
 0x1f7   : > { %v2092_v12 = vsel %vm2068_vm2, %v2056_v0, 0.0  ;;  %v2425_v37 = vadd.f32 %v4255_v35, %v2417_v24  ;;  %v2247_v19 = vsub.f32 1.5, %v2246_v25  ;;  %vm2250_vm2 = vcmp.eq.f32.partialorder %v4340_v60, inf }
 0x1f8   : > { %v3708_v54 = vpop.eup %3707  ;;  %v4381_v28 = vmax.f32 %v2092_v12, 1e-07  ;;  %v2212_v57 = vmul.f32 %v4355_v52, %v2211_v55  ;;  %v2339_v13 = vmul.f32 %v4187_v51, %v4187_v51  ;;  %v2181_v24 = vand.u32 2147483648, %v4309_v39 }
 0x1f9   : > { %v3710_v33 = vpop.eup %3709  ;;  %v2426_v40 = vadd.f32 %v2425_v37, %v2418_v8  ;;  %v2248_v34 = vmul.f32 %v3700_v5, %v2247_v19  ;;  %v2280_v58 = vmul.f32 %v3708_v54, %v4362_v1  ;;  %vm2286_vm4 = vcmp.eq.f32.partialorder %v4362_v1, inf }
 0x1fa   : > { %v3712_v27 = vpop.eup %3711  ;;  %v2396_v35 = vmul.f32 %v3710_v33, %v4381_v28  ;;  %3713 = vrsqrt.f32 %v4381_v28  ;;  %v4394_v48 = vadd.f32 %v2368_v46, %v4381_v28  ;;  %v2289_v42 = vand.u32 2147483648, %v4362_v1 }
 0x1fb   : > { %v2408_v14 = vmul.f32 0.6931472, %v3712_v27  ;;  %v2427_v20 = vadd.f32 %v2426_v40, %v2419_v17  ;;  %v2249_v47 = vmul.f32 %v2248_v34, %v4340_v60  ;;  %v2281_v3 = vmul.f32 %v3708_v54, %v2280_v58 }
 0x1fc   : > { %3715 = vlog2.f32 %v2396_v35  ;;  %vm2288_vm5 = vcmp.eq.f32.partialorder %v4362_v1, 0.0  ;;  %v2182_v51 = vsel %vm2180_vm3, %v2181_v24, %v2179_v4  ;;  %v2340_v12 = vmul.f32 %v4300_v30, %v4300_v30 }
 0x1fd   : > { %v2420_v5 = vand.u32 2147483647, %v2408_v14  ;;  %v2251_v45 = vsel %vm2250_vm2, %v4340_v60, %v2249_v47  ;;  %v2282_v22 = vmul.f32 0.5, %v2281_v3  ;;  %v2213_v39 = vmul.f32 %v2212_v57, %v4332_v7 }
 0x1fe   : > { %v2254_v49 = vsel %vm2252_vm14, %v2253_v59, %v2251_v45  ;;  %v2342_v40 = vmul.f32 %v4207_v11, %v4207_v11  ;;  %v2217_v32 = vand.u32 2147483648, %v4332_v7  ;;  %vm2322_vm8 = vcmp.eq.f32.partialorder %v4381_v28, inf }
 0x1ff   : > { %v2428_v8 = vadd.f32 %v2427_v20, %v2420_v5  ;;  %v2283_v36 = vsub.f32 1.5, %v2282_v22  ;;  %v2329_v41 = vsub.f32 %v2254_v49, %v2146_v2  ;;  %v2325_v34 = vand.u32 2147483648, %v4381_v28 }
 0x200   : > { %v3714_v9 = vpop.eup %3713  ;;  %vm2324_vm9 = vcmp.eq.f32.partialorder %v4381_v28, 0.0  ;;  %v2343_v27 = vmul.f32 %v4324_v15, %v4324_v15 }
 0x201   : > { %v2429_v62 = vadd.f32 %v2428_v8, %v2421_v16  ;;  %v2284_v10 = vmul.f32 %v3708_v54, %v2283_v36  ;;  %v2316_v60 = vmul.f32 %v3714_v9, %v4381_v28  ;;  %v2338_v38 = vmul.f32 %v2329_v41, %v2329_v41 }
 0x202   : > { %v3716_v21 = vpop.eup %3715 }
 0x203   : > { %v2414_v17 = vmul.f32 0.6931472, %v3716_v21  ;;  %v2430_v50 = vadd.f32 %v2429_v62, %v2422_v43  ;;  %v2285_v23 = vmul.f32 %v2284_v10, %v4362_v1  ;;  %v2317_v0 = vmul.f32 %v3714_v9, %v2316_v60 }
 0x204   : > { %v2346_v25 = vadd.f32 %v4298_v18, %v2338_v38  ;;  %v2443_v60 = vand.u32 127, %v2057_v63 }
 0x205   : > { %v2423_v56 = vand.u32 2147483647, %v2414_v17  ;;  %v2287_v29 = vsel %vm2286_vm4, %v4362_v1, %v2285_v23  ;;  %v2318_v52 = vmul.f32 0.5, %v2317_v0  ;;  %v2215_v1 = vsel %vm2214_vm6, %v4332_v7, %v2213_v39 }
 0x206   : > { %v2290_v6 = vsel %vm2288_vm5, %v2289_v42, %v2287_v29  ;;  %v2347_v37 = vadd.f32 %v2346_v25, %v2339_v13  ;;  %v2218_v53 = vsel %vm2216_vm7, %v2217_v32, %v2215_v1  ;;  %vm2444_vm10 = vcmp.eq.s32.totalorder %v2443_v60, 0 }
 0x207   : > { %v2431_v19 = vadd.f32 %v2430_v50, %v2423_v56  ;;  %v2319_v54 = vsub.f32 1.5, %v2318_v52  ;;  %v2332_v31 = vsub.f32 %v2290_v6, %v2182_v51  ;;  %vm2447_vm11 = vcmp.eq.s32.totalorder %v2443_v60, 1 }
 0x208   : > { %v2348_v26 = vadd.f32 %v2347_v37, %v2340_v12  ;;  %vm2451_vm12 = vcmp.eq.s32.totalorder %v2443_v60, 2 }
 0x209   : > { %2432 = vadd.xlane.f32.xlu1 %v2431_v19  ;;  %v2320_v18 = vmul.f32 %v3714_v9, %v2319_v54  ;;  %v2341_v46 = vmul.f32 %v2332_v31, %v2332_v31 }
 0x20b   : > { %v2321_v33 = vmul.f32 %v2320_v18, %v4381_v28  ;;  %v2349_v30 = vadd.f32 %v2348_v26, %v2341_v46 }
 0x20d   : > { %v2323_v58 = vsel %vm2322_vm8, %v4381_v28, %v2321_v33  ;;  %v2350_v35 = vadd.f32 %v2349_v30, %v2342_v40 }
 0x20e   : > { %v2326_v61 = vsel %vm2324_vm9, %v2325_v34, %v2323_v58 }
 0x20f   : > { %v2335_v11 = vsub.f32 %v2326_v61, %v2218_v53  ;;  %v2351_v14 = vadd.f32 %v2350_v35, %v2343_v27 }
 0x211   : > { %v2344_v20 = vmul.f32 %v2335_v11, %v2335_v11 }
 0x213   : > { %v2352_v47 = vadd.f32 %v2351_v14, %v2344_v20 }
 0x215   : > { %2353 = vadd.xlane.f32.xlu0 %v2352_v47 }
 0x21d   : > { %2370 = vadd.xlane.f32.xlu0 %v4394_v48 }
 0x27c   : > { %v2433_v7 = vpop.xlane.xlu1 %2432 }
 0x27d   : > { %v2434_v3 = vrot.slane %v2433_v7, 4 }
 0x27f   : > { %v2435_v22 = vadd.f32 %v2434_v3, %v2433_v7 }
 0x281   : > { %v2436_v44 = vrot.slane %v2435_v22, 2 }
 0x283   : > { %v2437_v36 = vadd.f32 %v2436_v44, %v2435_v22 }
 0x285   : > { %v2438_v9 = vrot.slane %v2437_v36, 1 }
 0x287   : > { %v2439_v10 = vadd.f32 %v2438_v9, %v2437_v36 }
 0x288   : > { %v2354_v59 = vpop.xlane.xlu0 %2353 }
 0x289   : > { %v2355_v5 = vrot.slane %v2354_v59, 4 }
 0x28b   : > { %v2356_v45 = vadd.f32 %v2355_v5, %v2354_v59 }
 0x28d   : > { %v2357_v28 = vrot.slane %v2356_v45, 2 }
 0x28f   : > { %v2358_v2 = vadd.f32 %v2357_v28, %v2356_v45 }
 0x290   : > { %v2371_v15 = vpop.xlane.xlu0 %2370 }
 0x291   : > { %v2372_v55 = vrot.slane %v2371_v15, 4  ;;  %v2359_v49 = vrot.slane %v2358_v2, 1 }
 0x293   : > { %v2373_v16 = vadd.f32 %v2372_v55, %v2371_v15  ;;  %v2360_v8 = vadd.f32 %v2359_v49, %v2358_v2 }
 0x295   : > { %v2374_v41 = vrot.slane %v2373_v16, 2  ;;  %3587 = vpush %v2360_v8 }
 0x297   : > { %v2375_v48 = vadd.f32 %v2374_v41, %v2373_v16 }
 0x299   : > { %v2376_v43 = vrot.slane %v2375_v48, 1 }
 0x29b   : > { %v2377_v62 = vadd.f32 %v2376_v43, %v2375_v48 }
 0x29d   : > { %3589 = vpush %v2377_v62 }
 0x29e   : > { %3591 = vpush %v2439_v10 }
 0x2c6   : > { %s3588_s22 = spop %3587 }
 0x2c7   : > { %v2445_v38 = vstv %s3588_s22 }
 0x2c8   : > { %v2446_v4 = vsel %vm2444_vm10, %v2445_v38, 0.0 }
 0x2ce   : > { %s3590_s25 = spop %3589 }
 0x2cf   : > { %v2448_v21 = vstv %s3590_s25  ;;  %s3592_s29 = spop %3591 }
 0x2d0   : > { %v2449_v57 = vsel %vm2447_vm11, %v2448_v21, 0.0  ;;  %s2441_s30 = smul.f32 0.5, %s3592_s29 }
 0x2d1   : > { %v2450_v63 = vadd.f32 %v2449_v57, %v2446_v4 }
 0x2d2   : > { %v2452_v13 = vstv %s2441_s30 }
 0x2d3   : > { %v2453_v17 = vsel %vm2451_vm12, %v2452_v13, 0.0 }
 0x2d4   : > { %v2454_v50 = vadd.f32 %v2453_v17, %v2450_v63 }
 0x2d6   : > { %2455 = vst [vmem:[%s201_s3] sm:$0xff] %v2454_v50 }
 0x2d7   : > { %3774 = shalt.err (!%p3771_p9)
}
 0x2d8   : > { %3597 = dma.vmem_to_hbm [thread:$0]  (%p3876_p6), %s2470_s4, 128, %s2472_s13, %s2457_s5  }
 0x2d9 PF: > { %s2483_s14 = sand.u32 1, %s3801_s9   ;;  %p3604_p11 = pnand %p2552_p1, %p3882_p10 }
 0x2da   : > { %s2484_s23 = scalar_lea.sflag [#allocation5], %s2483_s14 }
 0x2db   : > { %p3605_p12 = pneg %p3604_p11 }
 0x2dd   : > { %3796 = dma.done.wait (%p3605_p12), %s2484_s23, 128  }
 0x2de   : > { %3798 = vsyncadd (%p3605_p12), %s2484_s23, 4294967168  ;;  %p13_p13 = scmp.ge.s32.totalorder %s3858_s15, 4   ;;  %s4474_s9 = smov %s3805_s10 }
 0x2df   : > { %s4475_s10 = smov %s3809_s11  ;;  %s4476_s11 = smov %s3870_s18 }
 0x2e0   : > { %s4477_s12 = smov %s3858_s15  ;;  %15 = sbr.rel (!%p13_p13) target bundleno = 4 (0x4), region = 96 }
 0x2e5   :  { %2490 = vsyncpa [#allocation4], 1 }
 0x2e6   :  { %2492 = vsyncpa [#allocation4 + $0x1], 1 }
 0x2e7   :  { %2493 = vsyncpa [#allocation5], 1 }
 0x2e8   :  { %2495 = vsyncpa [#allocation5 + $0x1], 1 }

</bundles_post_ra>
